<compile_context>
chip_gen: v6e
topology: v6e:2x2x1
jax: 0.10.0
libtpu: 0.0.40
codegen_flags: <defaults>
</compile_context>

<pallas_src>
import functools
import math

import numpy as np
import jax
import jax.numpy as jnp
from jax import lax
from jax.experimental import pallas as pl
from jax.experimental.pallas import tpu as pltpu

F32 = jnp.float32
BF16 = jnp.bfloat16

KT = 25          # Conv2d(1, D, (1, 25)) time taps
POOL_W = 75      # AvgPool2d((1, 75), (1, 15))
POOL_S = 15
NEG_BIG = -1e30  # cross-batch attention mask value


def _layernorm(x, g, b, eps=1e-5):
    # PyTorch nn.LayerNorm: biased variance over the last dim
    mu = jnp.mean(x, axis=-1, keepdims=True)
    var = jnp.mean(jnp.square(x - mu), axis=-1, keepdims=True)
    return (x - mu) * lax.rsqrt(var + eps) * g + b


# --------------------------- fused forward kernel ---------------------------

def fused_kernel(B, Np, n_win, heads, dim_head,
                 patches_ref, w_ref, scale_ref, shift_ref, pool_ref,
                 tok0_ref, pos_ref, hmask_ref, bias_ref,
                 ln1g_ref, ln1b_ref, wqkv_ref, wo_ref, bo_ref,
                 ln2g_ref, ln2b_ref, w1_ref, b1_ref, w2_ref, b2_ref,
                 hg_ref, hb_ref, hw_ref, hbias_ref,
                 logits_ref, xbuf):
    l = pl.program_id(0)
    inner = heads * dim_head
    BNp = B * Np

    # ------------------- grid step 0: fused patch embedding -------------------
    @pl.when(l == 0)
    def _():
        # conv1 o conv2 as ONE im2col matmul: (B*T1, KT*C) @ (KT*C, D)
        y = jnp.dot(patches_ref[...], w_ref[...], preferred_element_type=F32)
        # eval-mode BatchNorm2d (fused conv bias folded into shift)
        y = y * scale_ref[...] + shift_ref[...]
        # ELU(alpha=1): expm1(y) = 2t/(1-t), t = tanh(y/2) (avoids exp(y)-1 cancellation)
        yn = jnp.minimum(y, 0.0)
        t = jnp.tanh(0.5 * yn)
        y = jnp.where(y > 0, y, 2.0 * t * pl.reciprocal(1.0 - t, approx=True))
        # AvgPool2d((1,75),(1,15)) as a block-diagonal (B*n_win, B*T1) pooling matmul
        pooled = jnp.dot(pool_ref[...], y.astype(BF16),
                         preferred_element_type=F32)            # (B*n_win, D)
        pos_full = jnp.concatenate([pos_ref[...]] * B, axis=0)  # (B*n_win, D)
        body = pooled + pos_full
        # interleave cls token (+ pos[0]) per batch element -> flat (B*Np, D) token stream
        parts = []
        for b in range(B):
            parts.append(tok0_ref[...])
            parts.append(body[b * n_win:(b + 1) * n_win, :])
        xbuf[...] = jnp.concatenate(parts, axis=0)

    x = xbuf[...]                                                # (B*Np, D) residual (f32)

    # ----- PreNorm + multi-head self-attention (no mask in this model) -----
    h = _layernorm(x, ln1g_ref[0], ln1b_ref[0]).astype(BF16)
    qkv = jnp.dot(h, wqkv_ref[0], preferred_element_type=F32)   # (B*Np, 3*inner)
    # lane-aligned 128-boundary slices only; q already scaled by dim_head**-0.5 offline
    q = qkv[:, :inner].astype(BF16)
    k = qkv[:, inner:2 * inner].astype(BF16)
    v = qkv[:, 2 * inner:].astype(BF16)
    hmask = hmask_ref[...]                                       # (heads, inner) 0/1 lane masks
    bias = bias_ref[...]                                         # (B*Np, B*Np) batch-block bias

    attn_o = jnp.zeros((BNp, inner), F32)
    for hd in range(heads):
        m_h = hmask[hd:hd + 1, :]                                # (1, inner)
        # per-head scores via lane masking: identical to q_h @ k_h.T (masked lanes add 0)
        s = jnp.einsum('nd,md->nm', q, k * m_h,
                       preferred_element_type=F32) + bias        # (BNp, BNp)
        s_max = jnp.max(s, axis=-1, keepdims=True)
        e = jnp.exp(s - s_max)                                   # cross-batch entries -> exactly 0
        p = e * pl.reciprocal(jnp.sum(e, axis=-1, keepdims=True), approx=True)
        # masked V keeps head hd's output on its own lanes -> accumulation = head concat
        attn_o = attn_o + jnp.dot(p.astype(BF16), v * m_h,
                                  preferred_element_type=F32)
    # single full-width output projection (contraction depth = inner = 128)
    x = x + jnp.dot(attn_o.astype(BF16), wo_ref[0],
                    preferred_element_type=F32) + bo_ref[0]

    # ----- PreNorm + feed-forward: Linear -> exact GELU -> Linear -----
    h2 = _layernorm(x, ln2g_ref[0], ln2b_ref[0]).astype(BF16)
    f = jnp.dot(h2, w1_ref[0], preferred_element_type=F32) + b1_ref[0]
    f = 0.5 * f * (1.0 + lax.erf(f * jnp.float32(1.0 / math.sqrt(2.0))))
    f = jnp.dot(f.astype(BF16), w2_ref[0], preferred_element_type=F32) + b2_ref[0]
    x = x + f
    xbuf[...] = x

    # ----- last step: cls token -> LayerNorm -> Linear classification head -----
    @pl.when(l == pl.num_programs(0) - 1)
    def _():
        cls = jnp.concatenate([x[b * Np:b * Np + 1, :] for b in range(B)], axis=0)  # (B, D)
        hc = _layernorm(cls, hg_ref[...], hb_ref[...])
        logits_ref[...] = jnp.dot(hc, hw_ref[...],
                                  preferred_element_type=F32) + hbias_ref[...]


# ----------------------------- parameters & glue -----------------------------

def init_params(key, cfg):
    D, C = cfg['D'], cfg['C']
    heads, dh, mlp = cfg['heads'], cfg['dim_head'], cfg['mlp']
    depth, nc = cfg['depth'], cfg['num_classes']
    inner = heads * dh
    keys = jax.random.split(key, 8 + depth)

    def rnd(k, shape, s=0.02):
        return (s * jax.random.normal(k, shape)).astype(F32)

    params = {
        'conv1_w': rnd(keys[0], (D, 1, 1, KT), 0.1),     # Conv2d(1, D, (1, 25))
        'conv1_b': rnd(keys[1], (D,), 0.1),
        'conv2_w': rnd(keys[2], (D, D, C, 1), 0.05),     # Conv2d(D, D, (22, 1))
        'conv2_b': rnd(keys[3], (D,), 0.1),
        'bn_gamma': jnp.ones((D,), F32),                 # BatchNorm2d(D) init / running stats
        'bn_beta': jnp.zeros((D,), F32),
        'bn_mean': jnp.zeros((D,), F32),
        'bn_var': jnp.ones((D,), F32),
        'pos_embedding': rnd(keys[4], (1, 1343, D), 0.02),
        'cls_token': rnd(keys[5], (1, 1, D), 0.02),
        'head_ln_g': jnp.ones((1, D), F32),
        'head_ln_b': jnp.zeros((1, D), F32),
        'head_w': rnd(keys[6], (D, nc), 0.02),
        'head_b': rnd(keys[7], (1, nc), 0.02),
        'layers': [],
    }
    for li in range(depth):
        lk = jax.random.split(keys[8 + li], 6)
        params['layers'].append({
            'ln1_g': jnp.ones((1, D), F32),
            'ln1_b': jnp.zeros((1, D), F32),
            'wqkv': rnd(lk[0], (D, 3 * inner), 0.02),    # to_qkv (bias=False)
            'wo': rnd(lk[1], (inner, D), 0.02),          # to_out Linear
            'bo': rnd(lk[2], (1, D), 0.02),
            'ln2_g': jnp.ones((1, D), F32),
            'ln2_b': jnp.zeros((1, D), F32),
            'ff_w1': rnd(lk[3], (D, mlp), 0.02),
            'ff_b1': rnd(lk[4], (1, mlp), 0.02),
            'ff_w2': rnd(lk[5], (mlp, D), 0.02),
            'ff_b2': jnp.zeros((1, D), F32),
        })
    return params


def prepare_params(params, cfg):
    """One-time rearrangement of PyTorch-layout params into kernel-ready form."""
    D, C = cfg['D'], cfg['C']
    heads, dh = cfg['heads'], cfg['dim_head']
    inner = heads * dh
    scale = dh ** -0.5
    T = cfg['T']
    T1 = T - KT + 1
    n_win = (T1 - POOL_W) // POOL_S + 1

    # Fuse Conv2d(1,D,(1,25)) and Conv2d(D,D,(22,1)) -- exact (both linear, nothing between).
    w1m = params['conv1_w'][:, 0, 0, :]                          # (D, 25)
    w2m = params['conv2_w'][:, :, :, 0]                          # (D_out, D_in, C)
    w_eff = jnp.einsum('edc,dk->kce', w2m, w1m)                  # (25, C, D)
    w_eff = w_eff.reshape(KT * C, D).astype(BF16)                # row = k*C + c (im2col layout)
    b_eff = jnp.einsum('edc,d->e', w2m, params['conv1_b']) + params['conv2_b']

    bn_scale_v = params['bn_gamma'] / jnp.sqrt(params['bn_var'] + 1e-5)
    bn_shift_v = (params['bn_beta'] - params['bn_mean'] * bn_scale_v
                  + b_eff * bn_scale_v)                          # conv bias folded in
    bn_scale = bn_scale_v.reshape(1, D)
    bn_shift = bn_shift_v.reshape(1, D)

    tok0 = params['cls_token'][0] + params['pos_embedding'][0, 0:1, :]   # (1, D)
    pos_rest = params['pos_embedding'][0, 1:n_win + 1, :]                # (n_win, D)

    def stack(name):
        return jnp.stack([lp[name] for lp in params['layers']])

    # fold the softmax scale (dim_head**-0.5) into the q columns of to_qkv
    wqkv_scaled = []
    for lp in params['layers']:
        w = lp['wqkv']
        wqkv_scaled.append(jnp.concatenate([w[:, :inner] * scale, w[:, inner:]], axis=1))

    stacked = {
        'ln1_g': stack('ln1_g'), 'ln1_b': stack('ln1_b'),
        'wqkv': jnp.stack(wqkv_scaled).astype(BF16),
        'wo': stack('wo').astype(BF16),
        'bo': stack('bo'),
        'ln2_g': stack('ln2_g'), 'ln2_b': stack('ln2_b'),
        'ff_w1': stack('ff_w1').astype(BF16), 'ff_b1': stack('ff_b1'),
        'ff_w2': stack('ff_w2').astype(BF16), 'ff_b2': stack('ff_b2'),
    }
    head = {'ln_g': params['head_ln_g'], 'ln_b': params['head_ln_b'],
            'w': params['head_w'], 'b': params['head_b']}
    return {'w_eff': w_eff, 'bn_scale': bn_scale, 'bn_shift': bn_shift,
            'tok0': tok0, 'pos_rest': pos_rest, 'stacked': stacked, 'head': head}


def physio_transformer_forward(prep, x_eeg, cfg):
    B, C, T = x_eeg.shape
    D = cfg['D']
    heads, dh, mlp = cfg['heads'], cfg['dim_head'], cfg['mlp']
    depth, nc = cfg['depth'], cfg['num_classes']
    inner = heads * dh
    T1 = T - KT + 1
    n_win = (T1 - POOL_W) // POOL_S + 1
    Np = n_win + 1
    BNp = B * Np

    # ---- im2col in the wrapper (XLA): (B, C, T) -> (B*T1, KT*C), bf16 ----
    x_t = jnp.transpose(x_eeg, (0, 2, 1))                         # (B, T, C)
    patches = jnp.concatenate([x_t[:, k:k + T1, :] for k in range(KT)], axis=-1)
    patches = patches.reshape(B * T1, KT * C).astype(BF16)        # col = k*C + c

    # ---- static constants (numpy, baked at trace time) ----
    P = np.zeros((n_win, T1), np.float32)
    for i in range(n_win):
        P[i, i * POOL_S:i * POOL_S + POOL_W] = 1.0 / POOL_W
    pool_bd = jnp.asarray(np.kron(np.eye(B, dtype=np.float32), P)).astype(BF16)

    hmask_np = np.zeros((heads, inner), np.float32)
    for hd in range(heads):
        hmask_np[hd, hd * dh:(hd + 1) * dh] = 1.0
    hmask = jnp.asarray(hmask_np).astype(BF16)

    bb = np.arange(BNp) // Np
    attn_bias = jnp.asarray(
        np.where(bb[:, None] == bb[None, :], 0.0, NEG_BIG).astype(np.float32))

    kernel = functools.partial(fused_kernel, B, Np, n_win, heads, dh)
    stacked, head_p = prep['stacked'], prep['head']

    const2 = lambda l: (0, 0)
    layer3 = lambda l: (l, 0, 0)

    logits = pl.pallas_call(
        kernel,
        out_shape=jax.ShapeDtypeStruct((B, nc), F32),
        grid=(depth,),
        in_specs=[
            pl.BlockSpec((B * T1, KT * C), const2),        # im2col patches (bf16)
            pl.BlockSpec((KT * C, D), const2),             # fused conv weight (bf16)
            pl.BlockSpec((1, D), const2),                  # BN scale
            pl.BlockSpec((1, D), const2),                  # BN shift (+ conv bias)
            pl.BlockSpec((B * n_win, B * T1), const2),     # block-diag avg-pool matrix (bf16)
            pl.BlockSpec((1, D), const2),                  # cls token + pos[0]
            pl.BlockSpec((n_win, D), const2),              # pos[1:n_win+1]
            pl.BlockSpec((heads, inner), const2),          # per-head lane masks (bf16)
            pl.BlockSpec((BNp, BNp), const2),              # batch-block attention bias
            pl.BlockSpec((1, 1, D), layer3),               # ln1 gamma
            pl.BlockSpec((1, 1, D), layer3),               # ln1 beta
            pl.BlockSpec((1, D, 3 * inner), layer3),       # to_qkv weight (bf16, q pre-scaled)
            pl.BlockSpec((1, inner, D), layer3),           # to_out weight (bf16)
            pl.BlockSpec((1, 1, D), layer3),               # to_out bias
            pl.BlockSpec((1, 1, D), layer3),               # ln2 gamma
            pl.BlockSpec((1, 1, D), layer3),               # ln2 beta
            pl.BlockSpec((1, D, mlp), layer3),             # ff linear1 weight (bf16)
            pl.BlockSpec((1, 1, mlp), layer3),             # ff linear1 bias
            pl.BlockSpec((1, mlp, D), layer3),             # ff linear2 weight (bf16)
            pl.BlockSpec((1, 1, D), layer3),               # ff linear2 bias
            pl.BlockSpec((1, D), const2),                  # head layernorm gamma
            pl.BlockSpec((1, D), const2),                  # head layernorm beta
            pl.BlockSpec((D, nc), const2),                 # head linear weight
            pl.BlockSpec((1, nc), const2),                 # head linear bias
        ],
        out_specs=pl.BlockSpec((B, nc), const2),
        scratch_shapes=[pltpu.VMEM((BNp, D), F32)],        # resident flat residual stream
        compiler_params=pltpu.CompilerParams(
            dimension_semantics=("arbitrary",)),
    )(patches, prep['w_eff'], prep['bn_scale'], prep['bn_shift'],
      pool_bd, prep['tok0'], prep['pos_rest'], hmask, attn_bias,
      stacked['ln1_g'], stacked['ln1_b'], stacked['wqkv'], stacked['wo'], stacked['bo'],
      stacked['ln2_g'], stacked['ln2_b'], stacked['ff_w1'], stacked['ff_b1'],
      stacked['ff_w2'], stacked['ff_b2'],
      head_p['ln_g'], head_p['ln_b'], head_p['w'], head_p['b'])
    return logits


# TODO(synk): training-mode Dropout / batch-statistic BatchNorm are stochastic/batch-dependent
# and are intentionally realized with their deterministic eval-mode semantics.

if __name__ == "__main__":
    # num_channels must equal the hard-coded Conv2d height (22);
    # num_timesteps must be >= 99 (25-tap conv then 75-wide avg-pool).
    cfg = dict(D=128, C=22, T=204, heads=4, dim_head=32, mlp=32, depth=2, num_classes=4)

    key = jax.random.PRNGKey(0)
    pkey, xkey = jax.random.split(key)
    params = init_params(pkey, cfg)
    prep = prepare_params(params, cfg)
    x_eeg = jax.random.normal(xkey, (2, cfg['C'], cfg['T']), dtype=jnp.float32)

    fwd = jax.jit(lambda p, x: physio_transformer_forward(p, x, cfg))
    logits = jax.block_until_ready(fwd(prep, x_eeg))
    assert logits.shape == (2, cfg['num_classes'])
    assert bool(jnp.all(jnp.isfinite(logits)))
    print("KERNEL_OK")
</pallas_src>

<mosaic_0001>
module attributes {stable_mosaic.version = 11 : i64} {
  func.func @fused_kernel(%arg0: i32, %arg1: memref<360x550xbf16, #tpu.memory_space<vmem>>, %arg2: memref<550x128xbf16, #tpu.memory_space<vmem>>, %arg3: memref<1x128xf32, #tpu.memory_space<vmem>>, %arg4: memref<1x128xf32, #tpu.memory_space<vmem>>, %arg5: memref<16x360xbf16, #tpu.memory_space<vmem>>, %arg6: memref<1x128xf32, #tpu.memory_space<vmem>>, %arg7: memref<8x128xf32, #tpu.memory_space<vmem>>, %arg8: memref<4x128xbf16, #tpu.memory_space<vmem>>, %arg9: memref<18x18xf32, #tpu.memory_space<vmem>>, %arg10: memref<1x1x128xf32, #tpu.memory_space<vmem>>, %arg11: memref<1x1x128xf32, #tpu.memory_space<vmem>>, %arg12: memref<1x128x384xbf16, #tpu.memory_space<vmem>>, %arg13: memref<1x128x128xbf16, #tpu.memory_space<vmem>>, %arg14: memref<1x1x128xf32, #tpu.memory_space<vmem>>, %arg15: memref<1x1x128xf32, #tpu.memory_space<vmem>>, %arg16: memref<1x1x128xf32, #tpu.memory_space<vmem>>, %arg17: memref<1x128x32xbf16, #tpu.memory_space<vmem>>, %arg18: memref<1x1x32xf32, #tpu.memory_space<vmem>>, %arg19: memref<1x32x128xbf16, #tpu.memory_space<vmem>>, %arg20: memref<1x1x128xf32, #tpu.memory_space<vmem>>, %arg21: memref<1x128xf32, #tpu.memory_space<vmem>>, %arg22: memref<1x128xf32, #tpu.memory_space<vmem>>, %arg23: memref<128x4xf32, #tpu.memory_space<vmem>>, %arg24: memref<1x4xf32, #tpu.memory_space<vmem>>, %arg25: memref<2x4xf32, #tpu.memory_space<vmem>>, %arg26: memref<18x128xf32, #tpu.memory_space<vmem>>) attributes {dimension_semantics = [#tpu.dimension_semantics<arbitrary>], iteration_bounds = array<i64: 2>, scalar_prefetch = 0 : i64, scratch_operands = 1 : i64, tpu.core_type = #tpu.core_type<tc>, window_params = [{pipeline_mode = #tpu.pipeline_mode<synchronous>, transform_indices = @transform_0, window_bounds = array<i64: 360, 550>}, {pipeline_mode = #tpu.pipeline_mode<synchronous>, transform_indices = @transform_1, window_bounds = array<i64: 550, 128>}, {pipeline_mode = #tpu.pipeline_mode<synchronous>, transform_indices = @transform_2, window_bounds = array<i64: 1, 128>}, {pipeline_mode = #tpu.pipeline_mode<synchronous>, transform_indices = @transform_3, window_bounds = array<i64: 1, 128>}, {pipeline_mode = #tpu.pipeline_mode<synchronous>, transform_indices = @transform_4, window_bounds = array<i64: 16, 360>}, {pipeline_mode = #tpu.pipeline_mode<synchronous>, transform_indices = @transform_5, window_bounds = array<i64: 1, 128>}, {pipeline_mode = #tpu.pipeline_mode<synchronous>, transform_indices = @transform_6, window_bounds = array<i64: 8, 128>}, {pipeline_mode = #tpu.pipeline_mode<synchronous>, transform_indices = @transform_7, window_bounds = array<i64: 4, 128>}, {pipeline_mode = #tpu.pipeline_mode<synchronous>, transform_indices = @transform_8, window_bounds = array<i64: 18, 18>}, {transform_indices = @transform_9, window_bounds = array<i64: 1, 1, 128>}, {transform_indices = @transform_10, window_bounds = array<i64: 1, 1, 128>}, {transform_indices = @transform_11, window_bounds = array<i64: 1, 128, 384>}, {transform_indices = @transform_12, window_bounds = array<i64: 1, 128, 128>}, {transform_indices = @transform_13, window_bounds = array<i64: 1, 1, 128>}, {transform_indices = @transform_14, window_bounds = array<i64: 1, 1, 128>}, {transform_indices = @transform_15, window_bounds = array<i64: 1, 1, 128>}, {transform_indices = @transform_16, window_bounds = array<i64: 1, 128, 32>}, {transform_indices = @transform_17, window_bounds = array<i64: 1, 1, 32>}, {transform_indices = @transform_18, window_bounds = array<i64: 1, 32, 128>}, {transform_indices = @transform_19, window_bounds = array<i64: 1, 1, 128>}, {pipeline_mode = #tpu.pipeline_mode<synchronous>, transform_indices = @transform_20, window_bounds = array<i64: 1, 128>}, {pipeline_mode = #tpu.pipeline_mode<synchronous>, transform_indices = @transform_21, window_bounds = array<i64: 1, 128>}, {pipeline_mode = #tpu.pipeline_mode<synchronous>, transform_indices = @transform_22, window_bounds = array<i64: 128, 4>}, {pipeline_mode = #tpu.pipeline_mode<synchronous>, transform_indices = @transform_23, window_bounds = array<i64: 1, 4>}, {pipeline_mode = #tpu.pipeline_mode<synchronous>, transform_indices = @transform_24, window_bounds = array<i64: 2, 4>}]} {
    %c0_i32 = arith.constant 0 : i32
    %0 = arith.cmpi eq, %arg0, %c0_i32 : i32
    %1 = arith.extui %0 : i1 to i32
    %c0_i32_0 = arith.constant 0 : i32
    %2 = arith.cmpi ne, %1, %c0_i32_0 : i32
    scf.if %2 {
      %c0_75 = arith.constant 0 : index
      %c0_76 = arith.constant 0 : index
      %187 = vector.load %arg1[%c0_75, %c0_76] : memref<360x550xbf16, #tpu.memory_space<vmem>>, vector<360x550xbf16>
      %c0_77 = arith.constant 0 : index
      %c0_78 = arith.constant 0 : index
      %188 = vector.load %arg2[%c0_77, %c0_78] : memref<550x128xbf16, #tpu.memory_space<vmem>>, vector<550x128xbf16>
      %cst_79 = arith.constant dense<0.000000e+00> : vector<360x128xf32>
      %189 = tpu.matmul %187, %188, %cst_79 {dimension_numbers = #tpu.dot_dimension_numbers<[1], [0], [0], [1], [0, 0, 1, 1], [], []>} : vector<360x550xbf16>, vector<550x128xbf16>, vector<360x128xf32> -> vector<360x128xf32>
      %c0_80 = arith.constant 0 : index
      %c0_81 = arith.constant 0 : index
      %190 = vector.load %arg3[%c0_80, %c0_81] : memref<1x128xf32, #tpu.memory_space<vmem>>, vector<1x128xf32>
      %191 = vector.broadcast %190 : vector<1x128xf32> to vector<360x128xf32>
      %192 = arith.mulf %189, %191 : vector<360x128xf32>
      %c0_82 = arith.constant 0 : index
      %c0_83 = arith.constant 0 : index
      %193 = vector.load %arg4[%c0_82, %c0_83] : memref<1x128xf32, #tpu.memory_space<vmem>>, vector<1x128xf32>
      %194 = vector.broadcast %193 : vector<1x128xf32> to vector<360x128xf32>
      %195 = arith.addf %192, %194 : vector<360x128xf32>
      %cst_84 = arith.constant 0.000000e+00 : f32
      %196 = vector.broadcast %cst_84 : f32 to vector<360x128xf32>
      %197 = arith.minimumf %195, %196 : vector<360x128xf32>
      %cst_85 = arith.constant 5.000000e-01 : f32
      %198 = vector.broadcast %cst_85 : f32 to vector<360x128xf32>
      %199 = arith.mulf %198, %197 : vector<360x128xf32>
      %200 = math.tanh %199 : vector<360x128xf32>
      %cst_86 = arith.constant 0.000000e+00 : f32
      %201 = vector.broadcast %cst_86 : f32 to vector<360x128xf32>
      %202 = arith.cmpf ogt, %195, %201 : vector<360x128xf32>
      %cst_87 = arith.constant 2.000000e+00 : f32
      %203 = vector.broadcast %cst_87 : f32 to vector<360x128xf32>
      %204 = arith.mulf %203, %200 : vector<360x128xf32>
      %cst_88 = arith.constant 1.000000e+00 : f32
      %205 = vector.broadcast %cst_88 : f32 to vector<360x128xf32>
      %206 = arith.subf %205, %200 : vector<360x128xf32>
      %207 = tpu.reciprocal %206 {approx = true} : vector<360x128xf32> -> vector<360x128xf32>
      %208 = arith.mulf %204, %207 : vector<360x128xf32>
      %209 = arith.select %202, %195, %208 : vector<360x128xi1>, vector<360x128xf32>
      %c0_89 = arith.constant 0 : index
      %c0_90 = arith.constant 0 : index
      %210 = vector.load %arg5[%c0_89, %c0_90] : memref<16x360xbf16, #tpu.memory_space<vmem>>, vector<16x360xbf16>
      %211 = arith.truncf %209 : vector<360x128xf32> to vector<360x128xbf16>
      %cst_91 = arith.constant dense<0.000000e+00> : vector<16x128xf32>
      %212 = tpu.matmul %210, %211, %cst_91 {dimension_numbers = #tpu.dot_dimension_numbers<[1], [0], [0], [1], [0, 0, 1, 1], [], []>} : vector<16x360xbf16>, vector<360x128xbf16>, vector<16x128xf32> -> vector<16x128xf32>
      %c0_92 = arith.constant 0 : index
      %c0_93 = arith.constant 0 : index
      %213 = vector.load %arg7[%c0_92, %c0_93] : memref<8x128xf32, #tpu.memory_space<vmem>>, vector<8x128xf32>
      %214 = tpu.concatenate %213, %213 in 0 : vector<8x128xf32>, vector<8x128xf32> -> vector<16x128xf32>
      %215 = arith.addf %212, %214 : vector<16x128xf32>
      %c0_94 = arith.constant 0 : index
      %c0_95 = arith.constant 0 : index
      %216 = vector.load %arg6[%c0_94, %c0_95] : memref<1x128xf32, #tpu.memory_space<vmem>>, vector<1x128xf32>
      %217 = vector.extract_strided_slice %215 {offsets = [0, 0], sizes = [8, 128], strides = [1, 1]} : vector<16x128xf32> to vector<8x128xf32>
      %c0_96 = arith.constant 0 : index
      %c0_97 = arith.constant 0 : index
      %218 = vector.load %arg6[%c0_96, %c0_97] : memref<1x128xf32, #tpu.memory_space<vmem>>, vector<1x128xf32>
      %219 = vector.extract_strided_slice %215 {offsets = [8, 0], sizes = [8, 128], strides = [1, 1]} : vector<16x128xf32> to vector<8x128xf32>
      %220 = tpu.concatenate %216, %217, %218, %219 in 0 : vector<1x128xf32>, vector<8x128xf32>, vector<1x128xf32>, vector<8x128xf32> -> vector<18x128xf32>
      %c0_98 = arith.constant 0 : index
      %c0_99 = arith.constant 0 : index
      %221 = vector.load %arg26[%c0_98, %c0_99] : memref<18x128xf32, #tpu.memory_space<vmem>>, vector<18x128xf32>
      tpu.vector_store %arg26[%c0_98, %c0_99], %220 {strides = array<i32>} : memref<18x128xf32, #tpu.memory_space<vmem>>, vector<18x128xf32>,
    } else {
    }
    %c0 = arith.constant 0 : index
    %c0_1 = arith.constant 0 : index
    %3 = vector.load %arg26[%c0, %c0_1] : memref<18x128xf32, #tpu.memory_space<vmem>>, vector<18x128xf32>
    %c0_2 = arith.constant 0 : index
    %c0_3 = arith.constant 0 : index
    %c0_4 = arith.constant 0 : index
    %4 = vector.load %arg10[%c0_2, %c0_3, %c0_4] : memref<1x1x128xf32, #tpu.memory_space<vmem>>, vector<1x1x128xf32>
    %5 = vector.shape_cast %4 : vector<1x1x128xf32> to vector<1x128xf32>
    %c0_5 = arith.constant 0 : index
    %c0_6 = arith.constant 0 : index
    %c0_7 = arith.constant 0 : index
    %6 = vector.load %arg11[%c0_5, %c0_6, %c0_7] : memref<1x1x128xf32, #tpu.memory_space<vmem>>, vector<1x1x128xf32>
    %7 = vector.shape_cast %6 : vector<1x1x128xf32> to vector<1x128xf32>
    %cst = arith.constant dense<0.000000e+00> : vector<18xf32>
    %8 = vector.multi_reduction <add>, %3, %cst [1] : vector<18x128xf32> to vector<18xf32>
    %9 = vector.shape_cast %8 : vector<18xf32> to vector<18x1xf32>
    %cst_8 = arith.constant 1.280000e+02 : f32
    %10 = vector.broadcast %cst_8 : f32 to vector<18x1xf32>
    %11 = arith.divf %9, %10 : vector<18x1xf32>
    %12 = vector.broadcast %11 : vector<18x1xf32> to vector<18x128xf32>
    %13 = arith.subf %3, %12 : vector<18x128xf32>
    %14 = arith.mulf %13, %13 : vector<18x128xf32>
    %cst_9 = arith.constant dense<0.000000e+00> : vector<18xf32>
    %15 = vector.multi_reduction <add>, %14, %cst_9 [1] : vector<18x128xf32> to vector<18xf32>
    %16 = vector.shape_cast %15 : vector<18xf32> to vector<18x1xf32>
    %cst_10 = arith.constant 1.280000e+02 : f32
    %17 = vector.broadcast %cst_10 : f32 to vector<18x1xf32>
    %18 = arith.divf %16, %17 : vector<18x1xf32>
    %19 = vector.broadcast %11 : vector<18x1xf32> to vector<18x128xf32>
    %20 = arith.subf %3, %19 : vector<18x128xf32>
    %cst_11 = arith.constant 9.99999974E-6 : f32
    %21 = vector.broadcast %cst_11 : f32 to vector<18x1xf32>
    %22 = arith.addf %18, %21 : vector<18x1xf32>
    %23 = math.rsqrt %22 : vector<18x1xf32>
    %24 = vector.broadcast %23 : vector<18x1xf32> to vector<18x128xf32>
    %25 = arith.mulf %20, %24 : vector<18x128xf32>
    %26 = vector.broadcast %5 : vector<1x128xf32> to vector<18x128xf32>
    %27 = arith.mulf %25, %26 : vector<18x128xf32>
    %28 = vector.broadcast %7 : vector<1x128xf32> to vector<18x128xf32>
    %29 = arith.addf %27, %28 : vector<18x128xf32>
    %30 = arith.truncf %29 : vector<18x128xf32> to vector<18x128xbf16>
    %c0_12 = arith.constant 0 : index
    %c0_13 = arith.constant 0 : index
    %c0_14 = arith.constant 0 : index
    %31 = vector.load %arg12[%c0_12, %c0_13, %c0_14] : memref<1x128x384xbf16, #tpu.memory_space<vmem>>, vector<1x128x384xbf16>
    %32 = vector.shape_cast %31 : vector<1x128x384xbf16> to vector<128x384xbf16>
    %cst_15 = arith.constant dense<0.000000e+00> : vector<18x384xf32>
    %33 = tpu.matmul %30, %32, %cst_15 {dimension_numbers = #tpu.dot_dimension_numbers<[1], [0], [0], [1], [0, 0, 1, 1], [], []>} : vector<18x128xbf16>, vector<128x384xbf16>, vector<18x384xf32> -> vector<18x384xf32>
    %34 = vector.extract_strided_slice %33 {offsets = [0, 0], sizes = [18, 128], strides = [1, 1]} : vector<18x384xf32> to vector<18x128xf32>
    %35 = arith.truncf %34 : vector<18x128xf32> to vector<18x128xbf16>
    %36 = vector.extract_strided_slice %33 {offsets = [0, 128], sizes = [18, 128], strides = [1, 1]} : vector<18x384xf32> to vector<18x128xf32>
    %37 = arith.truncf %36 : vector<18x128xf32> to vector<18x128xbf16>
    %38 = vector.extract_strided_slice %33 {offsets = [0, 256], sizes = [18, 128], strides = [1, 1]} : vector<18x384xf32> to vector<18x128xf32>
    %39 = arith.truncf %38 : vector<18x128xf32> to vector<18x128xbf16>
    %c0_16 = arith.constant 0 : index
    %c0_17 = arith.constant 0 : index
    %40 = vector.load %arg8[%c0_16, %c0_17] : memref<4x128xbf16, #tpu.memory_space<vmem>>, vector<4x128xbf16>
    %c0_18 = arith.constant 0 : index
    %c0_19 = arith.constant 0 : index
    %41 = vector.load %arg9[%c0_18, %c0_19] : memref<18x18xf32, #tpu.memory_space<vmem>>, vector<18x18xf32>
    %cst_20 = arith.constant 0.000000e+00 : f32
    %42 = vector.broadcast %cst_20 : f32 to vector<18x128xf32>
    %43 = vector.extract_strided_slice %40 {offsets = [0, 0], sizes = [1, 128], strides = [1, 1]} : vector<4x128xbf16> to vector<1x128xbf16>
    %44 = vector.broadcast %43 : vector<1x128xbf16> to vector<18x128xbf16>
    %45 = arith.mulf %37, %44 : vector<18x128xbf16>
    "tpu.trace_start"() <{level = 10 : i32, message = "nd,md->nm"}> : () -> ()
    %cst_21 = arith.constant dense<0.000000e+00> : vector<18x18xf32>
    %46 = tpu.matmul %35, %45, %cst_21 {dimension_numbers = #tpu.dot_dimension_numbers<[1], [1], [0], [0], [0, 0, 1, 0], [], []>} : vector<18x128xbf16>, vector<18x128xbf16>, vector<18x18xf32> -> vector<18x18xf32>
    "tpu.trace_stop"() : () -> ()
    %47 = arith.addf %46, %41 : vector<18x18xf32>
    %cst_22 = arith.constant dense<0xFF800000> : vector<18xf32>
    %48 = vector.multi_reduction <maximumf>, %47, %cst_22 [1] : vector<18x18xf32> to vector<18xf32>
    %49 = vector.shape_cast %48 : vector<18xf32> to vector<18x1xf32>
    %50 = vector.broadcast %49 : vector<18x1xf32> to vector<18x18xf32>
    %51 = arith.subf %47, %50 : vector<18x18xf32>
    %52 = math.exp %51 : vector<18x18xf32>
    %cst_23 = arith.constant dense<0.000000e+00> : vector<18xf32>
    %53 = vector.multi_reduction <add>, %52, %cst_23 [1] : vector<18x18xf32> to vector<18xf32>
    %54 = vector.shape_cast %53 : vector<18xf32> to vector<18x1xf32>
    %55 = tpu.reciprocal %54 {approx = true} : vector<18x1xf32> -> vector<18x1xf32>
    %56 = vector.broadcast %55 : vector<18x1xf32> to vector<18x18xf32>
    %57 = arith.mulf %52, %56 : vector<18x18xf32>
    %58 = arith.truncf %57 : vector<18x18xf32> to vector<18x18xbf16>
    %59 = vector.broadcast %43 : vector<1x128xbf16> to vector<18x128xbf16>
    %60 = arith.mulf %39, %59 : vector<18x128xbf16>
    %cst_24 = arith.constant dense<0.000000e+00> : vector<18x128xf32>
    %61 = tpu.matmul %58, %60, %cst_24 {dimension_numbers = #tpu.dot_dimension_numbers<[1], [0], [0], [1], [0, 0, 1, 1], [], []>} : vector<18x18xbf16>, vector<18x128xbf16>, vector<18x128xf32> -> vector<18x128xf32>
    %62 = arith.addf %42, %61 : vector<18x128xf32>
    %63 = vector.extract_strided_slice %40 {offsets = [1, 0], sizes = [1, 128], strides = [1, 1]} : vector<4x128xbf16> to vector<1x128xbf16>
    %64 = vector.broadcast %63 : vector<1x128xbf16> to vector<18x128xbf16>
    %65 = arith.mulf %37, %64 : vector<18x128xbf16>
    "tpu.trace_start"() <{level = 10 : i32, message = "nd,md->nm"}> : () -> ()
    %cst_25 = arith.constant dense<0.000000e+00> : vector<18x18xf32>
    %66 = tpu.matmul %35, %65, %cst_25 {dimension_numbers = #tpu.dot_dimension_numbers<[1], [1], [0], [0], [0, 0, 1, 0], [], []>} : vector<18x128xbf16>, vector<18x128xbf16>, vector<18x18xf32> -> vector<18x18xf32>
    "tpu.trace_stop"() : () -> ()
    %67 = arith.addf %66, %41 : vector<18x18xf32>
    %cst_26 = arith.constant dense<0xFF800000> : vector<18xf32>
    %68 = vector.multi_reduction <maximumf>, %67, %cst_26 [1] : vector<18x18xf32> to vector<18xf32>
    %69 = vector.shape_cast %68 : vector<18xf32> to vector<18x1xf32>
    %70 = vector.broadcast %69 : vector<18x1xf32> to vector<18x18xf32>
    %71 = arith.subf %67, %70 : vector<18x18xf32>
    %72 = math.exp %71 : vector<18x18xf32>
    %cst_27 = arith.constant dense<0.000000e+00> : vector<18xf32>
    %73 = vector.multi_reduction <add>, %72, %cst_27 [1] : vector<18x18xf32> to vector<18xf32>
    %74 = vector.shape_cast %73 : vector<18xf32> to vector<18x1xf32>
    %75 = tpu.reciprocal %74 {approx = true} : vector<18x1xf32> -> vector<18x1xf32>
    %76 = vector.broadcast %75 : vector<18x1xf32> to vector<18x18xf32>
    %77 = arith.mulf %72, %76 : vector<18x18xf32>
    %78 = arith.truncf %77 : vector<18x18xf32> to vector<18x18xbf16>
    %79 = vector.broadcast %63 : vector<1x128xbf16> to vector<18x128xbf16>
    %80 = arith.mulf %39, %79 : vector<18x128xbf16>
    %cst_28 = arith.constant dense<0.000000e+00> : vector<18x128xf32>
    %81 = tpu.matmul %78, %80, %cst_28 {dimension_numbers = #tpu.dot_dimension_numbers<[1], [0], [0], [1], [0, 0, 1, 1], [], []>} : vector<18x18xbf16>, vector<18x128xbf16>, vector<18x128xf32> -> vector<18x128xf32>
    %82 = arith.addf %62, %81 : vector<18x128xf32>
    %83 = vector.extract_strided_slice %40 {offsets = [2, 0], sizes = [1, 128], strides = [1, 1]} : vector<4x128xbf16> to vector<1x128xbf16>
    %84 = vector.broadcast %83 : vector<1x128xbf16> to vector<18x128xbf16>
    %85 = arith.mulf %37, %84 : vector<18x128xbf16>
    "tpu.trace_start"() <{level = 10 : i32, message = "nd,md->nm"}> : () -> ()
    %cst_29 = arith.constant dense<0.000000e+00> : vector<18x18xf32>
    %86 = tpu.matmul %35, %85, %cst_29 {dimension_numbers = #tpu.dot_dimension_numbers<[1], [1], [0], [0], [0, 0, 1, 0], [], []>} : vector<18x128xbf16>, vector<18x128xbf16>, vector<18x18xf32> -> vector<18x18xf32>
    "tpu.trace_stop"() : () -> ()
    %87 = arith.addf %86, %41 : vector<18x18xf32>
    %cst_30 = arith.constant dense<0xFF800000> : vector<18xf32>
    %88 = vector.multi_reduction <maximumf>, %87, %cst_30 [1] : vector<18x18xf32> to vector<18xf32>
    %89 = vector.shape_cast %88 : vector<18xf32> to vector<18x1xf32>
    %90 = vector.broadcast %89 : vector<18x1xf32> to vector<18x18xf32>
    %91 = arith.subf %87, %90 : vector<18x18xf32>
    %92 = math.exp %91 : vector<18x18xf32>
    %cst_31 = arith.constant dense<0.000000e+00> : vector<18xf32>
    %93 = vector.multi_reduction <add>, %92, %cst_31 [1] : vector<18x18xf32> to vector<18xf32>
    %94 = vector.shape_cast %93 : vector<18xf32> to vector<18x1xf32>
    %95 = tpu.reciprocal %94 {approx = true} : vector<18x1xf32> -> vector<18x1xf32>
    %96 = vector.broadcast %95 : vector<18x1xf32> to vector<18x18xf32>
    %97 = arith.mulf %92, %96 : vector<18x18xf32>
    %98 = arith.truncf %97 : vector<18x18xf32> to vector<18x18xbf16>
    %99 = vector.broadcast %83 : vector<1x128xbf16> to vector<18x128xbf16>
    %100 = arith.mulf %39, %99 : vector<18x128xbf16>
    %cst_32 = arith.constant dense<0.000000e+00> : vector<18x128xf32>
    %101 = tpu.matmul %98, %100, %cst_32 {dimension_numbers = #tpu.dot_dimension_numbers<[1], [0], [0], [1], [0, 0, 1, 1], [], []>} : vector<18x18xbf16>, vector<18x128xbf16>, vector<18x128xf32> -> vector<18x128xf32>
    %102 = arith.addf %82, %101 : vector<18x128xf32>
    %103 = vector.extract_strided_slice %40 {offsets = [3, 0], sizes = [1, 128], strides = [1, 1]} : vector<4x128xbf16> to vector<1x128xbf16>
    %104 = vector.broadcast %103 : vector<1x128xbf16> to vector<18x128xbf16>
    %105 = arith.mulf %37, %104 : vector<18x128xbf16>
    "tpu.trace_start"() <{level = 10 : i32, message = "nd,md->nm"}> : () -> ()
    %cst_33 = arith.constant dense<0.000000e+00> : vector<18x18xf32>
    %106 = tpu.matmul %35, %105, %cst_33 {dimension_numbers = #tpu.dot_dimension_numbers<[1], [1], [0], [0], [0, 0, 1, 0], [], []>} : vector<18x128xbf16>, vector<18x128xbf16>, vector<18x18xf32> -> vector<18x18xf32>
    "tpu.trace_stop"() : () -> ()
    %107 = arith.addf %106, %41 : vector<18x18xf32>
    %cst_34 = arith.constant dense<0xFF800000> : vector<18xf32>
    %108 = vector.multi_reduction <maximumf>, %107, %cst_34 [1] : vector<18x18xf32> to vector<18xf32>
    %109 = vector.shape_cast %108 : vector<18xf32> to vector<18x1xf32>
    %110 = vector.broadcast %109 : vector<18x1xf32> to vector<18x18xf32>
    %111 = arith.subf %107, %110 : vector<18x18xf32>
    %112 = math.exp %111 : vector<18x18xf32>
    %cst_35 = arith.constant dense<0.000000e+00> : vector<18xf32>
    %113 = vector.multi_reduction <add>, %112, %cst_35 [1] : vector<18x18xf32> to vector<18xf32>
    %114 = vector.shape_cast %113 : vector<18xf32> to vector<18x1xf32>
    %115 = tpu.reciprocal %114 {approx = true} : vector<18x1xf32> -> vector<18x1xf32>
    %116 = vector.broadcast %115 : vector<18x1xf32> to vector<18x18xf32>
    %117 = arith.mulf %112, %116 : vector<18x18xf32>
    %118 = arith.truncf %117 : vector<18x18xf32> to vector<18x18xbf16>
    %119 = vector.broadcast %103 : vector<1x128xbf16> to vector<18x128xbf16>
    %120 = arith.mulf %39, %119 : vector<18x128xbf16>
    %cst_36 = arith.constant dense<0.000000e+00> : vector<18x128xf32>
    %121 = tpu.matmul %118, %120, %cst_36 {dimension_numbers = #tpu.dot_dimension_numbers<[1], [0], [0], [1], [0, 0, 1, 1], [], []>} : vector<18x18xbf16>, vector<18x128xbf16>, vector<18x128xf32> -> vector<18x128xf32>
    %122 = arith.addf %102, %121 : vector<18x128xf32>
    %123 = arith.truncf %122 : vector<18x128xf32> to vector<18x128xbf16>
    %c0_37 = arith.constant 0 : index
    %c0_38 = arith.constant 0 : index
    %c0_39 = arith.constant 0 : index
    %124 = vector.load %arg13[%c0_37, %c0_38, %c0_39] : memref<1x128x128xbf16, #tpu.memory_space<vmem>>, vector<1x128x128xbf16>
    %125 = vector.shape_cast %124 : vector<1x128x128xbf16> to vector<128x128xbf16>
    %cst_40 = arith.constant dense<0.000000e+00> : vector<18x128xf32>
    %126 = tpu.matmul %123, %125, %cst_40 {dimension_numbers = #tpu.dot_dimension_numbers<[1], [0], [0], [1], [0, 0, 1, 1], [], []>} : vector<18x128xbf16>, vector<128x128xbf16>, vector<18x128xf32> -> vector<18x128xf32>
    %127 = arith.addf %3, %126 : vector<18x128xf32>
    %c0_41 = arith.constant 0 : index
    %c0_42 = arith.constant 0 : index
    %c0_43 = arith.constant 0 : index
    %128 = vector.load %arg14[%c0_41, %c0_42, %c0_43] : memref<1x1x128xf32, #tpu.memory_space<vmem>>, vector<1x1x128xf32>
    %129 = vector.shape_cast %128 : vector<1x1x128xf32> to vector<1x128xf32>
    %130 = vector.broadcast %129 : vector<1x128xf32> to vector<18x128xf32>
    %131 = arith.addf %127, %130 : vector<18x128xf32>
    %c0_44 = arith.constant 0 : index
    %c0_45 = arith.constant 0 : index
    %c0_46 = arith.constant 0 : index
    %132 = vector.load %arg15[%c0_44, %c0_45, %c0_46] : memref<1x1x128xf32, #tpu.memory_space<vmem>>, vector<1x1x128xf32>
    %133 = vector.shape_cast %132 : vector<1x1x128xf32> to vector<1x128xf32>
    %c0_47 = arith.constant 0 : index
    %c0_48 = arith.constant 0 : index
    %c0_49 = arith.constant 0 : index
    %134 = vector.load %arg16[%c0_47, %c0_48, %c0_49] : memref<1x1x128xf32, #tpu.memory_space<vmem>>, vector<1x1x128xf32>
    %135 = vector.shape_cast %134 : vector<1x1x128xf32> to vector<1x128xf32>
    %cst_50 = arith.constant dense<0.000000e+00> : vector<18xf32>
    %136 = vector.multi_reduction <add>, %131, %cst_50 [1] : vector<18x128xf32> to vector<18xf32>
    %137 = vector.shape_cast %136 : vector<18xf32> to vector<18x1xf32>
    %cst_51 = arith.constant 1.280000e+02 : f32
    %138 = vector.broadcast %cst_51 : f32 to vector<18x1xf32>
    %139 = arith.divf %137, %138 : vector<18x1xf32>
    %140 = vector.broadcast %139 : vector<18x1xf32> to vector<18x128xf32>
    %141 = arith.subf %131, %140 : vector<18x128xf32>
    %142 = arith.mulf %141, %141 : vector<18x128xf32>
    %cst_52 = arith.constant dense<0.000000e+00> : vector<18xf32>
    %143 = vector.multi_reduction <add>, %142, %cst_52 [1] : vector<18x128xf32> to vector<18xf32>
    %144 = vector.shape_cast %143 : vector<18xf32> to vector<18x1xf32>
    %cst_53 = arith.constant 1.280000e+02 : f32
    %145 = vector.broadcast %cst_53 : f32 to vector<18x1xf32>
    %146 = arith.divf %144, %145 : vector<18x1xf32>
    %147 = vector.broadcast %139 : vector<18x1xf32> to vector<18x128xf32>
    %148 = arith.subf %131, %147 : vector<18x128xf32>
    %cst_54 = arith.constant 9.99999974E-6 : f32
    %149 = vector.broadcast %cst_54 : f32 to vector<18x1xf32>
    %150 = arith.addf %146, %149 : vector<18x1xf32>
    %151 = math.rsqrt %150 : vector<18x1xf32>
    %152 = vector.broadcast %151 : vector<18x1xf32> to vector<18x128xf32>
    %153 = arith.mulf %148, %152 : vector<18x128xf32>
    %154 = vector.broadcast %133 : vector<1x128xf32> to vector<18x128xf32>
    %155 = arith.mulf %153, %154 : vector<18x128xf32>
    %156 = vector.broadcast %135 : vector<1x128xf32> to vector<18x128xf32>
    %157 = arith.addf %155, %156 : vector<18x128xf32>
    %158 = arith.truncf %157 : vector<18x128xf32> to vector<18x128xbf16>
    %c0_55 = arith.constant 0 : index
    %c0_56 = arith.constant 0 : index
    %c0_57 = arith.constant 0 : index
    %159 = vector.load %arg17[%c0_55, %c0_56, %c0_57] : memref<1x128x32xbf16, #tpu.memory_space<vmem>>, vector<1x128x32xbf16>
    %160 = vector.shape_cast %159 : vector<1x128x32xbf16> to vector<128x32xbf16>
    %cst_58 = arith.constant dense<0.000000e+00> : vector<18x32xf32>
    %161 = tpu.matmul %158, %160, %cst_58 {dimension_numbers = #tpu.dot_dimension_numbers<[1], [0], [0], [1], [0, 0, 1, 1], [], []>} : vector<18x128xbf16>, vector<128x32xbf16>, vector<18x32xf32> -> vector<18x32xf32>
    %c0_59 = arith.constant 0 : index
    %c0_60 = arith.constant 0 : index
    %c0_61 = arith.constant 0 : index
    %162 = vector.load %arg18[%c0_59, %c0_60, %c0_61] : memref<1x1x32xf32, #tpu.memory_space<vmem>>, vector<1x1x32xf32>
    %163 = vector.shape_cast %162 : vector<1x1x32xf32> to vector<1x32xf32>
    %164 = vector.broadcast %163 : vector<1x32xf32> to vector<18x32xf32>
    %165 = arith.addf %161, %164 : vector<18x32xf32>
    %cst_62 = arith.constant 5.000000e-01 : f32
    %166 = vector.broadcast %cst_62 : f32 to vector<18x32xf32>
    %167 = arith.mulf %166, %165 : vector<18x32xf32>
    %cst_63 = arith.constant 0.707106769 : f32
    %168 = vector.broadcast %cst_63 : f32 to vector<18x32xf32>
    %169 = arith.mulf %165, %168 : vector<18x32xf32>
    %170 = math.erf %169 : vector<18x32xf32>
    %cst_64 = arith.constant 1.000000e+00 : f32
    %171 = vector.broadcast %cst_64 : f32 to vector<18x32xf32>
    %172 = arith.addf %171, %170 : vector<18x32xf32>
    %173 = arith.mulf %167, %172 : vector<18x32xf32>
    %174 = arith.truncf %173 : vector<18x32xf32> to vector<18x32xbf16>
    %c0_65 = arith.constant 0 : index
    %c0_66 = arith.constant 0 : index
    %c0_67 = arith.constant 0 : index
    %175 = vector.load %arg19[%c0_65, %c0_66, %c0_67] : memref<1x32x128xbf16, #tpu.memory_space<vmem>>, vector<1x32x128xbf16>
    %176 = vector.shape_cast %175 : vector<1x32x128xbf16> to vector<32x128xbf16>
    %cst_68 = arith.constant dense<0.000000e+00> : vector<18x128xf32>
    %177 = tpu.matmul %174, %176, %cst_68 {dimension_numbers = #tpu.dot_dimension_numbers<[1], [0], [0], [1], [0, 0, 1, 1], [], []>} : vector<18x32xbf16>, vector<32x128xbf16>, vector<18x128xf32> -> vector<18x128xf32>
    %c0_69 = arith.constant 0 : index
    %c0_70 = arith.constant 0 : index
    %c0_71 = arith.constant 0 : index
    %178 = vector.load %arg20[%c0_69, %c0_70, %c0_71] : memref<1x1x128xf32, #tpu.memory_space<vmem>>, vector<1x1x128xf32>
    %179 = vector.shape_cast %178 : vector<1x1x128xf32> to vector<1x128xf32>
    %180 = vector.broadcast %179 : vector<1x128xf32> to vector<18x128xf32>
    %181 = arith.addf %177, %180 : vector<18x128xf32>
    %182 = arith.addf %131, %181 : vector<18x128xf32>
    %c0_72 = arith.constant 0 : index
    %c0_73 = arith.constant 0 : index
    %183 = vector.load %arg26[%c0_72, %c0_73] : memref<18x128xf32, #tpu.memory_space<vmem>>, vector<18x128xf32>
    tpu.vector_store %arg26[%c0_72, %c0_73], %182 {strides = array<i32>} : memref<18x128xf32, #tpu.memory_space<vmem>>, vector<18x128xf32>,
    %c1_i32 = arith.constant 1 : i32
    %184 = arith.cmpi eq, %arg0, %c1_i32 : i32
    %185 = arith.extui %184 : i1 to i32
    %c0_i32_74 = arith.constant 0 : i32
    %186 = arith.cmpi ne, %185, %c0_i32_74 : i32
    scf.if %186 {
      %187 = vector.extract_strided_slice %182 {offsets = [0, 0], sizes = [1, 128], strides = [1, 1]} : vector<18x128xf32> to vector<1x128xf32>
      %188 = vector.extract_strided_slice %182 {offsets = [9, 0], sizes = [1, 128], strides = [1, 1]} : vector<18x128xf32> to vector<1x128xf32>
      %189 = tpu.concatenate %187, %188 in 0 : vector<1x128xf32>, vector<1x128xf32> -> vector<2x128xf32>
      %c0_75 = arith.constant 0 : index
      %c0_76 = arith.constant 0 : index
      %190 = vector.load %arg21[%c0_75, %c0_76] : memref<1x128xf32, #tpu.memory_space<vmem>>, vector<1x128xf32>
      %c0_77 = arith.constant 0 : index
      %c0_78 = arith.constant 0 : index
      %191 = vector.load %arg22[%c0_77, %c0_78] : memref<1x128xf32, #tpu.memory_space<vmem>>, vector<1x128xf32>
      %cst_79 = arith.constant dense<0.000000e+00> : vector<2xf32>
      %192 = vector.multi_reduction <add>, %189, %cst_79 [1] : vector<2x128xf32> to vector<2xf32>
      %193 = vector.shape_cast %192 : vector<2xf32> to vector<2x1xf32>
      %cst_80 = arith.constant 1.280000e+02 : f32
      %194 = vector.broadcast %cst_80 : f32 to vector<2x1xf32>
      %195 = arith.divf %193, %194 : vector<2x1xf32>
      %196 = vector.broadcast %195 : vector<2x1xf32> to vector<2x128xf32>
      %197 = arith.subf %189, %196 : vector<2x128xf32>
      %198 = arith.mulf %197, %197 : vector<2x128xf32>
      %cst_81 = arith.constant dense<0.000000e+00> : vector<2xf32>
      %199 = vector.multi_reduction <add>, %198, %cst_81 [1] : vector<2x128xf32> to vector<2xf32>
      %200 = vector.shape_cast %199 : vector<2xf32> to vector<2x1xf32>
      %cst_82 = arith.constant 1.280000e+02 : f32
      %201 = vector.broadcast %cst_82 : f32 to vector<2x1xf32>
      %202 = arith.divf %200, %201 : vector<2x1xf32>
      %203 = vector.broadcast %195 : vector<2x1xf32> to vector<2x128xf32>
      %204 = arith.subf %189, %203 : vector<2x128xf32>
      %cst_83 = arith.constant 9.99999974E-6 : f32
      %205 = vector.broadcast %cst_83 : f32 to vector<2x1xf32>
      %206 = arith.addf %202, %205 : vector<2x1xf32>
      %207 = math.rsqrt %206 : vector<2x1xf32>
      %208 = vector.broadcast %207 : vector<2x1xf32> to vector<2x128xf32>
      %209 = arith.mulf %204, %208 : vector<2x128xf32>
      %210 = vector.broadcast %190 : vector<1x128xf32> to vector<2x128xf32>
      %211 = arith.mulf %209, %210 : vector<2x128xf32>
      %212 = vector.broadcast %191 : vector<1x128xf32> to vector<2x128xf32>
      %213 = arith.addf %211, %212 : vector<2x128xf32>
      %c0_84 = arith.constant 0 : index
      %c0_85 = arith.constant 0 : index
      %214 = vector.load %arg23[%c0_84, %c0_85] : memref<128x4xf32, #tpu.memory_space<vmem>>, vector<128x4xf32>
      %cst_86 = arith.constant dense<0.000000e+00> : vector<2x4xf32>
      %215 = tpu.matmul %213, %214, %cst_86 {dimension_numbers = #tpu.dot_dimension_numbers<[1], [0], [0], [1], [0, 0, 1, 1], [], []>} : vector<2x128xf32>, vector<128x4xf32>, vector<2x4xf32> -> vector<2x4xf32>
      %c0_87 = arith.constant 0 : index
      %c0_88 = arith.constant 0 : index
      %216 = vector.load %arg24[%c0_87, %c0_88] : memref<1x4xf32, #tpu.memory_space<vmem>>, vector<1x4xf32>
      %217 = vector.broadcast %216 : vector<1x4xf32> to vector<2x4xf32>
      %218 = arith.addf %215, %217 : vector<2x4xf32>
      %c0_89 = arith.constant 0 : index
      %c0_90 = arith.constant 0 : index
      %219 = vector.load %arg25[%c0_89, %c0_90] : memref<2x4xf32, #tpu.memory_space<vmem>>, vector<2x4xf32>
      tpu.vector_store %arg25[%c0_89, %c0_90], %218 {strides = array<i32>} : memref<2x4xf32, #tpu.memory_space<vmem>>, vector<2x4xf32>,
    } else {
    }
    return
  }
  func.func @transform_0(%arg0: i32) -> (i32, i32) {
    %c0_i32 = arith.constant 0 : i32
    %c0_i32_0 = arith.constant 0 : i32
    %c0_i32_1 = arith.constant 0 : i32
    return %c0_i32, %c0_i32_0 : i32, i32
  }
  func.func @transform_1(%arg0: i32) -> (i32, i32) {
    %c0_i32 = arith.constant 0 : i32
    %c0_i32_0 = arith.constant 0 : i32
    %c0_i32_1 = arith.constant 0 : i32
    return %c0_i32, %c0_i32_0 : i32, i32
  }
  func.func @transform_2(%arg0: i32) -> (i32, i32) {
    %c0_i32 = arith.constant 0 : i32
    %c0_i32_0 = arith.constant 0 : i32
    %c0_i32_1 = arith.constant 0 : i32
    return %c0_i32, %c0_i32_0 : i32, i32
  }
  func.func @transform_3(%arg0: i32) -> (i32, i32) {
    %c0_i32 = arith.constant 0 : i32
    %c0_i32_0 = arith.constant 0 : i32
    %c0_i32_1 = arith.constant 0 : i32
    return %c0_i32, %c0_i32_0 : i32, i32
  }
  func.func @transform_4(%arg0: i32) -> (i32, i32) {
    %c0_i32 = arith.constant 0 : i32
    %c0_i32_0 = arith.constant 0 : i32
    %c0_i32_1 = arith.constant 0 : i32
    return %c0_i32, %c0_i32_0 : i32, i32
  }
  func.func @transform_5(%arg0: i32) -> (i32, i32) {
    %c0_i32 = arith.constant 0 : i32
    %c0_i32_0 = arith.constant 0 : i32
    %c0_i32_1 = arith.constant 0 : i32
    return %c0_i32, %c0_i32_0 : i32, i32
  }
  func.func @transform_6(%arg0: i32) -> (i32, i32) {
    %c0_i32 = arith.constant 0 : i32
    %c0_i32_0 = arith.constant 0 : i32
    %c0_i32_1 = arith.constant 0 : i32
    return %c0_i32, %c0_i32_0 : i32, i32
  }
  func.func @transform_7(%arg0: i32) -> (i32, i32) {
    %c0_i32 = arith.constant 0 : i32
    %c0_i32_0 = arith.constant 0 : i32
    %c0_i32_1 = arith.constant 0 : i32
    return %c0_i32, %c0_i32_0 : i32, i32
  }
  func.func @transform_8(%arg0: i32) -> (i32, i32) {
    %c0_i32 = arith.constant 0 : i32
    %c0_i32_0 = arith.constant 0 : i32
    %c0_i32_1 = arith.constant 0 : i32
    return %c0_i32, %c0_i32_0 : i32, i32
  }
  func.func @transform_9(%arg0: i32) -> (i32, i32, i32) {
    %c0_i32 = arith.constant 0 : i32
    %c0_i32_0 = arith.constant 0 : i32
    %c0_i32_1 = arith.constant 0 : i32
    return %arg0, %c0_i32, %c0_i32_0 : i32, i32, i32
  }
  func.func @transform_10(%arg0: i32) -> (i32, i32, i32) {
    %c0_i32 = arith.constant 0 : i32
    %c0_i32_0 = arith.constant 0 : i32
    %c0_i32_1 = arith.constant 0 : i32
    return %arg0, %c0_i32, %c0_i32_0 : i32, i32, i32
  }
  func.func @transform_11(%arg0: i32) -> (i32, i32, i32) {
    %c0_i32 = arith.constant 0 : i32
    %c0_i32_0 = arith.constant 0 : i32
    %c0_i32_1 = arith.constant 0 : i32
    return %arg0, %c0_i32, %c0_i32_0 : i32, i32, i32
  }
  func.func @transform_12(%arg0: i32) -> (i32, i32, i32) {
    %c0_i32 = arith.constant 0 : i32
    %c0_i32_0 = arith.constant 0 : i32
    %c0_i32_1 = arith.constant 0 : i32
    return %arg0, %c0_i32, %c0_i32_0 : i32, i32, i32
  }
  func.func @transform_13(%arg0: i32) -> (i32, i32, i32) {
    %c0_i32 = arith.constant 0 : i32
    %c0_i32_0 = arith.constant 0 : i32
    %c0_i32_1 = arith.constant 0 : i32
    return %arg0, %c0_i32, %c0_i32_0 : i32, i32, i32
  }
  func.func @transform_14(%arg0: i32) -> (i32, i32, i32) {
    %c0_i32 = arith.constant 0 : i32
    %c0_i32_0 = arith.constant 0 : i32
    %c0_i32_1 = arith.constant 0 : i32
    return %arg0, %c0_i32, %c0_i32_0 : i32, i32, i32
  }
  func.func @transform_15(%arg0: i32) -> (i32, i32, i32) {
    %c0_i32 = arith.constant 0 : i32
    %c0_i32_0 = arith.constant 0 : i32
    %c0_i32_1 = arith.constant 0 : i32
    return %arg0, %c0_i32, %c0_i32_0 : i32, i32, i32
  }
  func.func @transform_16(%arg0: i32) -> (i32, i32, i32) {
    %c0_i32 = arith.constant 0 : i32
    %c0_i32_0 = arith.constant 0 : i32
    %c0_i32_1 = arith.constant 0 : i32
    return %arg0, %c0_i32, %c0_i32_0 : i32, i32, i32
  }
  func.func @transform_17(%arg0: i32) -> (i32, i32, i32) {
    %c0_i32 = arith.constant 0 : i32
    %c0_i32_0 = arith.constant 0 : i32
    %c0_i32_1 = arith.constant 0 : i32
    return %arg0, %c0_i32, %c0_i32_0 : i32, i32, i32
  }
  func.func @transform_18(%arg0: i32) -> (i32, i32, i32) {
    %c0_i32 = arith.constant 0 : i32
    %c0_i32_0 = arith.constant 0 : i32
    %c0_i32_1 = arith.constant 0 : i32
    return %arg0, %c0_i32, %c0_i32_0 : i32, i32, i32
  }
  func.func @transform_19(%arg0: i32) -> (i32, i32, i32) {
    %c0_i32 = arith.constant 0 : i32
    %c0_i32_0 = arith.constant 0 : i32
    %c0_i32_1 = arith.constant 0 : i32
    return %arg0, %c0_i32, %c0_i32_0 : i32, i32, i32
  }
  func.func @transform_20(%arg0: i32) -> (i32, i32) {
    %c0_i32 = arith.constant 0 : i32
    %c0_i32_0 = arith.constant 0 : i32
    %c0_i32_1 = arith.constant 0 : i32
    return %c0_i32, %c0_i32_0 : i32, i32
  }
  func.func @transform_21(%arg0: i32) -> (i32, i32) {
    %c0_i32 = arith.constant 0 : i32
    %c0_i32_0 = arith.constant 0 : i32
    %c0_i32_1 = arith.constant 0 : i32
    return %c0_i32, %c0_i32_0 : i32, i32
  }
  func.func @transform_22(%arg0: i32) -> (i32, i32) {
    %c0_i32 = arith.constant 0 : i32
    %c0_i32_0 = arith.constant 0 : i32
    %c0_i32_1 = arith.constant 0 : i32
    return %c0_i32, %c0_i32_0 : i32, i32
  }
  func.func @transform_23(%arg0: i32) -> (i32, i32) {
    %c0_i32 = arith.constant 0 : i32
    %c0_i32_0 = arith.constant 0 : i32
    %c0_i32_1 = arith.constant 0 : i32
    return %c0_i32, %c0_i32_0 : i32, i32
  }
  func.func @transform_24(%arg0: i32) -> (i32, i32) {
    %c0_i32 = arith.constant 0 : i32
    %c0_i32_0 = arith.constant 0 : i32
    %c0_i32_1 = arith.constant 0 : i32
    return %c0_i32, %c0_i32_0 : i32, i32
  }
}

</mosaic_0001>

<bundles_post_ra>
// kernel: _lambda_.1
= control target key start
LH: loop header
LB: loop body
LE: loop exit
PB: predicated region body
PF: predicated region fallthrough
CT: control target
= control target key end

     0   :  { %s8151_s0 = inlined_call_operand.vmem [shape: bf16[360,550], index: 0, kind: input, shape index: {}]   ;;  %s8152_s1 = inlined_call_operand.vmem [shape: bf16[550,128], index: 1, kind: input, shape index: {}]   ;;  %s8153_s2 = inlined_call_operand.vmem [shape: f32[1,128], index: 2, kind: input, shape index: {}]   ;;  %s8154_s3 = inlined_call_operand.vmem [shape: f32[1,128], index: 3, kind: input, shape index: {}]   ;;  %s8155_s4 = inlined_call_operand.vmem [shape: bf16[16,360], index: 4, kind: input, shape index: {}]   ;;  %s8156_s5 = inlined_call_operand.vmem [shape: f32[1,128], index: 5, kind: input, shape index: {}]   ;;  %s8157_s6 = inlined_call_operand.vmem [shape: f32[8,128], index: 6, kind: input, shape index: {}]   ;;  %s8158_s7 = inlined_call_operand.vmem [shape: bf16[4,128], index: 7, kind: input, shape index: {}]   ;;  %s8159_s8 = inlined_call_operand.vmem [shape: f32[18,18], index: 8, kind: input, shape index: {}]   ;;  %s8160_s9 = inlined_call_operand.vmem [shape: f32[2,1,128], index: 9, kind: input, shape index: {}]   ;;  %s8161_s10 = inlined_call_operand.vmem [shape: f32[2,1,128], index: 10, kind: input, shape index: {}]   ;;  %s8162_s11 = inlined_call_operand.vmem [shape: bf16[2,128,384], index: 11, kind: input, shape index: {}]   ;;  %s8163_s12 = inlined_call_operand.vmem [shape: bf16[2,128,128], index: 12, kind: input, shape index: {}]   ;;  %s8164_s13 = inlined_call_operand.vmem [shape: f32[2,1,128], index: 13, kind: input, shape index: {}]   ;;  %s8165_s14 = inlined_call_operand.vmem [shape: f32[2,1,128], index: 14, kind: input, shape index: {}]   ;;  %s8166_s15 = inlined_call_operand.vmem [shape: f32[2,1,128], index: 15, kind: input, shape index: {}]   ;;  %s8167_s16 = inlined_call_operand.vmem [shape: bf16[2,128,32], index: 16, kind: input, shape index: {}]   ;;  %s8168_s17 = inlined_call_operand.vmem [shape: f32[2,1,32], index: 17, kind: input, shape index: {}]   ;;  %s8169_s18 = inlined_call_operand.vmem [shape: bf16[2,32,128], index: 18, kind: input, shape index: {}]   ;;  %s8170_s19 = inlined_call_operand.vmem [shape: f32[2,1,128], index: 19, kind: input, shape index: {}]   ;;  %s8171_s20 = inlined_call_operand.vmem [shape: f32[1,128], index: 20, kind: input, shape index: {}]   ;;  %s8172_s21 = inlined_call_operand.vmem [shape: f32[1,128], index: 21, kind: input, shape index: {}]   ;;  %s8173_s22 = inlined_call_operand.vmem [shape: f32[128,4], index: 22, kind: input, shape index: {}]   ;;  %s8174_s23 = inlined_call_operand.vmem [shape: f32[1,4], index: 23, kind: input, shape index: {}]   ;;  %s8175_s24 = inlined_call_operand.hbm [shape: f32[2,4], index: 24, kind: output, shape index: {}]  }
   0x1   :  { %8203 = sst [smem:[#allocation29_spill]] %s8151_s0 }
   0x2   :  { %8204 = sst [smem:[#allocation30_spill]] %s8152_s1 }
   0x3   :  { %8205 = sst [smem:[#allocation31_spill]] %s8153_s2 }
   0x4   :  { %8206 = sst [smem:[#allocation32_spill]] %s8154_s3 }
   0x5   :  { %8207 = sst [smem:[#allocation33_spill]] %s8155_s4 }
   0x6   :  { %8208 = sst [smem:[#allocation34_spill]] %s8156_s5 }
   0x7   :  { %8209 = sst [smem:[#allocation35_spill]] %s8157_s6 }
   0x8   :  { %8210 = sst [smem:[#allocation36_spill]] %s8158_s7 }
   0x9   :  { %8211 = sst [smem:[#allocation37_spill]] %s8159_s8 }
   0xa   :  { %8212 = sst [smem:[#allocation38_spill]] %s8162_s11 }
   0xb   :  { %8213 = sst [smem:[#allocation39_spill]] %s8163_s12 }
   0xc   :  { %8214 = sst [smem:[#allocation40_spill]] %s8171_s20 }
   0xd   :  { %8215 = sst [smem:[#allocation41_spill]] %s8172_s21 }
   0xe   :  { %8216 = sst [smem:[#allocation42_spill]] %s8174_s23 }
   0xf   :  { %8217 = sst [smem:[#allocation43_spill]] %s8175_s24 }
  0x10   :  { %29 = vsyncpa [#allocation4], 0  ;;  %s6276_s5 = smov 0  }
  0x11 LB: > { %8218 = sst [smem:[#allocation6_spill]] %s6142_s5  ;;  %s6282_s26 = sadd.s32 4294967295, %s6142_s5   ;;  %s6142_s5 = sphi %s6276_s5, %s35_s5  }
  0x12   : > { %p4869_p0 = scmp.ge.s32.totalorder %s6142_s5, 1  ;;  %p744_p1 = scmp.lt.s32.totalorder %s6142_s5, 3 }
  0x14   : > { %p745_p2 = pnand %p4869_p0, %p744_p1 }
  0x15   : > { %p841_p3 = scmp.lt.s32.totalorder (!%p745_p2), %s6282_s26, 1  ;;  %s8219_s12 = sld [smem:[#allocation39_spill]] (!%p745_p2) }
  0x16   : > { %748 = sbr.rel (%p745_p2) target bundleno = 4657 (0x1231), region = 116  ;;  %s8220_s11 = sld [smem:[#allocation38_spill]] (!%p745_p2) }
  0x17   : > { %p4877_p4 = scmp.ne.s32.totalorder (!%p745_p2), %s6282_s26, 0 }
  0x1b   : > { %s6288_s27 = scalar_select %p841_p3, %s6282_s26, 1 }
  0x1d   : > { %s5585_s30 = smul.u32 192, %s6288_s27  ;;  %s5124_s3 = sshll.u32 %s6288_s27, 6 }
  0x1e   : > { %s6303_s4 = scalar_lea.vmem %s8219_s12, %s5124_s3  ;;  %s862_s29 = scalar_lea.vmem %s8165_s14, %s6288_s27 }
  0x1f   : > { %s6312_s23 = scalar_lea.vmem %s8220_s11, %s5585_s30  ;;  %s865_s20 = scalar_lea.vmem %s8166_s15, %s6288_s27 }
  0x20   : > { %s6325_s12 = scalar_lea.vmem %s8167_s16, %s5124_s3  ;;  %s873_s6 = scalar_lea.vmem %s8168_s17, %s6288_s27 }
  0x21   : > { %s5126_s24 = sshll.u32 %s6288_s27, 4  ;;  %886 = sbr.rel (%p4877_p4) target bundleno = 866 (0x362), region = 120 }
  0x22   : > { %s6335_s11 = scalar_lea.vmem %s8169_s18, %s5126_s24 }
  0x26   : > { %s8221_s25 = sld [smem:[#allocation30_spill]]  ;;  %v6144_v1 = vmov 0   ;;  %v8183_v24 = vmov 0.0   ;;  %vm1935_vm0 = vcmask 1042432   ;;  %vm6146_vm1 = vmmov 0  }
  0x27   : > { %1939 = vmatprep.subr.bf16.mxu0 %v6144_v1  ;;  %5549 = vmatprep.subr.bf16.mxu1 %v6144_v1  ;;  %s8222_s8 = sld [smem:[#allocation29_spill]]  ;;  %vm1865_vm2 = vcmask 310272  }
  0x28   : > { %s8236_s3 = sld [smem:[#allocation31_spill]] }
  0x29   : > { %s8237_s7 = sld [smem:[#allocation32_spill]] }
  0x2a   : > { %s8244_s30 = sld [smem:[#allocation33_spill]] }
  0x2b   : > { %s8294_s1 = sld [smem:[#allocation35_spill]] }
  0x2c   : > { %v5607_v0 = vld [vmem:[%s8221_s25 + $0x38] sm:$0xff]   ;;  %v5608_v2 = vld [vmem:[%s8221_s25 + $0x30] sm:$0xff]   ;;  %v5609_v3 = vld [vmem:[%s8221_s25 + $0x28] sm:$0xff]   ;;  %s8295_s5 = sld [smem:[#allocation34_spill]] }
  0x2d   : > { %1940 = vmatpush1.bf16.msra.mxu0 %v5607_v0  ;;  %5565 = vmatpush1.bf16.msra.mxu1 %v5607_v0  ;;  %v5610_v4 = vld [vmem:[%s8221_s25 + $0x20] sm:$0xff]   ;;  %v5611_v5 = vld [vmem:[%s8221_s25 + $0x18] sm:$0xff]   ;;  %v5612_v7 = vld [vmem:[%s8221_s25 + $0x10] sm:$0xff]  }
  0x2e   : > { %1941 = vmatprep.subr.bf16.mxu0 %v6144_v1  ;;  %5550 = vmatprep.subr.bf16.mxu1 %v6144_v1  ;;  %v5625_v6 = vld [vmem:[%s8222_s8 + $0x4] ss:$20 sps:$4 sm:$0xff]   ;;  %v5628_v8 = vld [vmem:[%s8222_s8 + $0x234] ss:$20 sps:$4 sm:$0xff]   ;;  %v5629_v21 = vld [vmem:[%s8222_s8 + $0x2c] ss:$20 sps:$4 sm:$0xff]  }
  0x2f   : > { %1971 = vmatprep.mubr.bf16.mxu0 %v5625_v6  ;;  %2083 = vmatprep.mubr.bf16.mxu1 %v5628_v8  ;;  %v5613_v9 = vld [vmem:[%s8221_s25 + $0x8] sm:$0xff]   ;;  %v5614_v10 = vld [vmem:[%s8221_s25] sm:$0xff]   ;;  %v5615_v11 = vld [vmem:[%s8221_s25 + $0x78] sm:$0xff]  }
  0x30   : > { %v5616_v12 = vld [vmem:[%s8221_s25 + $0x70] sm:$0xff]   ;;  %v5617_v13 = vld [vmem:[%s8221_s25 + $0x68] sm:$0xff]   ;;  %v5618_v14 = vld [vmem:[%s8221_s25 + $0x60] sm:$0xff]  }
  0x31   : > { %1942 = vmatpush1.bf16.msra.mxu0 %v5608_v2  ;;  %5566 = vmatpush1.bf16.msra.mxu1 %v5608_v2  ;;  %v5619_v15 = vld [vmem:[%s8221_s25 + $0x58] sm:$0xff]   ;;  %v5620_v16 = vld [vmem:[%s8221_s25 + $0x50] sm:$0xff]   ;;  %v5621_v17 = vld [vmem:[%s8221_s25 + $0x48] sm:$0xff]  }
  0x32   : > { %1943 = vmatprep.subr.bf16.mxu0 %v6144_v1  ;;  %5551 = vmatprep.subr.bf16.mxu1 %v6144_v1  ;;  %v5622_v18 = vld [vmem:[%s8221_s25 + $0x40] sm:$0xff]   ;;  %v5631_v22 = vld [vmem:[%s8222_s8 + $0x25c] ss:$20 sps:$4 sm:$0xff]   ;;  %v5634_v28 = vld [vmem:[%s8222_s8 + $0x258] ss:$20 sps:$4 sm:$0xff]  }
  0x33   : > { %v5623_v19 = vld [vmem:[%s8222_s8] ss:$20 sps:$4 sm:$0xff]   ;;  %v5626_v20 = vld [vmem:[%s8222_s8 + $0x230] ss:$20 sps:$4 sm:$0xff]   ;;  %v5635_v23 = vld [vmem:[%s8221_s25 + $0xb8] sm:$0xff]  }
  0x34   : > { %v5716_v25 = vld [vmem:[%s8221_s25 + $0x110] ss:$0 sps:$4 sm:$0x77]   ;;  %v5633_v26 = vld [vmem:[%s8222_s8 + $0x28] ss:$20 sps:$4 sm:$0xff]   ;;  %v5644_v34 = vld [vmem:[%s8221_s25 + $0xa0] sm:$0xff]  }
  0x35   : > { %1944 = vmatpush1.bf16.msra.mxu0 %v5609_v3  ;;  %5567 = vmatpush1.bf16.msra.mxu1 %v5609_v3  ;;  %v5636_v27 = vld [vmem:[%s8221_s25 + $0xb0] sm:$0xff]   ;;  %v1937_v30 = vsel %vm1935_vm0, %v5716_v25, 0  ;;  %v5639_v31 = vld [vmem:[%s8222_s8 + $0x284] ss:$20 sps:$4 sm:$0xff]   ;;  %v5643_v32 = vld [vmem:[%s8221_s25 + $0xa8] sm:$0xff]  }
  0x36   : > { %1945 = vmatprep.subr.bf16.mxu0 %v6144_v1  ;;  %5552 = vmatprep.subr.bf16.mxu1 %v6144_v1  ;;  %v5637_v29 = vld [vmem:[%s8222_s8 + $0x54] ss:$20 sps:$4 sm:$0xff]   ;;  %v5724_v35 = vld [vmem:[%s8221_s25 + $0x100] sm:$0xff]   ;;  %v5645_v38 = vld [vmem:[%s8222_s8 + $0x7c] ss:$20 sps:$4 sm:$0xff]  }
  0x37   : > { %v5723_v33 = vld [vmem:[%s8221_s25 + $0x108] sm:$0xff]   ;;  %v5641_v36 = vld [vmem:[%s8222_s8 + $0x50] ss:$20 sps:$4 sm:$0xff]   ;;  %v5642_v37 = vld [vmem:[%s8222_s8 + $0x280] ss:$20 sps:$4 sm:$0xff]  }
  0x38   : > { %v5647_v39 = vld [vmem:[%s8222_s8 + $0x2ac] ss:$20 sps:$4 sm:$0xff]   ;;  %v5651_v40 = vld [vmem:[%s8221_s25 + $0x98] sm:$0xff]   ;;  %v5652_v43 = vld [vmem:[%s8221_s25 + $0x90] sm:$0xff]  }
  0x39   : > { %1946 = vmatpush1.bf16.msra.mxu0 %v5610_v4  ;;  %5568 = vmatpush1.bf16.msra.mxu1 %v5610_v4  ;;  %v5649_v41 = vld [vmem:[%s8222_s8 + $0x78] ss:$20 sps:$4 sm:$0xff]   ;;  %v5650_v42 = vld [vmem:[%s8222_s8 + $0x2a8] ss:$20 sps:$4 sm:$0xff]   ;;  %v5660_v47 = vld [vmem:[%s8221_s25 + $0x80] sm:$0xff]  }
  0x3a   : > { %1947 = vmatprep.subr.bf16.mxu0 %v6144_v1  ;;  %5553 = vmatprep.subr.bf16.mxu1 %v6144_v1  ;;  %v5653_v44 = vld [vmem:[%s8222_s8 + $0xa4] ss:$20 sps:$4 sm:$0xff]   ;;  %v5655_v45 = vld [vmem:[%s8222_s8 + $0x2d4] ss:$20 sps:$4 sm:$0xff]   ;;  %v5661_v50 = vld [vmem:[%s8222_s8 + $0xcc] ss:$20 sps:$4 sm:$0xff]  }
  0x3b   : > { %v5659_v46 = vld [vmem:[%s8221_s25 + $0x88] sm:$0xff]   ;;  %v5657_v48 = vld [vmem:[%s8222_s8 + $0xa0] ss:$20 sps:$4 sm:$0xff]   ;;  %v5658_v49 = vld [vmem:[%s8222_s8 + $0x2d0] ss:$20 sps:$4 sm:$0xff]  }
  0x3c   : > { %v5663_v51 = vld [vmem:[%s8222_s8 + $0x2fc] ss:$20 sps:$4 sm:$0xff]   ;;  %v5666_v55 = vld [vmem:[%s8222_s8 + $0x2f8] ss:$20 sps:$4 sm:$0xff]   ;;  %v5669_v56 = vld [vmem:[%s8222_s8 + $0xf4] ss:$20 sps:$4 sm:$0xff]  }
  0x3d   : > { %1948 = vmatpush1.bf16.msra.mxu0 %v5611_v5  ;;  %5569 = vmatpush1.bf16.msra.mxu1 %v5611_v5  ;;  %v5667_v52 = vld [vmem:[%s8221_s25 + $0xf8] sm:$0xff]   ;;  %v5668_v53 = vld [vmem:[%s8221_s25 + $0xf0] sm:$0xff]   ;;  %v5675_v58 = vld [vmem:[%s8221_s25 + $0xe8] sm:$0xff]  }
  0x3e   : > { %1949 = vmatprep.subr.bf16.mxu0 %v6144_v1  ;;  %5554 = vmatprep.subr.bf16.mxu1 %v6144_v1  ;;  %v5665_v54 = vld [vmem:[%s8222_s8 + $0xc8] ss:$20 sps:$4 sm:$0xff]   ;;  %v5671_v57 = vld [vmem:[%s8222_s8 + $0x324] ss:$20 sps:$4 sm:$0xff]   ;;  %v5674_v61 = vld [vmem:[%s8222_s8 + $0x320] ss:$20 sps:$4 sm:$0xff]  }
  0x3f   : > { %v5676_v59 = vld [vmem:[%s8221_s25 + $0xe0] sm:$0xff]   ;;  %v5677_v62 = vld [vmem:[%s8222_s8 + $0x11c] ss:$20 sps:$4 sm:$0xff]   ;;  %v5681_v4 = vld [vmem:[%s8222_s8 + $0x118] ss:$20 sps:$4 sm:$0xff]  }
  0x40   : > { %v5673_v60 = vld [vmem:[%s8222_s8 + $0xf0] ss:$20 sps:$4 sm:$0xff]   ;;  %v5679_v63 = vld [vmem:[%s8222_s8 + $0x34c] ss:$20 sps:$4 sm:$0xff]   ;;  %v5683_v0 = vld [vmem:[%s8221_s25 + $0xd8] sm:$0xff]  }
  0x41   : > { %1950 = vmatpush1.bf16.msra.mxu0 %v5612_v7  ;;  %5570 = vmatpush1.bf16.msra.mxu1 %v5612_v7  ;;  %v5684_v2 = vld [vmem:[%s8221_s25 + $0xd0] sm:$0xff]   ;;  %v5682_v5 = vld [vmem:[%s8222_s8 + $0x348] ss:$20 sps:$4 sm:$0xff]   ;;  %v5685_v6 = vld [vmem:[%s8222_s8 + $0x144] ss:$20 sps:$4 sm:$0xff]  }
  0x42   : > { %1951 = vmatprep.subr.bf16.mxu0 %v6144_v1  ;;  %5555 = vmatprep.subr.bf16.mxu1 %v6144_v1  ;;  %v1019_v3 = vld [vmem:[%s8222_s8 + $0x370] sm:$0xff]  ;;  %v5690_v8 = vld [vmem:[%s8221_s25 + $0xc8] sm:$0xff]   ;;  %v5712_v25 = vld [vmem:[%s8222_s8 + $0x84] ss:$20 sps:$4 sm:$0xff]  }
  0x43   : > { %v4989_v7 = vcombine.high %v1019_v3, %v1019_v3 }
  0x45   : > { %1952 = vmatpush1.bf16.msra.mxu0 %v5613_v9  ;;  %5571 = vmatpush1.bf16.msra.mxu1 %v5613_v9  ;;  %v5691_v9 = vld [vmem:[%s8221_s25 + $0xc0] sm:$0xff]  }
  0x46   : > { %1953 = vmatprep.subr.bf16.mxu0 %v6144_v1  ;;  %5556 = vmatprep.subr.bf16.mxu1 %v6144_v1 }
  0x49   : > { %1954 = vmatpush1.bf16.msra.mxu0 %v5614_v10  ;;  %5572 = vmatpush1.bf16.msra.mxu1 %v5614_v10  ;;  %v5688_v10 = vld [vmem:[%s8222_s8 + $0x140] ss:$20 sps:$4 sm:$0xff]  }
  0x4a   : > { %1955 = vmatprep.subr.bf16.mxu0 %v6144_v1  ;;  %5557 = vmatprep.subr.bf16.mxu1 %v6144_v1 }
  0x4d   : > { %1956 = vmatpush2.bf16.msra.mxu0 %v5615_v11  ;;  %5573 = vmatpush2.bf16.msra.mxu1 %v5615_v11  ;;  %v4988_v11 = vcombine.low %v1019_v3, %v1019_v3 }
  0x4e   : > { %1957 = vmatprep.subr.bf16.mxu0 %v6144_v1  ;;  %5558 = vmatprep.subr.bf16.mxu1 %v6144_v1 }
  0x51   : > { %1958 = vmatpush2.bf16.msra.mxu0 %v5616_v12  ;;  %5574 = vmatpush2.bf16.msra.mxu1 %v5616_v12  ;;  %v5692_v12 = vld [vmem:[%s8222_s8 + $0x16c] ss:$20 sps:$4 sm:$0xff]  }
  0x52   : > { %1959 = vmatprep.subr.bf16.mxu0 %v6144_v1  ;;  %5559 = vmatprep.subr.bf16.mxu1 %v6144_v1 }
  0x55   : > { %1960 = vmatpush2.bf16.msra.mxu0 %v5617_v13  ;;  %5575 = vmatpush2.bf16.msra.mxu1 %v5617_v13  ;;  %v5696_v13 = vld [vmem:[%s8222_s8 + $0xc] ss:$20 sps:$4 sm:$0xff]  }
  0x56   : > { %1961 = vmatprep.subr.bf16.mxu0 %v6144_v1  ;;  %5560 = vmatprep.subr.bf16.mxu1 %v6144_v1 }
  0x59   : > { %1962 = vmatpush2.bf16.msra.mxu0 %v5618_v14  ;;  %5576 = vmatpush2.bf16.msra.mxu1 %v5618_v14  ;;  %v5697_v14 = vld [vmem:[%s8222_s8 + $0x168] ss:$20 sps:$4 sm:$0xff]  }
  0x5a   : > { %1963 = vmatprep.subr.bf16.mxu0 %v6144_v1  ;;  %5561 = vmatprep.subr.bf16.mxu1 %v6144_v1 }
  0x5d   : > { %1964 = vmatpush2.bf16.msra.mxu0 %v5619_v15  ;;  %5577 = vmatpush2.bf16.msra.mxu1 %v5619_v15  ;;  %v5698_v15 = vld [vmem:[%s8222_s8 + $0x194] ss:$20 sps:$4 sm:$0xff]  }
  0x5e   : > { %1965 = vmatprep.subr.bf16.mxu0 %v6144_v1  ;;  %5562 = vmatprep.subr.bf16.mxu1 %v6144_v1 }
  0x61   : > { %1966 = vmatpush2.bf16.msra.mxu0 %v5620_v16  ;;  %5578 = vmatpush2.bf16.msra.mxu1 %v5620_v16  ;;  %v5700_v16 = vld [vmem:[%s8222_s8 + $0x34] ss:$20 sps:$4 sm:$0xff]  }
  0x62   : > { %1967 = vmatprep.subr.bf16.mxu0 %v6144_v1  ;;  %5563 = vmatprep.subr.bf16.mxu1 %v6144_v1 }
  0x65   : > { %1968 = vmatpush2.bf16.msra.mxu0 %v5621_v17  ;;  %5579 = vmatpush2.bf16.msra.mxu1 %v5621_v17  ;;  %v5702_v17 = vld [vmem:[%s8222_s8 + $0x190] ss:$20 sps:$4 sm:$0xff]  }
  0x66   : > { %1969 = vmatprep.subr.bf16.mxu0 %v6144_v1  ;;  %5564 = vmatprep.subr.bf16.mxu1 %v6144_v1 }
  0x69   : > { %1970 = vmatpush2.bf16.msra.mxu0 %v5622_v18  ;;  %5580 = vmatpush2.bf16.msra.mxu1 %v5622_v18  ;;  %v5703_v18 = vld [vmem:[%s8222_s8 + $0x30] ss:$20 sps:$4 sm:$0xff]  }
  0x6a   : > { %2155 = vmatprep.subr.bf16.mxu1 %v6144_v1  ;;  %5266 = vmatprep.subr.bf16.mxu0 %v8183_v24 }
  0x6c   : > { %1972 = vmatmul.mubr.bf16.vlgmr.msra.gmra.mxu0 %v5623_v19  ;;  %2084 = vmatmul.mubr.bf16.vlgmr.msra.gmra.mxu1 %v5626_v20  ;;  %v5704_v19 = vld [vmem:[%s8222_s8 + $0x1bc] ss:$20 sps:$4 sm:$0xff]  }
  0x6d   : > { %1979 = vmatprep.mubr.bf16.mxu0 %v5629_v21  ;;  %2091 = vmatprep.mubr.bf16.mxu1 %v5631_v22  ;;  %v5706_v20 = vld [vmem:[%s8222_s8 + $0x5c] ss:$20 sps:$4 sm:$0xff]   ;;  %v5708_v21 = vld [vmem:[%s8222_s8 + $0x1b8] ss:$20 sps:$4 sm:$0xff]  }
  0x6e   : > { %2156 = vmatpush1.bf16.msra.mxu1 %v5635_v23  ;;  %5267 = vmatpush3.bf16.msra.mxu0 %v1937_v30  ;;  %v5709_v22 = vld [vmem:[%s8222_s8 + $0x58] ss:$20 sps:$4 sm:$0xff]   ;;  %v5721_v30 = vld [vmem:[%s8222_s8 + $0x208] ss:$20 sps:$4 sm:$0xff]  }
  0x6f   : > { %2157 = vmatprep.subr.bf16.mxu1 %v6144_v1  ;;  %5268 = vmatprep.subr.bf16.mxu0 %v8183_v24  ;;  %v5710_v23 = vld [vmem:[%s8222_s8 + $0x1e4] ss:$20 sps:$4 sm:$0xff]  }
  0x72   : > { %2158 = vmatpush1.bf16.msra.mxu1 %v5636_v27  ;;  %5269 = vmatpush3.bf16.msra.mxu0 %v5723_v33  ;;  %v5715_v27 = vld [vmem:[%s8222_s8 + $0x80] ss:$20 sps:$4 sm:$0xff]   ;;  %v5727_v33 = vld [vmem:[%s8222_s8 + $0xd0] ss:$20 sps:$4 sm:$0xff]  }
  0x73   : > { %2159 = vmatprep.subr.bf16.mxu1 %v6144_v1  ;;  %5270 = vmatprep.subr.bf16.mxu0 %v8183_v24 }
  0x74   : > { %1980 = vmatmul.mubr.bf16.gmra.mxu0 %v5633_v26  ;;  %2092 = vmatmul.mubr.bf16.gmra.mxu1 %v5634_v28  ;;  %v5714_v26 = vld [vmem:[%s8222_s8 + $0x1e0] ss:$20 sps:$4 sm:$0xff]  }
  0x75   : > { %1987 = vmatprep.mubr.bf16.mxu0 %v5637_v29  ;;  %2099 = vmatprep.mubr.bf16.mxu1 %v5639_v31  ;;  %v5717_v28 = vld [vmem:[%s8222_s8 + $0x20c] ss:$20 sps:$4 sm:$0xff]   ;;  %v5722_v31 = vld [vmem:[%s8222_s8 + $0xa8] ss:$20 sps:$4 sm:$0xff]  }
  0x76   : > { %2160 = vmatpush1.bf16.msra.mxu1 %v5643_v32  ;;  %5271 = vmatpush3.bf16.msra.mxu0 %v5724_v35  ;;  %v5719_v29 = vld [vmem:[%s8222_s8 + $0xac] ss:$20 sps:$4 sm:$0xff]   ;;  %v5725_v32 = vld [vmem:[%s8222_s8 + $0xd4] ss:$20 sps:$4 sm:$0xff]   ;;  %v5729_v35 = vld [vmem:[%s8222_s8 + $0xfc] ss:$20 sps:$4 sm:$0xff]  }
  0x77   : > { %2161 = vmatprep.subr.bf16.mxu1 %v6144_v1 }
  0x7a   : > { %2162 = vmatpush1.bf16.msra.mxu1 %v5644_v34  ;;  %v5728_v34 = vld [vmem:[%s8222_s8 + $0x10] ss:$20 sps:$4 sm:$0xff]  }
  0x7b   : > { %2163 = vmatprep.subr.bf16.mxu1 %v6144_v1 }
  0x7c   : > { %1988 = vmatmul.mubr.bf16.gmra.mxu0 %v5641_v36  ;;  %2100 = vmatmul.mubr.bf16.gmra.mxu1 %v5642_v37  ;;  %v5731_v36 = vld [vmem:[%s8222_s8 + $0xf8] ss:$20 sps:$4 sm:$0xff]  }
  0x7d   : > { %1995 = vmatprep.mubr.bf16.mxu0 %v5645_v38  ;;  %2107 = vmatprep.mubr.bf16.mxu1 %v5647_v39  ;;  %v5732_v37 = vld [vmem:[%s8222_s8 + $0x38] ss:$20 sps:$4 sm:$0xff]   ;;  %v5735_v39 = vld [vmem:[%s8222_s8 + $0x120] ss:$20 sps:$4 sm:$0xff]  }
  0x7e   : > { %2164 = vmatpush1.bf16.msra.mxu1 %v5651_v40  ;;  %v5733_v38 = vld [vmem:[%s8222_s8 + $0x124] ss:$20 sps:$4 sm:$0xff]   ;;  %v5736_v40 = vld [vmem:[%s8222_s8 + $0x60] ss:$20 sps:$4 sm:$0xff]  }
  0x7f   : > { %2165 = vmatprep.subr.bf16.mxu1 %v6144_v1 }
  0x82   : > { %2166 = vmatpush1.bf16.msra.mxu1 %v5652_v43  ;;  %v5740_v43 = vld [vmem:[%s8222_s8 + $0x88] ss:$20 sps:$4 sm:$0xff]  }
  0x83   : > { %2167 = vmatprep.subr.bf16.mxu1 %v6144_v1 }
  0x84   : > { %1996 = vmatmul.mubr.bf16.gmra.mxu0 %v5649_v41  ;;  %2108 = vmatmul.mubr.bf16.gmra.mxu1 %v5650_v42  ;;  %v5737_v41 = vld [vmem:[%s8222_s8 + $0x14c] ss:$20 sps:$4 sm:$0xff]   ;;  %v5739_v42 = vld [vmem:[%s8222_s8 + $0x148] ss:$20 sps:$4 sm:$0xff]  }
  0x85   : > { %2003 = vmatprep.mubr.bf16.mxu0 %v5653_v44  ;;  %2115 = vmatprep.mubr.bf16.mxu1 %v5655_v45  ;;  %v5741_v44 = vld [vmem:[%s8222_s8 + $0x174] ss:$20 sps:$4 sm:$0xff]   ;;  %v5743_v45 = vld [vmem:[%s8222_s8 + $0x170] ss:$20 sps:$4 sm:$0xff]  }
  0x86   : > { %2168 = vmatpush1.bf16.msra.mxu1 %v5659_v46  ;;  %v5744_v46 = vld [vmem:[%s8222_s8 + $0xb0] ss:$20 sps:$4 sm:$0xff]  }
  0x87   : > { %2169 = vmatprep.subr.bf16.mxu1 %v6144_v1 }
  0x8a   : > { %2170 = vmatpush1.bf16.msra.mxu1 %v5660_v47  ;;  %v5745_v47 = vld [vmem:[%s8222_s8 + $0x19c] ss:$20 sps:$4 sm:$0xff]  }
  0x8b   : > { %2171 = vmatprep.subr.bf16.mxu1 %v6144_v1 }
  0x8c   : > { %2004 = vmatmul.mubr.bf16.gmra.mxu0 %v5657_v48  ;;  %2116 = vmatmul.mubr.bf16.gmra.mxu1 %v5658_v49  ;;  %v5747_v48 = vld [vmem:[%s8222_s8 + $0x198] ss:$20 sps:$4 sm:$0xff]  }
  0x8d   : > { %2011 = vmatprep.mubr.bf16.mxu0 %v5661_v50  ;;  %2123 = vmatprep.mubr.bf16.mxu1 %v5663_v51  ;;  %v5748_v49 = vld [vmem:[%s8222_s8 + $0xd8] ss:$20 sps:$4 sm:$0xff]   ;;  %v5751_v51 = vld [vmem:[%s8222_s8 + $0x1c0] ss:$20 sps:$4 sm:$0xff]  }
  0x8e   : > { %2172 = vmatpush2.bf16.msra.mxu1 %v5667_v52  ;;  %v5749_v50 = vld [vmem:[%s8222_s8 + $0x1c4] ss:$20 sps:$4 sm:$0xff]   ;;  %v5752_v52 = vld [vmem:[%s8222_s8 + $0x100] ss:$20 sps:$4 sm:$0xff]  }
  0x8f   : > { %2173 = vmatprep.subr.bf16.mxu1 %v6144_v1 }
  0x92   : > { %2174 = vmatpush2.bf16.msra.mxu1 %v5668_v53  ;;  %v5753_v53 = vld [vmem:[%s8222_s8 + $0x1ec] ss:$20 sps:$4 sm:$0xff]  }
  0x93   : > { %2175 = vmatprep.subr.bf16.mxu1 %v6144_v1 }
  0x94   : > { %2012 = vmatmul.mubr.bf16.gmra.mxu0 %v5665_v54  ;;  %2124 = vmatmul.mubr.bf16.gmra.mxu1 %v5666_v55  ;;  %v5755_v54 = vld [vmem:[%s8222_s8 + $0x1e8] ss:$20 sps:$4 sm:$0xff]  }
  0x95   : > { %2019 = vmatprep.mubr.bf16.mxu0 %v5669_v56  ;;  %2131 = vmatprep.mubr.bf16.mxu1 %v5671_v57  ;;  %v5756_v55 = vld [vmem:[%s8222_s8 + $0x128] ss:$20 sps:$4 sm:$0xff]   ;;  %v5759_v57 = vld [vmem:[%s8222_s8 + $0x210] ss:$20 sps:$4 sm:$0xff]  }
  0x96   : > { %2176 = vmatpush2.bf16.msra.mxu1 %v5675_v58  ;;  %v5757_v56 = vld [vmem:[%s8222_s8 + $0x214] ss:$20 sps:$4 sm:$0xff]   ;;  %v5760_v58 = vld [vmem:[%s8222_s8 + $0x150] ss:$20 sps:$4 sm:$0xff]  }
  0x97   : > { %2177 = vmatprep.subr.bf16.mxu1 %v6144_v1 }
  0x9a   : > { %2178 = vmatpush2.bf16.msra.mxu1 %v5676_v59  ;;  %v5761_v59 = vld [vmem:[%s8222_s8 + $0x23c] ss:$20 sps:$4 sm:$0xff]  }
  0x9b   : > { %2179 = vmatprep.subr.bf16.mxu1 %v6144_v1 }
  0x9c   : > { %2020 = vmatmul.mubr.bf16.gmra.mxu0 %v5673_v60  ;;  %2132 = vmatmul.mubr.bf16.gmra.mxu1 %v5674_v61  ;;  %v5763_v60 = vld [vmem:[%s8222_s8 + $0x238] ss:$20 sps:$4 sm:$0xff]  }
  0x9d   : > { %2027 = vmatprep.mubr.bf16.mxu0 %v5677_v62  ;;  %2139 = vmatprep.mubr.bf16.mxu1 %v5679_v63  ;;  %v5764_v61 = vld [vmem:[%s8222_s8 + $0x178] ss:$20 sps:$4 sm:$0xff]   ;;  %v5767_v63 = vld [vmem:[%s8222_s8 + $0x260] ss:$20 sps:$4 sm:$0xff]  }
  0x9e   : > { %2180 = vmatpush2.bf16.msra.mxu1 %v5683_v0  ;;  %v5765_v62 = vld [vmem:[%s8222_s8 + $0x264] ss:$20 sps:$4 sm:$0xff]   ;;  %v5768_v0 = vld [vmem:[%s8222_s8 + $0x1a0] ss:$20 sps:$4 sm:$0xff]  }
  0x9f   : > { %2181 = vmatprep.subr.bf16.mxu1 %v6144_v1 }
  0xa2   : > { %2182 = vmatpush2.bf16.msra.mxu1 %v5684_v2  ;;  %v5769_v2 = vld [vmem:[%s8222_s8 + $0x28c] ss:$20 sps:$4 sm:$0xff]  }
  0xa3   : > { %2183 = vmatprep.subr.bf16.mxu1 %v6144_v1 }
  0xa4   : > { %2028 = vmatmul.mubr.bf16.gmra.mxu0 %v5681_v4  ;;  %2140 = vmatmul.mubr.bf16.gmra.mxu1 %v5682_v5 }
  0xa5   : > { %2035 = vmatprep.mubr.bf16.mxu0 %v5685_v6  ;;  %2147 = vmatprep.mubr.bf16.mxu1 %v4989_v7 }
  0xa6   : > { %2184 = vmatpush2.bf16.msra.mxu1 %v5690_v8 }
  0xa7   : > { %2185 = vmatprep.subr.bf16.mxu1 %v6144_v1  ;;  %v5694_v1 = vld [vmem:[%s8222_s8 + $0x8] ss:$20 sps:$4 sm:$0xff]  }
  0xaa   : > { %2186 = vmatpush2.bf16.msra.mxu1 %v5691_v9  ;;  %v5771_v9 = vld [vmem:[%s8222_s8 + $0x288] ss:$20 sps:$4 sm:$0xff]  }
  0xac   : > { %2036 = vmatmul.mubr.bf16.gmra.mxu0 %v5688_v10  ;;  %2148 = vmatmul.mubr.bf16.gmra.mxu1 %v4988_v11  ;;  %v5772_v10 = vld [vmem:[%s8222_s8 + $0x1c8] ss:$20 sps:$4 sm:$0xff]  }
  0xad   : > { %2043 = vmatprep.mubr.bf16.mxu0 %v5692_v12  ;;  %2187 = vmatprep.mubr.bf16.mxu1 %v5696_v13  ;;  %v5773_v11 = vld [vmem:[%s8222_s8 + $0x2b4] ss:$20 sps:$4 sm:$0xff]  }
  0xb4   : > { %2044 = vmatmul.mubr.bf16.gmra.mxu0 %v5697_v14  ;;  %2188 = vmatmul.mubr.bf16.vlgmr.msra.gmra.mxu1 %v5694_v1 }
  0xb5   : > { %2051 = vmatprep.mubr.bf16.mxu0 %v5698_v15  ;;  %2195 = vmatprep.mubr.bf16.mxu1 %v5700_v16 }
  0xbc   : > { %2052 = vmatmul.mubr.bf16.gmra.mxu0 %v5702_v17  ;;  %2196 = vmatmul.mubr.bf16.gmra.mxu1 %v5703_v18 }
  0xbd   : > { %2059 = vmatprep.mubr.bf16.mxu0 %v5704_v19  ;;  %2203 = vmatprep.mubr.bf16.mxu1 %v5706_v20  ;;  %v5775_v19 = vld [vmem:[%s8222_s8 + $0x2b0] ss:$20 sps:$4 sm:$0xff]  }
  0xbe   : > { %v5776_v20 = vld [vmem:[%s8222_s8 + $0x1f0] ss:$20 sps:$4 sm:$0xff]  }
  0xc4   : > { %2060 = vmatmul.mubr.bf16.gmra.mxu0 %v5708_v21  ;;  %2204 = vmatmul.mubr.bf16.gmra.mxu1 %v5709_v22  ;;  %v5777_v21 = vld [vmem:[%s8222_s8 + $0x2dc] ss:$20 sps:$4 sm:$0xff]  }
  0xc5   : > { %2067 = vmatprep.mubr.bf16.mxu0 %v5710_v23  ;;  %2211 = vmatprep.mubr.bf16.mxu1 %v5712_v25 }
  0xcc   : > { %2068 = vmatmul.mubr.bf16.gmra.mxu0 %v5714_v26  ;;  %2212 = vmatmul.mubr.bf16.gmra.mxu1 %v5715_v27 }
  0xcd   : > { %2075 = vmatprep.mubr.bf16.mxu0 %v5717_v28  ;;  %2219 = vmatprep.mubr.bf16.mxu1 %v5719_v29 }
  0xd4   : > { %2076 = vmatmul.mubr.bf16.gmra.mxu0 %v5721_v30  ;;  %2220 = vmatmul.mubr.bf16.gmra.mxu1 %v5722_v31  ;;  %v5779_v31 = vld [vmem:[%s8222_s8 + $0x2d8] ss:$20 sps:$4 sm:$0xff]  }
  0xd5   : > { %2227 = vmatprep.mubr.bf16.mxu1 %v5725_v32  ;;  %5272 = vmatprep.mubr.msk.bf16.mxu0 %vm6146_vm1, %v8183_v24  ;;  %v5780_v32 = vld [vmem:[%s8222_s8 + $0x218] ss:$20 sps:$4 sm:$0xff]  }
  0xdc   : > { %2228 = vmatmul.mubr.bf16.gmra.mxu1 %v5727_v33  ;;  %5273 = vmatmul.mubr.msk.bf16.vlgmr.msra.gmra.mxu0 %vm1865_vm2, %v5728_v34  ;;  %v5783_v33 = vld [vmem:[%s8222_s8 + $0x304] ss:$20 sps:$4 sm:$0xff]  }
  0xdd   : > { %2235 = vmatprep.mubr.bf16.mxu1 %v5729_v35  ;;  %5276 = vmatprep.mubr.msk.bf16.mxu0 %vm6146_vm1, %v8183_v24 }
  0xe4   : > { %2236 = vmatmul.mubr.bf16.gmra.mxu1 %v5731_v36  ;;  %5277 = vmatmul.mubr.msk.bf16.gmra.mxu0 %vm1865_vm2, %v5732_v37 }
  0xe5   : > { %2243 = vmatprep.mubr.bf16.mxu1 %v5733_v38  ;;  %5280 = vmatprep.mubr.msk.bf16.mxu0 %vm6146_vm1, %v8183_v24 }
  0xec   : > { %2244 = vmatmul.mubr.bf16.gmra.mxu1 %v5735_v39  ;;  %5281 = vmatmul.mubr.msk.bf16.gmra.mxu0 %vm1865_vm2, %v5736_v40 }
  0xed   : > { %2251 = vmatprep.mubr.bf16.mxu1 %v5737_v41  ;;  %5284 = vmatprep.mubr.msk.bf16.mxu0 %vm6146_vm1, %v8183_v24 }
  0xf4   : > { %2252 = vmatmul.mubr.bf16.gmra.mxu1 %v5739_v42  ;;  %5285 = vmatmul.mubr.msk.bf16.gmra.mxu0 %vm1865_vm2, %v5740_v43  ;;  %v5781_v42 = vld [vmem:[%s8222_s8 + $0x300] ss:$20 sps:$4 sm:$0xff]  }
  0xf5   : > { %2259 = vmatprep.mubr.bf16.mxu1 %v5741_v44  ;;  %5288 = vmatprep.mubr.msk.bf16.mxu0 %vm6146_vm1, %v8183_v24  ;;  %v5784_v43 = vld [vmem:[%s8222_s8 + $0x240] ss:$20 sps:$4 sm:$0xff]  }
  0xf6   : > { %v5787_v44 = vld [vmem:[%s8222_s8 + $0x32c] ss:$20 sps:$4 sm:$0xff]  }
  0xfc   : > { %2260 = vmatmul.mubr.bf16.gmra.mxu1 %v5743_v45  ;;  %5289 = vmatmul.mubr.msk.bf16.gmra.mxu0 %vm1865_vm2, %v5744_v46 }
  0xfd   : > { %2267 = vmatprep.mubr.bf16.mxu1 %v5745_v47  ;;  %5292 = vmatprep.mubr.msk.bf16.mxu0 %vm6146_vm1, %v8183_v24 }
 0x104   : > { %2268 = vmatmul.mubr.bf16.gmra.mxu1 %v5747_v48  ;;  %5293 = vmatmul.mubr.msk.bf16.gmra.mxu0 %vm1865_vm2, %v5748_v49 }
 0x105   : > { %2275 = vmatprep.mubr.bf16.mxu1 %v5749_v50  ;;  %5296 = vmatprep.mubr.msk.bf16.mxu0 %vm6146_vm1, %v8183_v24 }
 0x10c   : > { %2276 = vmatmul.mubr.bf16.gmra.mxu1 %v5751_v51  ;;  %5297 = vmatmul.mubr.msk.bf16.gmra.mxu0 %vm1865_vm2, %v5752_v52 }
 0x10d   : > { %2283 = vmatprep.mubr.bf16.mxu1 %v5753_v53  ;;  %5300 = vmatprep.mubr.msk.bf16.mxu0 %vm6146_vm1, %v8183_v24  ;;  %v5785_v53 = vld [vmem:[%s8222_s8 + $0x328] ss:$20 sps:$4 sm:$0xff]  }
 0x114   : > { %2284 = vmatmul.mubr.bf16.gmra.mxu1 %v5755_v54  ;;  %5301 = vmatmul.mubr.msk.bf16.gmra.mxu0 %vm1865_vm2, %v5756_v55  ;;  %v5788_v54 = vld [vmem:[%s8222_s8 + $0x268] ss:$20 sps:$4 sm:$0xff]  }
 0x115   : > { %2291 = vmatprep.mubr.bf16.mxu1 %v5757_v56  ;;  %5304 = vmatprep.mubr.msk.bf16.mxu0 %vm6146_vm1, %v8183_v24  ;;  %v5791_v55 = vld [vmem:[%s8222_s8 + $0x354] ss:$20 sps:$4 sm:$0xff]  }
 0x11c   : > { %2292 = vmatmul.mubr.bf16.gmra.mxu1 %v5759_v57  ;;  %5305 = vmatmul.mubr.msk.bf16.gmra.mxu0 %vm1865_vm2, %v5760_v58 }
 0x11d   : > { %2299 = vmatprep.mubr.bf16.mxu1 %v5761_v59  ;;  %5308 = vmatprep.mubr.msk.bf16.mxu0 %vm6146_vm1, %v8183_v24 }
 0x124   : > { %2300 = vmatmul.mubr.bf16.gmra.mxu1 %v5763_v60  ;;  %5309 = vmatmul.mubr.msk.bf16.gmra.mxu0 %vm1865_vm2, %v5764_v61 }
 0x125   : > { %2307 = vmatprep.mubr.bf16.mxu1 %v5765_v62  ;;  %5312 = vmatprep.mubr.msk.bf16.mxu0 %vm6146_vm1, %v8183_v24  ;;  %v1020_v62 = vld [vmem:[%s8222_s8 + $0x378] sm:$0xff] }
 0x12c   : > { %v6797_v3 = vpop.f32.mrf.mxu0  ;;  %v6799_v4 = vpop.f32.mrf.mxu1  ;;  %2308 = vmatmul.mubr.bf16.gmra.mxu1 %v5767_v63  ;;  %5313 = vmatmul.mubr.msk.bf16.gmra.mxu0 %vm1865_vm2, %v5768_v0 }
 0x12d   : > { %2315 = vmatprep.mubr.bf16.mxu1 %v5769_v2  ;;  %5316 = vmatprep.mubr.msk.bf16.mxu0 %vm6146_vm1, %v8183_v24  ;;  %v5789_v2 = vld [vmem:[%s8222_s8 + $0x350] ss:$20 sps:$4 sm:$0xff]  }
 0x12e   : > { %v1975_v5 = vpop.f32.mrf.mxu0  ;;  %v2087_v6 = vpop.f32.mrf.mxu1 }
 0x12f   : > { %v5792_v5 = vld [vmem:[%s8222_s8 + $0x290] ss:$20 sps:$4 sm:$0xff]   ;;  %v4991_v6 = vcombine.high %v1020_v62, %v1020_v62 }
 0x130   : > { %v6804_v7 = vpop.f32.mrf.mxu0  ;;  %v6806_v8 = vpop.f32.mrf.mxu1 }
 0x132   : > { %v1978_v12 = vpop.f32.mrf.mxu0  ;;  %v2090_v13 = vpop.f32.mrf.mxu1 }
 0x134   : > { %v6817_v1 = vpop.f32.mrf.mxu0  ;;  %v6819_v14 = vpop.f32.mrf.mxu1  ;;  %2316 = vmatmul.mubr.bf16.gmra.mxu1 %v5771_v9  ;;  %5317 = vmatmul.mubr.msk.bf16.gmra.mxu0 %vm1865_vm2, %v5772_v10 }
 0x135   : > { %2323 = vmatprep.mubr.bf16.mxu1 %v5773_v11  ;;  %5320 = vmatprep.mubr.msk.bf16.mxu0 %vm6146_vm1, %v8183_v24 }
 0x136   : > { %v1983_v15 = vpop.f32.mrf.mxu0  ;;  %v2095_v16 = vpop.f32.mrf.mxu1 }
 0x138   : > { %v6824_v17 = vpop.f32.mrf.mxu0  ;;  %v6826_v18 = vpop.f32.mrf.mxu1 }
 0x13a   : > { %v1986_v22 = vpop.f32.mrf.mxu0  ;;  %v2098_v23 = vpop.f32.mrf.mxu1 }
 0x13c   : > { %v6837_v25 = vpop.f32.mrf.mxu0  ;;  %v6839_v26 = vpop.f32.mrf.mxu1  ;;  %2324 = vmatmul.mubr.bf16.gmra.mxu1 %v5775_v19  ;;  %5321 = vmatmul.mubr.msk.bf16.gmra.mxu0 %vm1865_vm2, %v5776_v20  ;;  %v4990_v20 = vcombine.low %v1020_v62, %v1020_v62 }
 0x13d   : > { %8223 = vst [vmem:[#allocation7_spill] sm:$0xff] %v6839_v26  ;;  %2331 = vmatprep.mubr.bf16.mxu1 %v5777_v21  ;;  %5324 = vmatprep.mubr.msk.bf16.mxu0 %vm6146_vm1, %v8183_v24  ;;  %v5795_v21 = vld [vmem:[%s8222_s8 + $0x2b8] ss:$20 sps:$4 sm:$0xff]  }
 0x13e   : > { %v1991_v27 = vpop.f32.mrf.mxu0  ;;  %v2103_v28 = vpop.f32.mrf.mxu1 }
 0x140   : > { %v6844_v29 = vpop.f32.mrf.mxu0  ;;  %v6846_v30 = vpop.f32.mrf.mxu1 }
 0x141   : > { %8224 = vst [vmem:[#allocation8_spill] sm:$0xff] %v6846_v30 }
 0x142   : > { %v1994_v34 = vpop.f32.mrf.mxu0  ;;  %v2106_v35 = vpop.f32.mrf.mxu1 }
 0x143   : > { %v5796_v35 = vld [vmem:[%s8222_s8 + $0x2e0] ss:$20 sps:$4 sm:$0xff]  }
 0x144   : > { %v6857_v36 = vpop.f32.mrf.mxu0  ;;  %v6859_v37 = vpop.f32.mrf.mxu1  ;;  %2332 = vmatmul.mubr.bf16.gmra.mxu1 %v5779_v31  ;;  %5325 = vmatmul.mubr.msk.bf16.gmra.mxu0 %vm1865_vm2, %v5780_v32 }
 0x145   : > { %8225 = vst [vmem:[#allocation9_spill] sm:$0xff] %v6859_v37  ;;  %2339 = vmatprep.mubr.bf16.mxu1 %v5783_v33  ;;  %5328 = vmatprep.mubr.msk.bf16.mxu0 %vm6146_vm1, %v8183_v24 }
 0x146   : > { %v1999_v38 = vpop.f32.mrf.mxu0  ;;  %v2111_v39 = vpop.f32.mrf.mxu1 }
 0x148   : > { %v6864_v40 = vpop.f32.mrf.mxu0  ;;  %v6866_v41 = vpop.f32.mrf.mxu1 }
 0x149   : > { %8226 = vst [vmem:[#allocation10_spill] sm:$0xff] %v6866_v41 }
 0x14a   : > { %v2002_v45 = vpop.f32.mrf.mxu0  ;;  %v2114_v46 = vpop.f32.mrf.mxu1 }
 0x14c   : > { %v6877_v47 = vpop.f32.mrf.mxu0  ;;  %v6879_v48 = vpop.f32.mrf.mxu1  ;;  %2340 = vmatmul.mubr.bf16.gmra.mxu1 %v5781_v42  ;;  %5329 = vmatmul.mubr.msk.bf16.gmra.mxu0 %vm1865_vm2, %v5784_v43 }
 0x14d   : > { %8227 = vst [vmem:[#allocation11_spill] sm:$0xff] %v6879_v48  ;;  %2347 = vmatprep.mubr.bf16.mxu1 %v5787_v44  ;;  %5332 = vmatprep.mubr.msk.bf16.mxu0 %vm6146_vm1, %v8183_v24 }
 0x14e   : > { %v2007_v49 = vpop.f32.mrf.mxu0  ;;  %v2119_v50 = vpop.f32.mrf.mxu1 }
 0x14f   : > { %v5797_v50 = vld [vmem:[%s8222_s8 + $0x308] ss:$20 sps:$4 sm:$0xff]  }
 0x150   : > { %v6884_v51 = vpop.f32.mrf.mxu0  ;;  %v6886_v52 = vpop.f32.mrf.mxu1 }
 0x151   : > { %8228 = vst [vmem:[#allocation12_spill] sm:$0xff] %v6886_v52 }
 0x152   : > { %v2010_v56 = vpop.f32.mrf.mxu0  ;;  %v2122_v57 = vpop.f32.mrf.mxu1 }
 0x154   : > { %v6897_v58 = vpop.f32.mrf.mxu0  ;;  %v6899_v59 = vpop.f32.mrf.mxu1  ;;  %2348 = vmatmul.mubr.bf16.gmra.mxu1 %v5785_v53  ;;  %5333 = vmatmul.mubr.msk.bf16.gmra.mxu0 %vm1865_vm2, %v5788_v54 }
 0x155   : > { %8229 = vst [vmem:[#allocation13_spill] sm:$0xff] %v6899_v59  ;;  %2355 = vmatprep.mubr.bf16.mxu1 %v5791_v55  ;;  %5336 = vmatprep.mubr.msk.bf16.mxu0 %vm6146_vm1, %v8183_v24 }
 0x156   : > { %v2015_v60 = vpop.f32.mrf.mxu0  ;;  %v2127_v61 = vpop.f32.mrf.mxu1 }
 0x158   : > { %v6907_v63 = vpop.f32.mrf.mxu0  ;;  %v6909_v0 = vpop.f32.mrf.mxu1 }
 0x159   : > { %8230 = vst [vmem:[#allocation14_spill] sm:$0xff] %v6909_v0 }
 0x15a   : > { %v2018_v9 = vpop.f32.mrf.mxu0  ;;  %v2130_v10 = vpop.f32.mrf.mxu1 }
 0x15c   : > { %v6917_v11 = vpop.f32.mrf.mxu0  ;;  %v6919_v12 = vpop.f32.mrf.mxu1  ;;  %2356 = vmatmul.mubr.bf16.gmra.mxu1 %v5789_v2  ;;  %5337 = vmatmul.mubr.msk.bf16.gmra.mxu0 %vm1865_vm2, %v5792_v5  ;;  %v5798_v2 = vld [vmem:[%s8222_s8 + $0x330] ss:$20 sps:$4 sm:$0xff]  }
 0x15d   : > { %8231 = vst [vmem:[#allocation15_spill] sm:$0xff] %v6919_v12  ;;  %2363 = vmatprep.mubr.bf16.mxu1 %v4991_v6  ;;  %5340 = vmatprep.mubr.msk.bf16.mxu0 %vm6146_vm1, %v8183_v24 }
 0x15e   : > { %v2023_v13 = vpop.f32.mrf.mxu0  ;;  %v2135_v15 = vpop.f32.mrf.mxu1 }
 0x160   : > { %v6924_v16 = vpop.f32.mrf.mxu0  ;;  %v6926_v19 = vpop.f32.mrf.mxu1 }
 0x161   : > { %8232 = vst [vmem:[#allocation16_spill] sm:$0xff] %v6926_v19 }
 0x162   : > { %v2026_v22 = vpop.f32.mrf.mxu0  ;;  %v2138_v23 = vpop.f32.mrf.mxu1 }
 0x163   : > { %v5799_v22 = vld [vmem:[%s8222_s8 + $0x358] ss:$20 sps:$4 sm:$0xff]  }
 0x164   : > { %v6931_v27 = vpop.f32.mrf.mxu0  ;;  %v6933_v28 = vpop.f32.mrf.mxu1  ;;  %2364 = vmatmul.mubr.bf16.gmra.mxu1 %v4990_v20  ;;  %5341 = vmatmul.mubr.msk.bf16.gmra.mxu0 %vm1865_vm2, %v5795_v21 }
 0x165   : > { %8233 = vst [vmem:[#allocation17_spill] sm:$0xff] %v6933_v28  ;;  %5344 = vmatprep.mubr.msk.bf16.mxu0 %vm6146_vm1, %v8183_v24 }
 0x166   : > { %v2031_v31 = vpop.f32.mrf.mxu0  ;;  %v2143_v32 = vpop.f32.mrf.mxu1 }
 0x168   : > { %v6938_v33 = vpop.f32.mrf.mxu0  ;;  %v6940_v34 = vpop.f32.mrf.mxu1 }
 0x169   : > { %8234 = vst [vmem:[#allocation18_spill] sm:$0xff] %v6940_v34 }
 0x16a   : > { %v2034_v38 = vpop.f32.mrf.mxu0  ;;  %v2146_v39 = vpop.f32.mrf.mxu1 }
 0x16c   : > { %v6945_v42 = vpop.f32.mrf.mxu0  ;;  %v6947_v43 = vpop.f32.mrf.mxu1  ;;  %5345 = vmatmul.mubr.msk.bf16.gmra.mxu0 %vm1865_vm2, %v5796_v35 }
 0x16d   : > { %8235 = vst [vmem:[#allocation19_spill] sm:$0xff] %v6947_v43  ;;  %5348 = vmatprep.mubr.msk.bf16.mxu0 %vm6146_vm1, %v8183_v24 }
 0x16e   : > { %v2039_v44 = vpop.f32.mrf.mxu0  ;;  %v2151_v45 = vpop.f32.mrf.mxu1 }
 0x170   : > { %v6952_v46 = vpop.f32.mrf.mxu0  ;;  %v2152_v49 = vpop.f32.mrf.mxu1 }
 0x171   : > { %v5800_v49 = vld [vmem:[%s8222_s8 + $0x380] ss:$0 sps:$4 sm:$0xff]  }
 0x172   : > { %v2042_v53 = vpop.f32.mrf.mxu0  ;;  %v2153_v54 = vpop.f32.mrf.mxu1 }
 0x174   : > { %v6957_v55 = vpop.f32.mrf.mxu0  ;;  %v2189_v56 = vpop.f32.mrf.mxu1  ;;  %5349 = vmatmul.mubr.msk.bf16.gmra.mxu0 %vm1865_vm2, %v5797_v50 }
 0x175   : > { %5352 = vmatprep.mubr.msk.bf16.mxu0 %vm6146_vm1, %v8183_v24 }
 0x176   : > { %v2047_v57 = vpop.f32.mrf.mxu0  ;;  %v2191_v60 = vpop.f32.mrf.mxu1 }
 0x178   : > { %v6962_v61 = vpop.f32.mrf.mxu0  ;;  %v2192_v62 = vpop.f32.mrf.mxu1 }
 0x17a   : > { %v2050_v5 = vpop.f32.mrf.mxu0  ;;  %v2194_v6 = vpop.f32.mrf.mxu1 }
 0x17c   : > { %v6967_v9 = vpop.f32.mrf.mxu0  ;;  %v2197_v10 = vpop.f32.mrf.mxu1  ;;  %5353 = vmatmul.mubr.msk.bf16.gmra.mxu0 %vm1865_vm2, %v5798_v2 }
 0x17d   : > { %5356 = vmatprep.mubr.msk.bf16.mxu0 %vm6146_vm1, %v8183_v24 }
 0x17e   : > { %v2055_v13 = vpop.f32.mrf.mxu0  ;;  %v2199_v15 = vpop.f32.mrf.mxu1 }
 0x180   : > { %v6972_v20 = vpop.f32.mrf.mxu0  ;;  %v2200_v21 = vpop.f32.mrf.mxu1 }
 0x182   : > { %v2058_v23 = vpop.f32.mrf.mxu0  ;;  %v2202_v31 = vpop.f32.mrf.mxu1 }
 0x184   : > { %v6977_v32 = vpop.f32.mrf.mxu0  ;;  %v6979_v35 = vpop.f32.mrf.mxu1  ;;  %5357 = vmatmul.mubr.msk.bf16.gmra.mxu0 %vm1865_vm2, %v5799_v22 }
 0x185   : > { %5360 = vmatprep.mubr.msk.bf16.mxu0 %vm6146_vm1, %v8183_v24 }
 0x186   : > { %v2063_v38 = vpop.f32.mrf.mxu0  ;;  %v2207_v39 = vpop.f32.mrf.mxu1 }
 0x188   : > { %v6984_v44 = vpop.f32.mrf.mxu0  ;;  %v6986_v45 = vpop.f32.mrf.mxu1 }
 0x18a   : > { %v2066_v50 = vpop.f32.mrf.mxu0  ;;  %v2210_v53 = vpop.f32.mrf.mxu1 }
 0x18c   : > { %v6991_v54 = vpop.f32.mrf.mxu0  ;;  %v6993_v57 = vpop.f32.mrf.mxu1  ;;  %5361 = vmatmul.mubr.msk.bf16.gmra.mxu0 %vm1865_vm2, %v5800_v49 }
 0x18e   : > { %v2071_v60 = vpop.f32.mrf.mxu0  ;;  %v2215_v2 = vpop.f32.mrf.mxu1 }
 0x18f   : > { %v2190_v60 = vadd.f32 %v2189_v56, %v6797_v3 }
 0x190   : > { %v6996_v5 = vpop.f32.mrf.mxu0  ;;  %v6998_v6 = vpop.f32.mrf.mxu1 }
 0x192   : > { %v2074_v13 = vpop.f32.mrf.mxu0  ;;  %v2218_v15 = vpop.f32.mrf.mxu1 }
 0x193   : > { %v7014_v13 = vld [vmem:[%s8236_s3] ss:$0 sm:$0xff] }
 0x194   : > { %v7000_v22 = vpop.f32.mrf.mxu0  ;;  %v7002_v23 = vpop.f32.mrf.mxu1 }
 0x196   : > { %v2079_v31 = vpop.f32.mrf.mxu0  ;;  %v2223_v38 = vpop.f32.mrf.mxu1 }
 0x197   : > { %v7019_v31 = vld [vmem:[%s8237_s7] ss:$0 sm:$0xff] }
 0x198   : > { %v7004_v39 = vpop.f32.mrf.mxu0  ;;  %v7006_v50 = vpop.f32.mrf.mxu1 }
 0x19a   : > { %v2082_v53 = vpop.f32.mrf.mxu0  ;;  %v2226_v49 = vpop.f32.mrf.mxu1 }
 0x19b   : > { %v2193_v53 = vadd.f32 %v2192_v62, %v6804_v7 }
 0x19c   : > { %v7009_v2 = vpop.f32.mrf.mxu1  ;;  %v2405_v24 = vpop.f32.mrf.mxu0 }
 0x19d   : > { %v2406_v15 = vadd.f32 %v2405_v24, %v2190_v60  ;;  %v2198_v60 = vadd.f32 %v2197_v10, %v6817_v1 }
 0x19e   : > { %v2231_v38 = vpop.f32.mrf.mxu1  ;;  %v5274_v43 = vpop.f32.mrf.mxu0 }
 0x19f   : > { %v2594_v3 = vmul.f32 %v7014_v13, %v2406_v15 }
 0x1a0   : > { %v7023_v56 = vpop.f32.mrf.mxu1  ;;  %v2408_v49 = vpop.f32.mrf.mxu0 }
 0x1a1   : > { %v7026_v34 = vadd.f32 %v7019_v31, %v2594_v3  ;;  %v2409_v28 = vadd.f32 %v2408_v49, %v2193_v53  ;;  %v2201_v53 = vadd.f32 %v2200_v21, %v6824_v17 }
 0x1a2   : > { %v2234_v19 = vpop.f32.mrf.mxu1  ;;  %v5275_v24 = vpop.f32.mrf.mxu0 }
 0x1a3   : > { %v2691_v12 = vmin.f32 %v7026_v34, 0.0  ;;  %v2595_v38 = vmul.f32 %v7014_v13, %v2409_v28  ;;  %vm2826_vm3 = vcmp.gt.f32.partialorder %v7026_v34, 0.0 }
 0x1a4   : > { %v7031_v43 = vpop.f32.mrf.mxu1  ;;  %v2413_v7 = vpop.f32.mrf.mxu0 }
 0x1a5   : > { %v2736_v62 = vmul.f32 0.5, %v2691_v12  ;;  %v7034_v15 = vadd.f32 %v7019_v31, %v2595_v38  ;;  %v2414_v0 = vadd.f32 %v2413_v7, %v2198_v60 }
 0x1a6   : > { %v2239_v59 = vpop.f32.mrf.mxu1  ;;  %v5278_v3 = vpop.f32.mrf.mxu0 }
 0x1a7   : > { %5805 = vtanh.f32 %v2736_v62  ;;  %v2692_v19 = vmin.f32 %v7034_v15, 0.0  ;;  %v2596_v1 = vmul.f32 %v7014_v13, %v2414_v0  ;;  %v2206_v59 = vadd.f32 %v6979_v35, %v6837_v25 }
 0x1a8   : > { %v7039_v10 = vpop.f32.mrf.mxu1  ;;  %v2416_v28 = vpop.f32.mrf.mxu0  ;;  %vm2827_vm4 = vcmp.gt.f32.partialorder %v7034_v15, 0.0 }
 0x1a9   : > { %v2737_v49 = vmul.f32 0.5, %v2692_v19  ;;  %v7042_v24 = vadd.f32 %v7019_v31, %v2596_v1  ;;  %v2417_v12 = vadd.f32 %v2416_v28, %v2201_v53 }
 0x1aa   : > { %v2242_v38 = vpop.f32.mrf.mxu1  ;;  %v5279_v52 = vpop.f32.mrf.mxu0 }
 0x1ab   : > { %5807 = vtanh.f32 %v2737_v49  ;;  %v2693_v17 = vmin.f32 %v7042_v24, 0.0  ;;  %v2597_v21 = vmul.f32 %v7014_v13, %v2417_v12  ;;  %v2209_v52 = vadd.f32 %v6986_v45, %v6844_v29 }
 0x1ac   : > { %v7048_v60 = vpop.f32.mrf.mxu1  ;;  %v2421_v0 = vpop.f32.mrf.mxu0  ;;  %vm2828_vm5 = vcmp.gt.f32.partialorder %v7042_v24, 0.0 }
 0x1ad   : > { %v2738_v7 = vmul.f32 0.5, %v2693_v17  ;;  %v7051_v62 = vadd.f32 %v7019_v31, %v2597_v21  ;;  %v2422_v3 = vadd.f32 %v2421_v0, %v2206_v59  ;;  %v2214_v0 = vadd.f32 %v6993_v57, %v6857_v36 }
 0x1ae   : > { %v2247_v19 = vpop.f32.mrf.mxu1  ;;  %v5282_v53 = vpop.f32.mrf.mxu0 }
 0x1af   : > { %5809 = vtanh.f32 %v2738_v7  ;;  %v2694_v25 = vmin.f32 %v7051_v62, 0.0  ;;  %v2598_v35 = vmul.f32 %v7014_v13, %v2422_v3  ;;  %vm2829_vm6 = vcmp.gt.f32.partialorder %v7051_v62, 0.0 }
 0x1b0   : > { %v7057_v1 = vpop.f32.mrf.mxu1  ;;  %v2424_v28 = vpop.f32.mrf.mxu0 }
 0x1b1   : > { %v2739_v49 = vmul.f32 0.5, %v2694_v25  ;;  %v7060_v12 = vadd.f32 %v7019_v31, %v2598_v35  ;;  %v2425_v38 = vadd.f32 %v2424_v28, %v2209_v52 }
 0x1b2   : > { %v2250_v17 = vpop.f32.mrf.mxu1  ;;  %v5283_v59 = vpop.f32.mrf.mxu0 }
 0x1b3   : > { %5811 = vtanh.f32 %v2739_v49  ;;  %v2695_v21 = vmin.f32 %v7060_v12, 0.0  ;;  %v2599_v29 = vmul.f32 %v7014_v13, %v2425_v38  ;;  %v2217_v49 = vadd.f32 %v6998_v6, %v6864_v40 }
 0x1b4   : > { %v7064_v45 = vpop.eup %5805  ;;  %v7068_v7 = vpop.f32.mrf.mxu1  ;;  %v2222_v40 = vadd.f32 %v7002_v23, %v6877_v47  ;;  %vm2830_vm8 = vcmp.gt.f32.partialorder %v7060_v12, 0.0 }
 0x1b5   : > { %v2429_v3 = vpop.f32.mrf.mxu0  ;;  %v2916_v19 = vsub.f32 1.0, %v7064_v45  ;;  %v2740_v53 = vmul.f32 0.5, %v2695_v21  ;;  %v7072_v52 = vadd.f32 %v7019_v31, %v2599_v29 }
 0x1b6   : > { %v2430_v25 = vadd.f32 %v2429_v3, %v2214_v0  ;;  %v2255_v35 = vpop.f32.mrf.mxu1 }
 0x1b7   : > { %v5286_v28 = vpop.f32.mrf.mxu0  ;;  %5813 = vrcp.f32 %v2916_v19  ;;  %v2696_v38 = vmin.f32 %v7072_v52, 0.0  ;;  %vm2831_vm7 = vcmp.gt.f32.partialorder %v7072_v52, 0.0 }
 0x1b8   : > { %v5808_v17 = vpop.eup %5807  ;;  %5815 = vtanh.f32 %v2740_v53  ;;  %v2600_v36 = vmul.f32 %v7014_v13, %v2430_v25  ;;  %v7078_v57 = vpop.f32.mrf.mxu1 }
 0x1b9   : > { %v2432_v59 = vpop.f32.mrf.mxu0  ;;  %v2917_v21 = vsub.f32 1.0, %v5808_v17  ;;  %v2741_v48 = vmul.f32 0.5, %v2696_v38 }
 0x1ba   : > { %v2433_v29 = vadd.f32 %v2432_v59, %v2217_v49  ;;  %v7081_v0 = vadd.f32 %v7019_v31, %v2600_v36  ;;  %v2258_v3 = vpop.f32.mrf.mxu1 }
 0x1bb   : > { %v5287_v35 = vpop.f32.mrf.mxu0  ;;  %5817 = vrcp.f32 %v2917_v21 }
 0x1bc   : > { %v2601_v6 = vmul.f32 %v7014_v13, %v2433_v29  ;;  %v7086_v19 = vpop.eup %5809  ;;  %5819 = vtanh.f32 %v2741_v48  ;;  %v2697_v53 = vmin.f32 %v7081_v0, 0.0  ;;  %v7089_v25 = vpop.f32.mrf.mxu1  ;;  %v2225_v29 = vadd.f32 %v7006_v50, %v6884_v51 }
 0x1bd   : > { %v2437_v28 = vpop.f32.mrf.mxu0  ;;  %v2918_v49 = vsub.f32 1.0, %v7086_v19  ;;  %vm2832_vm10 = vcmp.gt.f32.partialorder %v7081_v0, 0.0 }
 0x1be   : > { %v7093_v38 = vadd.f32 %v7019_v31, %v2601_v6  ;;  %v2438_v36 = vadd.f32 %v2437_v28, %v2222_v40  ;;  %v2742_v59 = vmul.f32 0.5, %v2697_v53  ;;  %v2263_v3 = vpop.f32.mrf.mxu1 }
 0x1bf   : > { %v5290_v47 = vpop.f32.mrf.mxu0  ;;  %5821 = vrcp.f32 %v2918_v49 }
 0x1c0   : > { %v2698_v23 = vmin.f32 %v7093_v38, 0.0  ;;  %v2602_v21 = vmul.f32 %v7014_v13, %v2438_v36  ;;  %v7097_v48 = vpop.eup %5811  ;;  %5823 = vtanh.f32 %v2742_v59  ;;  %v7101_v35 = vpop.f32.mrf.mxu1  ;;  %v2230_v36 = vadd.f32 %v7009_v2, %v6897_v58 }
 0x1c1   : > { %v2440_v41 = vpop.f32.mrf.mxu0  ;;  %v2919_v6 = vsub.f32 1.0, %v7097_v48  ;;  %vm2833_vm9 = vcmp.gt.f32.partialorder %v7093_v38, 0.0 }
 0x1c2   : > { %v2743_v40 = vmul.f32 0.5, %v2698_v23  ;;  %v7105_v53 = vadd.f32 %v7019_v31, %v2602_v21  ;;  %v2441_v28 = vadd.f32 %v2440_v41, %v2225_v29  ;;  %v2266_v49 = vpop.f32.mrf.mxu1  ;;  %v2871_v41 = vmul.f32 2.0, %v7064_v45 }
 0x1c3   : > { %v5291_v3 = vpop.f32.mrf.mxu0  ;;  %5825 = vrcp.f32 %v2919_v6  ;;  %v2233_v29 = vadd.f32 %v7023_v56, %v6907_v63  ;;  %v2872_v49 = vmul.f32 2.0, %v5808_v17 }
 0x1c4   : > { %v2699_v47 = vmin.f32 %v7105_v53, 0.0  ;;  %v5814_v51 = vpop.eup %5813  ;;  %5827 = vtanh.f32 %v2743_v40  ;;  %v2603_v50 = vmul.f32 %v7014_v13, %v2441_v28  ;;  %v7111_v59 = vpop.f32.mrf.mxu1  ;;  %vm2834_vm11 = vcmp.gt.f32.partialorder %v7105_v53, 0.0 }
 0x1c5   : > { %v2445_v37 = vpop.f32.mrf.mxu0  ;;  %v7113_v23 = vpop.eup %5815  ;;  %v3006_v3 = vmul.f32 %v5814_v51, %v2871_v41 }
 0x1c6   : > { %v2744_v21 = vmul.f32 0.5, %v2699_v47  ;;  %v2446_v30 = vadd.f32 %v2445_v37, %v2230_v36  ;;  %v2920_v58 = vsub.f32 1.0, %v7113_v23  ;;  %v7120_v2 = vadd.f32 %v7019_v31, %v2603_v50  ;;  %v2271_v6 = vpop.f32.mrf.mxu1 }
 0x1c7   : > { %v5294_v40 = vpop.f32.mrf.mxu0 }
 0x1c8   : > { %5829 = vtanh.f32 %v2744_v21  ;;  %v2604_v28 = vmul.f32 %v7014_v13, %v2446_v30  ;;  %v5818_v26 = vpop.eup %5817  ;;  %v2700_v37 = vmin.f32 %v7120_v2, 0.0  ;;  %v7124_v36 = vpop.f32.mrf.mxu1  ;;  %v7137_v40 = vsel %vm2826_vm3, %v7026_v34, %v3006_v3 }
 0x1c9   : > { %v2448_v45 = vpop.f32.mrf.mxu0  ;;  %v7126_v47 = vpop.eup %5819  ;;  %v3007_v50 = vmul.f32 %v5818_v26, %v2872_v49  ;;  %5831 = vrcp.f32 %v2920_v58  ;;  %8238 = vst [vmem:[#allocation20_spill] sm:$0xff] %v7137_v40  ;;  %v2238_v26 = vadd.f32 %v7031_v43, %v6917_v11  ;;  %v2241_v3 = vadd.f32 %v7039_v10, %v6924_v16 }
 0x1ca   : > { %v7130_v63 = vadd.f32 %v7019_v31, %v2604_v28  ;;  %v2449_v56 = vadd.f32 %v2448_v45, %v2233_v29  ;;  %v2921_v30 = vsub.f32 1.0, %v7126_v47  ;;  %v2745_v17 = vmul.f32 0.5, %v2700_v37  ;;  %v2274_v51 = vpop.f32.mrf.mxu1 }
 0x1cb   : > { %v5295_v21 = vpop.f32.mrf.mxu0  ;;  %v7140_v28 = vsel %vm2827_vm4, %v7034_v15, %v3007_v50  ;;  %v2873_v15 = vmul.f32 2.0, %v7086_v19  ;;  %vm2835_vm12 = vcmp.gt.f32.partialorder %v7120_v2, 0.0 }
 0x1cc   : > { %v2701_v41 = vmin.f32 %v7130_v63, 0.0  ;;  %v2605_v6 = vmul.f32 %v7014_v13, %v2449_v56  ;;  %8239 = vst [vmem:[#allocation21_spill] sm:$0xff] %v7140_v28  ;;  %v5822_v29 = vpop.eup %5821  ;;  %5833 = vrcp.f32 %v2921_v30  ;;  %v7144_v58 = vpop.f32.mrf.mxu1  ;;  %v2874_v21 = vmul.f32 2.0, %v7097_v48 }
 0x1cd   : > { %v2453_v49 = vpop.f32.mrf.mxu0  ;;  %v7148_v45 = vpop.eup %5823  ;;  %5835 = vtanh.f32 %v2745_v17  ;;  %v3008_v17 = vmul.f32 %v5822_v29, %v2873_v15  ;;  %v2246_v48 = vadd.f32 %v7048_v60, %v6931_v27  ;;  %vm2836_vm13 = vcmp.gt.f32.partialorder %v7130_v63, 0.0 }
 0x1ce   : > { %v2746_v56 = vmul.f32 0.5, %v2701_v41  ;;  %v7151_v34 = vadd.f32 %v7019_v31, %v2605_v6  ;;  %v2922_v11 = vsub.f32 1.0, %v7148_v45  ;;  %v2454_v43 = vadd.f32 %v2453_v49, %v2238_v26  ;;  %v2279_v50 = vpop.f32.mrf.mxu1 }
 0x1cf   : > { %v5298_v30 = vpop.f32.mrf.mxu0 }
 0x1d0   : > { %5837 = vtanh.f32 %v2746_v56  ;;  %v2702_v51 = vmin.f32 %v7151_v34, 0.0  ;;  %v5826_v41 = vpop.eup %5825  ;;  %v2606_v6 = vmul.f32 %v7014_v13, %v2454_v43  ;;  %v7161_v19 = vpop.f32.mrf.mxu1  ;;  %vm2837_vm14 = vcmp.gt.f32.partialorder %v7151_v34, 0.0 }
 0x1d1   : > { %v2456_v37 = vpop.f32.mrf.mxu0  ;;  %v7163_v16 = vpop.eup %5827  ;;  %5839 = vrcp.f32 %v2922_v11  ;;  %v3009_v49 = vmul.f32 %v5826_v41, %v2874_v21 }
 0x1d2   : > { %v2747_v10 = vmul.f32 0.5, %v2702_v51  ;;  %v2457_v26 = vadd.f32 %v2456_v37, %v2241_v3  ;;  %v2923_v29 = vsub.f32 1.0, %v7163_v16  ;;  %v7170_v56 = vadd.f32 %v7019_v31, %v2606_v6  ;;  %v2282_v15 = vpop.f32.mrf.mxu1 }
 0x1d3   : > { %v5299_v43 = vpop.f32.mrf.mxu0  ;;  %v7176_v37 = vsel %vm2828_vm5, %v7042_v24, %v3008_v17  ;;  %v7179_v3 = vsel %vm2829_vm6, %v7051_v62, %v3009_v49 }
 0x1d4   : > { %5841 = vtanh.f32 %v2747_v10  ;;  %v2607_v50 = vmul.f32 %v7014_v13, %v2457_v26  ;;  %8240 = vst [vmem:[#allocation22_spill] sm:$0xff] %v7176_v37  ;;  %8241 = vst [vmem:[#allocation23_spill] sm:$0xff] %v7179_v3  ;;  %v2703_v27 = vmin.f32 %v7170_v56, 0.0  ;;  %v7184_v60 = vpop.f32.mrf.mxu1  ;;  %v2249_v26 = vadd.f32 %v7057_v1, %v6938_v33 }
 0x1d5   : > { %v7181_v11 = vpop.eup %5829  ;;  %5843 = vrcp.f32 %v2923_v29  ;;  %v2461_v30 = vpop.f32.mrf.mxu0  ;;  %vm2838_vm15 = vcmp.gt.f32.partialorder %v7170_v56, 0.0 }
 0x1d6   : > { %v7189_v21 = vadd.f32 %v7019_v31, %v2607_v50  ;;  %v2462_v41 = vadd.f32 %v2461_v30, %v2246_v48  ;;  %v2924_v24 = vsub.f32 1.0, %v7181_v11  ;;  %v2748_v17 = vmul.f32 0.5, %v2703_v27  ;;  %v2287_v62 = vpop.f32.mrf.mxu1  ;;  %v5832_v10 = vpop.eup %5831 }
 0x1d7   : > { %v5302_v6 = vpop.f32.mrf.mxu0  ;;  %v2875_v50 = vmul.f32 2.0, %v7113_v23  ;;  %v2876_v48 = vmul.f32 2.0, %v7126_v47 }
 0x1d8   : > { %v2704_v49 = vmin.f32 %v7189_v21, 0.0  ;;  %v2608_v29 = vmul.f32 %v7014_v13, %v2462_v41  ;;  %5845 = vtanh.f32 %v2748_v17  ;;  %v7196_v15 = vpop.f32.mrf.mxu1  ;;  %vm2839_vm0 = vcmp.gt.f32.partialorder %v7189_v21, 0.0 }
 0x1d9   : > { %v2464_v43 = vpop.f32.mrf.mxu0  ;;  %v5834_v30 = vpop.eup %5833  ;;  %5847 = vrcp.f32 %v2924_v24  ;;  %v3010_v41 = vmul.f32 %v5832_v10, %v2875_v50 }
 0x1da   : > { %v2749_v27 = vmul.f32 0.5, %v2704_v49  ;;  %v7201_v62 = vadd.f32 %v7019_v31, %v2608_v29  ;;  %v2465_v6 = vadd.f32 %v2464_v43, %v2249_v26  ;;  %v7203_v51 = vpop.eup %5835  ;;  %v2290_v33 = vpop.f32.mrf.mxu1  ;;  %v3011_v17 = vmul.f32 %v5834_v30, %v2876_v48 }
 0x1db   : > { %v5303_v1 = vpop.f32.mrf.mxu0  ;;  %v2925_v40 = vsub.f32 1.0, %v7203_v51  ;;  %v2254_v49 = vadd.f32 %v7068_v7, %v6945_v42  ;;  %v2877_v33 = vmul.f32 2.0, %v7148_v45 }
 0x1dc   : > { %5849 = vtanh.f32 %v2749_v27  ;;  %v2705_v23 = vmin.f32 %v7201_v62, 0.0  ;;  %v2609_v26 = vmul.f32 %v7014_v13, %v2465_v6  ;;  %v7213_v29 = vpop.f32.mrf.mxu1  ;;  %v7216_v10 = vsel %vm2831_vm7, %v7072_v52, %v3011_v17 }
 0x1dd   : > { %v7208_v47 = vpop.eup %5837  ;;  %v2469_v24 = vpop.f32.mrf.mxu0  ;;  %8242 = vst [vmem:[#allocation24_spill] sm:$0xff] %v7216_v10  ;;  %5851 = vrcp.f32 %v2925_v40  ;;  %v7224_v6 = vsel %vm2830_vm8, %v7060_v12, %v3010_v41  ;;  %v2257_v52 = vadd.f32 %v7078_v57, %v6952_v46  ;;  %v2878_v41 = vmul.f32 2.0, %v7163_v16 }
 0x1de   : > { %v2926_v43 = vsub.f32 1.0, %v7208_v47  ;;  %v2750_v50 = vmul.f32 0.5, %v2705_v23  ;;  %v5840_v48 = vpop.eup %5839  ;;  %v7221_v30 = vadd.f32 %v7019_v31, %v2609_v26  ;;  %v2470_v27 = vadd.f32 %v2469_v24, %v2254_v49  ;;  %v2295_v42 = vpop.f32.mrf.mxu1  ;;  %8243 = vst [vmem:[#allocation25_spill] sm:$0xff] %v7224_v6 }
 0x1df   : > { %v5306_v7 = vpop.f32.mrf.mxu0  ;;  %v3012_v45 = vmul.f32 %v5840_v48, %v2877_v33  ;;  %vm2840_vm3 = vcmp.gt.f32.partialorder %v7201_v62, 0.0 }
 0x1e0   : > { %5853 = vrcp.f32 %v2926_v43  ;;  %v2706_v17 = vmin.f32 %v7221_v30, 0.0  ;;  %v2610_v23 = vmul.f32 %v7014_v13, %v2470_v27  ;;  %v7235_v49 = vpop.f32.mrf.mxu1  ;;  %v2262_v27 = vadd.f32 %v7089_v25, %v6957_v55 }
 0x1e1   : > { %v7231_v1 = vpop.eup %5841  ;;  %5855 = vtanh.f32 %v2750_v50  ;;  %v2472_v12 = vpop.f32.mrf.mxu0  ;;  %v7259_v25 = vsel %vm2832_vm10, %v7081_v0, %v3012_v45  ;;  %v2265_v0 = vadd.f32 %v7101_v35, %v6962_v61  ;;  %vm2841_vm2 = vcmp.gt.f32.partialorder %v7221_v30, 0.0 }
 0x1e2   : > { %v5844_v26 = vpop.eup %5843  ;;  %v2927_v46 = vsub.f32 1.0, %v7231_v1  ;;  %v2473_v57 = vadd.f32 %v2472_v12, %v2257_v52  ;;  %v2751_v24 = vmul.f32 0.5, %v2706_v17  ;;  %v7240_v43 = vadd.f32 %v7019_v31, %v2610_v23  ;;  %v2298_v42 = vpop.f32.mrf.mxu1 }
 0x1e3   : > { %v5307_v50 = vpop.f32.mrf.mxu0  ;;  %v3013_v7 = vmul.f32 %v5844_v26, %v2878_v41 }
 0x1e4   : > { %5857 = vrcp.f32 %v2927_v46  ;;  %v2611_v16 = vmul.f32 %v7014_v13, %v2473_v57  ;;  %v2707_v48 = vmin.f32 %v7240_v43, 0.0  ;;  %v7248_v52 = vpop.f32.mrf.mxu1  ;;  %vm2842_vm5 = vcmp.gt.f32.partialorder %v7240_v43, 0.0 }
 0x1e5   : > { %5859 = vtanh.f32 %v2751_v24  ;;  %v2477_v33 = vpop.f32.mrf.mxu0  ;;  %v7251_v17 = vsel %vm2833_vm9, %v7093_v38, %v3013_v7  ;;  %v7253_v23 = vpop.eup %5845  ;;  %v5803_v7 = vld [vmem:[%s8244_s30 + $0x4] ss:$12 sps:$4 sm:$0xff]   ;;  %v2302_v37 = vadd.f32 %v7248_v52, %v6799_v4 }
 0x1e6   : > { %v7256_v12 = vadd.f32 %v7019_v31, %v2611_v16  ;;  %v2478_v55 = vadd.f32 %v2477_v33, %v2262_v27  ;;  %v2928_v41 = vsub.f32 1.0, %v7253_v23  ;;  %v2752_v26 = vmul.f32 0.5, %v2707_v48  ;;  %v2303_v46 = vpop.f32.mrf.mxu1  ;;  %v5848_v42 = vpop.eup %5847  ;;  %3179 = vmatprep.mubr.bf16.mxu1 %v5803_v7 }
 0x1e7   : > { %v5310_v57 = vpop.f32.mrf.mxu0  ;;  %v2879_v48 = vmul.f32 2.0, %v7181_v11  ;;  %v2880_v33 = vmul.f32 2.0, %v7203_v51  ;;  %v2270_v11 = vadd.f32 %v7111_v59, %v6967_v9  ;;  %v2881_v59 = vmul.f32 2.0, %v7208_v47 }
 0x1e8   : > { %v2708_v38 = vmin.f32 %v7256_v12, 0.0  ;;  %v2612_v50 = vmul.f32 %v7014_v13, %v2478_v55  ;;  %5861 = vrcp.f32 %v2928_v41  ;;  %v7273_v45 = vpop.f32.mrf.mxu1  ;;  %vm2843_vm4 = vcmp.gt.f32.partialorder %v7256_v12, 0.0 }
 0x1e9   : > { %v7269_v27 = vpop.eup %5849  ;;  %v2480_v16 = vpop.f32.mrf.mxu0  ;;  %5863 = vtanh.f32 %v2752_v26  ;;  %v3014_v24 = vmul.f32 %v5848_v42, %v2879_v48 }
 0x1ea   : > { %v2929_v46 = vsub.f32 1.0, %v7269_v27  ;;  %v2753_v55 = vmul.f32 0.5, %v2708_v38  ;;  %v7279_v57 = vadd.f32 %v7019_v31, %v2612_v50  ;;  %v5852_v40 = vpop.eup %5851  ;;  %v2481_v61 = vadd.f32 %v2480_v16, %v2265_v0  ;;  %v2306_v35 = vpop.f32.mrf.mxu1 }
 0x1eb   : > { %v5311_v41 = vpop.f32.mrf.mxu0  ;;  %v3015_v28 = vmul.f32 %v5852_v40, %v2880_v33  ;;  %v2273_v38 = vadd.f32 %v7124_v36, %v6972_v20  ;;  %v2882_v40 = vmul.f32 2.0, %v7231_v1 }
 0x1ec   : > { %5865 = vrcp.f32 %v2929_v46  ;;  %v2709_v51 = vmin.f32 %v7279_v57, 0.0  ;;  %v2613_v50 = vmul.f32 %v7014_v13, %v2481_v61  ;;  %v7289_v7 = vpop.f32.mrf.mxu1  ;;  %v7302_v46 = vsel %vm2834_vm11, %v7105_v53, %v3014_v24 }
 0x1ed   : > { %v5854_v26 = vpop.eup %5853  ;;  %5867 = vtanh.f32 %v2753_v55  ;;  %v2485_v0 = vpop.f32.mrf.mxu0  ;;  %v7307_v55 = vsel %vm2835_vm12, %v7120_v2, %v3015_v28  ;;  %vm2844_vm6 = vcmp.gt.f32.partialorder %v7279_v57, 0.0 }
 0x1ee   : > { %v7291_v42 = vpop.eup %5855  ;;  %v2754_v16 = vmul.f32 0.5, %v2709_v51  ;;  %v2486_v9 = vadd.f32 %v2485_v0, %v2270_v11  ;;  %v7297_v33 = vadd.f32 %v7019_v31, %v2613_v50  ;;  %v2311_v20 = vpop.f32.mrf.mxu1  ;;  %v3016_v1 = vmul.f32 %v5854_v26, %v2881_v59 }
 0x1ef   : > { %v2930_v48 = vsub.f32 1.0, %v7291_v42  ;;  %v5314_v36 = vpop.f32.mrf.mxu0 }
 0x1f0   : > { %5869 = vtanh.f32 %v2754_v16  ;;  %v2614_v47 = vmul.f32 %v7014_v13, %v2486_v9  ;;  %v2710_v41 = vmin.f32 %v7297_v33, 0.0  ;;  %v7313_v11 = vpop.f32.mrf.mxu1  ;;  %vm2845_vm7 = vcmp.gt.f32.partialorder %v7297_v33, 0.0 }
 0x1f1   : > { %v5858_v35 = vpop.eup %5857  ;;  %v2488_v51 = vpop.f32.mrf.mxu0  ;;  %5871 = vrcp.f32 %v2930_v48  ;;  %v7326_v48 = vsel %vm2836_vm13, %v7130_v63, %v3016_v1  ;;  %v2883_v63 = vmul.f32 2.0, %v7253_v23 }
 0x1f2   : > { %v7315_v53 = vpop.eup %5859  ;;  %v7318_v24 = vadd.f32 %v7019_v31, %v2614_v47  ;;  %v2489_v2 = vadd.f32 %v2488_v51, %v2273_v38  ;;  %v3017_v28 = vmul.f32 %v5858_v35, %v2882_v40  ;;  %v2755_v50 = vmul.f32 0.5, %v2710_v41  ;;  %v2314_v0 = vpop.f32.mrf.mxu1 }
 0x1f3   : > { %v2931_v26 = vsub.f32 1.0, %v7315_v53  ;;  %v5315_v16 = vpop.f32.mrf.mxu0  ;;  %v2278_v38 = vadd.f32 %v7144_v58, %v6977_v32  ;;  %v2281_v32 = vadd.f32 %v7161_v19, %v6984_v44  ;;  %v2286_v19 = vadd.f32 %v7184_v60, %v6991_v54 }
 0x1f4   : > { %v2711_v9 = vmin.f32 %v7318_v24, 0.0  ;;  %v2615_v59 = vmul.f32 %v7014_v13, %v2489_v2  ;;  %v7329_v20 = vsel %vm2837_vm14, %v7151_v34, %v3017_v28  ;;  %v7333_v40 = vpop.f32.mrf.mxu1  ;;  %vm2846_vm9 = vcmp.gt.f32.partialorder %v7318_v24, 0.0 }
 0x1f5   : > { %5873 = vrcp.f32 %v2931_v26  ;;  %v2493_v36 = vpop.f32.mrf.mxu0  ;;  %v5862_v35 = vpop.eup %5861  ;;  %v2884_v26 = vmul.f32 2.0, %v7269_v27 }
 0x1f6   : > { %5875 = vtanh.f32 %v2755_v50  ;;  %v2756_v41 = vmul.f32 0.5, %v2711_v9  ;;  %v7338_v51 = vadd.f32 %v7019_v31, %v2615_v59  ;;  %v7341_v34 = vpop.eup %5863  ;;  %v2494_v58 = vadd.f32 %v2493_v36, %v2278_v38  ;;  %v2319_v1 = vpop.f32.mrf.mxu1 }
 0x1f7   : > { %v5318_v2 = vpop.f32.mrf.mxu0  ;;  %v3018_v50 = vmul.f32 %v5862_v35, %v2883_v63  ;;  %v2932_v59 = vsub.f32 1.0, %v7341_v34 }
 0x1f8   : > { %5877 = vtanh.f32 %v2756_v41  ;;  %v2712_v28 = vmin.f32 %v7338_v51, 0.0  ;;  %v2616_v16 = vmul.f32 %v7014_v13, %v2494_v58  ;;  %v7349_v23 = vpop.f32.mrf.mxu1  ;;  %vm2847_vm8 = vcmp.gt.f32.partialorder %v7338_v51, 0.0 }
 0x1f9   : > { %v5866_v0 = vpop.eup %5865  ;;  %v2496_v9 = vpop.f32.mrf.mxu0  ;;  %5879 = vrcp.f32 %v2932_v59  ;;  %v7365_v54 = vsel %vm2838_vm15, %v7170_v56, %v3018_v50 }
 0x1fa   : > { %v7352_v44 = vpop.eup %5867  ;;  %v2757_v38 = vmul.f32 0.5, %v2712_v28  ;;  %v2497_v36 = vadd.f32 %v2496_v9, %v2281_v32  ;;  %v3019_v41 = vmul.f32 %v5866_v0, %v2884_v26  ;;  %v7358_v27 = vadd.f32 %v7019_v31, %v2616_v16  ;;  %v2322_v35 = vpop.f32.mrf.mxu1 }
 0x1fb   : > { %v5319_v63 = vpop.f32.mrf.mxu0  ;;  %v2933_v58 = vsub.f32 1.0, %v7352_v44 }
 0x1fc   : > { %5881 = vtanh.f32 %v2757_v38  ;;  %v2617_v1 = vmul.f32 %v7014_v13, %v2497_v36  ;;  %v7368_v60 = vsel %vm2839_vm0, %v7189_v21, %v3019_v41  ;;  %v2713_v2 = vmin.f32 %v7358_v27, 0.0  ;;  %v7373_v28 = vpop.f32.mrf.mxu1 }
 0x1fd   : > { %v7370_v32 = vpop.eup %5869  ;;  %v2501_v26 = vpop.f32.mrf.mxu0  ;;  %5883 = vrcp.f32 %v2933_v58  ;;  %v2289_v36 = vadd.f32 %v7196_v15, %v6996_v5  ;;  %v2885_v63 = vmul.f32 2.0, %v7291_v42  ;;  %vm2848_vm11 = vcmp.gt.f32.partialorder %v7358_v27, 0.0 }
 0x1fe   : > { %v7378_v16 = vadd.f32 %v7019_v31, %v2617_v1  ;;  %v2502_v9 = vadd.f32 %v2501_v26, %v2286_v19  ;;  %v5872_v56 = vpop.eup %5871  ;;  %v2758_v50 = vmul.f32 0.5, %v2713_v2  ;;  %v2327_v59 = vpop.f32.mrf.mxu1  ;;  %v2934_v38 = vsub.f32 1.0, %v7370_v32 }
 0x1ff   : > { %v5322_v21 = vpop.f32.mrf.mxu0  ;;  %v2886_v19 = vmul.f32 2.0, %v7315_v53  ;;  %v3020_v61 = vmul.f32 %v5872_v56, %v2885_v63 }
 0x200   : > { %v2714_v41 = vmin.f32 %v7378_v16, 0.0  ;;  %v2618_v35 = vmul.f32 %v7014_v13, %v2502_v9  ;;  %5885 = vtanh.f32 %v2758_v50  ;;  %v7386_v58 = vpop.f32.mrf.mxu1  ;;  %vm2849_vm10 = vcmp.gt.f32.partialorder %v7378_v16, 0.0 }
 0x201   : > { %v2504_v1 = vpop.f32.mrf.mxu0  ;;  %5887 = vrcp.f32 %v2934_v38  ;;  %v7410_v63 = vsel %vm2840_vm3, %v7201_v62, %v3020_v61 }
 0x202   : > { %v5874_v2 = vpop.eup %5873  ;;  %v2759_v26 = vmul.f32 0.5, %v2714_v41  ;;  %v7390_v59 = vadd.f32 %v7019_v31, %v2618_v35  ;;  %v2505_v21 = vadd.f32 %v2504_v1, %v2289_v36  ;;  %v2330_v15 = vpop.f32.mrf.mxu1 }
 0x203   : > { %v7392_v5 = vpop.eup %5875  ;;  %v5323_v47 = vpop.f32.mrf.mxu0  ;;  %v3021_v9 = vmul.f32 %v5874_v2, %v2886_v19 }
 0x204   : > { %5889 = vtanh.f32 %v2759_v26  ;;  %v2715_v42 = vmin.f32 %v7390_v59, 0.0  ;;  %v2619_v53 = vmul.f32 %v7014_v13, %v2505_v21  ;;  %v7400_v41 = vpop.f32.mrf.mxu1  ;;  %v2935_v47 = vsub.f32 1.0, %v7392_v5 }
 0x205   : > { %v7397_v50 = vpop.eup %5877  ;;  %v2509_v56 = vpop.f32.mrf.mxu0  ;;  %v7403_v36 = vsel %vm2841_vm2, %v7221_v30, %v3021_v9  ;;  %v2297_v30 = vadd.f32 %v7235_v49, %v7004_v39  ;;  %v2887_v9 = vmul.f32 2.0, %v7341_v34  ;;  %v2294_v39 = vadd.f32 %v7213_v29, %v7000_v22 }
 0x206   : > { %v2760_v38 = vmul.f32 0.5, %v2715_v42  ;;  %v7407_v35 = vadd.f32 %v7019_v31, %v2619_v53  ;;  %v2335_v1 = vpop.f32.mrf.mxu1  ;;  %v2936_v26 = vsub.f32 1.0, %v7397_v50  ;;  %5891 = vrcp.f32 %v2935_v47  ;;  %v5880_v21 = vpop.eup %5879 }
 0x207   : > { %v5326_v19 = vpop.f32.mrf.mxu0  ;;  %v2888_v53 = vmul.f32 2.0, %v7352_v44  ;;  %v3022_v0 = vmul.f32 %v5880_v21, %v2887_v9  ;;  %v2510_v44 = vadd.f32 %v2509_v56, %v2294_v39  ;;  %v2889_v39 = vmul.f32 2.0, %v7370_v32 }
 0x208   : > { %5893 = vtanh.f32 %v2760_v38  ;;  %v2716_v15 = vmin.f32 %v7407_v35, 0.0  ;;  %v7421_v62 = vpop.f32.mrf.mxu1  ;;  %vm2851_vm12 = vcmp.gt.f32.partialorder %v7407_v35, 0.0  ;;  %vm2850_vm13 = vcmp.gt.f32.partialorder %v7390_v59, 0.0 }
 0x209   : > { %v7419_v42 = vpop.eup %5881  ;;  %v2512_v61 = vpop.f32.mrf.mxu0  ;;  %5895 = vrcp.f32 %v2936_v26  ;;  %v7440_v4 = vsel %vm2842_vm5, %v7240_v43, %v3022_v0  ;;  %v2620_v43 = vmul.f32 %v7014_v13, %v2510_v44  ;;  %v2310_v44 = vadd.f32 %v7289_v7, %v6819_v14 }
 0x20a   : > { %v5884_v1 = vpop.eup %5883  ;;  %v2761_v19 = vmul.f32 0.5, %v2716_v15  ;;  %v2513_v47 = vadd.f32 %v2512_v61, %v2297_v30  ;;  %v2338_v49 = vpop.f32.mrf.mxu1  ;;  %v2937_v2 = vsub.f32 1.0, %v7419_v42  ;;  %8246 = vst [vmem:[#allocation27_spill] sm:$0xff] %v7440_v4  ;;  %v2313_v14 = vadd.f32 %v7313_v11, %v6826_v18 }
 0x20b   : > { %v5327_v38 = vpop.f32.mrf.mxu0  ;;  %v3023_v34 = vmul.f32 %v5884_v1, %v2888_v53 }
 0x20c   : > { %5897 = vtanh.f32 %v2761_v19  ;;  %v2621_v26 = vmul.f32 %v7014_v13, %v2513_v47  ;;  %v7431_v15 = vpop.f32.mrf.mxu1 }
 0x20d   : > { %v2517_v21 = vpop.f32.mrf.mxu0  ;;  %5899 = vrcp.f32 %v2937_v2  ;;  %v7435_v22 = vsel %vm2843_vm4, %v7256_v12, %v3023_v34  ;;  %v7437_v29 = vpop.eup %5885  ;;  %v2305_v12 = vadd.f32 %v7273_v45, %v6806_v8 }
 0x20e   : > { %8245 = vst [vmem:[#allocation26_spill] sm:$0xff] %v7435_v22  ;;  %v2518_v30 = vadd.f32 %v2517_v21, %v2302_v37  ;;  %v7443_v52 = vadd.f32 %v7019_v31, %v2621_v26  ;;  %v2343_v9 = vpop.f32.mrf.mxu1  ;;  %v2938_v61 = vsub.f32 1.0, %v7437_v29  ;;  %v5888_v53 = vpop.eup %5887  ;;  %v2890_v26 = vmul.f32 2.0, %v7392_v5 }
 0x20f   : > { %v5330_v56 = vpop.f32.mrf.mxu0  ;;  %v3024_v32 = vmul.f32 %v5888_v53, %v2889_v39  ;;  %v2891_v53 = vmul.f32 2.0, %v7397_v50 }
 0x210   : > { %v2622_v1 = vmul.f32 %v7014_v13, %v2518_v30  ;;  %v7454_v0 = vpop.f32.mrf.mxu1  ;;  %5901 = vrcp.f32 %v2938_v61  ;;  %v2718_v49 = vmin.f32 %v7443_v52, 0.0  ;;  %v7470_v56 = vadd.f32 %v7019_v31, %v2620_v43 }
 0x211   : > { %v7451_v37 = vpop.eup %5889  ;;  %v2520_v19 = vpop.f32.mrf.mxu0  ;;  %v7498_v50 = vsel %vm2844_vm6, %v7279_v57, %v3024_v32  ;;  %v7511_v57 = vld [vmem:[%s8237_s7] ss:$0 sm:$0xff]  ;;  %vm2853_vm0 = vcmp.gt.f32.partialorder %v7443_v52, 0.0 }
 0x212   : > { %v2521_v47 = vadd.f32 %v2520_v19, %v2305_v12  ;;  %v7459_v38 = vadd.f32 %v7019_v31, %v2622_v1  ;;  %v2346_v34 = vpop.f32.mrf.mxu1  ;;  %v2939_v45 = vsub.f32 1.0, %v7451_v37  ;;  %v2763_v19 = vmul.f32 0.5, %v2718_v49 }
 0x213   : > { %v5331_v8 = vpop.f32.mrf.mxu0  ;;  %v5892_v21 = vpop.eup %5891  ;;  %vm2852_vm4 = vcmp.gt.f32.partialorder %v7470_v56, 0.0 }
 0x214   : > { %v2623_v30 = vmul.f32 %v7014_v13, %v2521_v47  ;;  %v7472_v61 = vpop.f32.mrf.mxu1  ;;  %5903 = vrcp.f32 %v2939_v45  ;;  %v3025_v5 = vmul.f32 %v5892_v21, %v2890_v26  ;;  %v2719_v43 = vmin.f32 %v7459_v38, 0.0  ;;  %v8248_v45 = vld [vmem:[#allocation7_spill] sm:$0xff] }
 0x215   : > { %v7467_v9 = vpop.eup %5893  ;;  %v2525_v12 = vpop.f32.mrf.mxu0  ;;  %v2318_v26 = vadd.f32 %v7333_v40, %v8248_v45  ;;  %8249 = vst [vmem:[#allocation7_spill] sm:$0xff] %v7498_v50  ;;  %vm2854_vm3 = vcmp.gt.f32.partialorder %v7459_v38, 0.0 }
 0x216   : > { %v5896_v1 = vpop.eup %5895  ;;  %v7478_v13 = vadd.f32 %v7019_v31, %v2623_v30  ;;  %v2526_v7 = vadd.f32 %v2525_v12, %v2310_v44  ;;  %v2351_v47 = vpop.f32.mrf.mxu1  ;;  %v2940_v34 = vsub.f32 1.0, %v7467_v9  ;;  %v7484_v8 = vsel %vm2845_vm7, %v7297_v33, %v3025_v5  ;;  %v7492_v31 = vld [vmem:[%s8236_s3] ss:$0 sm:$0xff] }
 0x217   : > { %v5334_v39 = vpop.f32.mrf.mxu0  ;;  %8247 = vst [vmem:[#allocation28_spill] sm:$0xff] %v7484_v8  ;;  %v2717_v33 = vmin.f32 %v7470_v56, 0.0  ;;  %v2892_v44 = vmul.f32 2.0, %v7419_v42  ;;  %v3026_v30 = vmul.f32 %v5896_v1, %v2891_v53 }
 0x218   : > { %v2720_v18 = vmin.f32 %v7478_v13, 0.0  ;;  %v2624_v11 = vmul.f32 %v7492_v31, %v2526_v7  ;;  %v7503_v21 = vpop.f32.mrf.mxu1  ;;  %5905 = vrcp.f32 %v2940_v34  ;;  %v2764_v39 = vmul.f32 0.5, %v2719_v43 }
 0x219   : > { %v7500_v49 = vpop.eup %5897  ;;  %v2528_v40 = vpop.f32.mrf.mxu0  ;;  %5907 = vtanh.f32 %v2763_v19  ;;  %vm2855_vm14 = vcmp.gt.f32.partialorder %v7478_v13, 0.0 }
 0x21a   : > { %v5900_v5 = vpop.eup %5899  ;;  %v2765_v7 = vmul.f32 0.5, %v2720_v18  ;;  %v7514_v32 = vadd.f32 %v7511_v57, %v2624_v11  ;;  %v2529_v47 = vadd.f32 %v2528_v40, %v2313_v14  ;;  %v2354_v45 = vpop.f32.mrf.mxu1  ;;  %v2941_v1 = vsub.f32 1.0, %v7500_v49 }
 0x21b   : > { %v5335_v42 = vpop.f32.mrf.mxu0  ;;  %v3027_v53 = vmul.f32 %v5900_v5, %v2892_v44  ;;  %v7530_v40 = vsel %vm2846_vm9, %v7318_v24, %v3026_v30  ;;  %v8250_v5 = vld [vmem:[#allocation8_spill] sm:$0xff] }
 0x21c   : > { %5909 = vtanh.f32 %v2765_v7  ;;  %v2721_v18 = vmin.f32 %v7514_v32, 0.0  ;;  %v2625_v2 = vmul.f32 %v7492_v31, %v2529_v47  ;;  %v7520_v12 = vpop.f32.mrf.mxu1  ;;  %v2321_v7 = vadd.f32 %v7349_v23, %v8250_v5  ;;  %v8251_v5 = vld [vmem:[#allocation9_spill] sm:$0xff] }
 0x21d   : > { %v2533_v11 = vpop.f32.mrf.mxu0  ;;  %5911 = vrcp.f32 %v2941_v1  ;;  %v7524_v14 = vsel %vm2847_vm8, %v7338_v51, %v3027_v53  ;;  %v5902_v44 = vpop.eup %5901  ;;  %v2762_v47 = vmul.f32 0.5, %v2717_v33  ;;  %v2894_v53 = vmul.f32 2.0, %v7451_v37 }
 0x21e   : > { %v2766_v19 = vmul.f32 0.5, %v2721_v18  ;;  %v7527_v43 = vadd.f32 %v7511_v57, %v2625_v2  ;;  %v2534_v34 = vadd.f32 %v2533_v11, %v2318_v26  ;;  %5913 = vtanh.f32 %v2764_v39  ;;  %v2359_v45 = vpop.f32.mrf.mxu1 }
 0x21f   : > { %v5338_v42 = vpop.f32.mrf.mxu0  ;;  %v2893_v26 = vmul.f32 2.0, %v7437_v29  ;;  %vm2856_vm15 = vcmp.gt.f32.partialorder %v7514_v32, 0.0 }
 0x220   : > { %5915 = vtanh.f32 %v2766_v19  ;;  %v2722_v1 = vmin.f32 %v7527_v43, 0.0  ;;  %v2626_v2 = vmul.f32 %v7492_v31, %v2534_v34  ;;  %v7539_v24 = vpop.f32.mrf.mxu1  ;;  %v2326_v19 = vadd.f32 %v7373_v28, %v8251_v5 }
 0x221   : > { %v2536_v30 = vpop.f32.mrf.mxu0  ;;  %v5904_v23 = vpop.eup %5903  ;;  %v3028_v11 = vmul.f32 %v5902_v44, %v2893_v26  ;;  %5917 = vtanh.f32 %v2762_v47  ;;  %vm2857_vm2 = vcmp.gt.f32.partialorder %v7527_v43, 0.0 }
 0x222   : > { %v2767_v33 = vmul.f32 0.5, %v2722_v1  ;;  %v7543_v39 = vadd.f32 %v7511_v57, %v2626_v2  ;;  %v2537_v18 = vadd.f32 %v2536_v30, %v2321_v7  ;;  %v2362_v45 = vpop.f32.mrf.mxu1  ;;  %v3029_v42 = vmul.f32 %v5904_v23, %v2894_v53  ;;  %v8252_v30 = vld [vmem:[#allocation10_spill] sm:$0xff] }
 0x223   : > { %v5339_v34 = vpop.f32.mrf.mxu0  ;;  %v7560_v2 = vsel %vm2848_vm11, %v7358_v27, %v3028_v11  ;;  %v2329_v53 = vadd.f32 %v7386_v58, %v8252_v30  ;;  %v2896_v45 = vmul.f32 2.0, %v7500_v49 }
 0x224   : > { %5919 = vtanh.f32 %v2767_v33  ;;  %v2723_v29 = vmin.f32 %v7543_v39, 0.0  ;;  %v2627_v51 = vmul.f32 %v7492_v31, %v2537_v18  ;;  %v7550_v37 = vpop.f32.mrf.mxu1  ;;  %v7554_v44 = vsel %vm2849_vm10, %v7378_v16, %v3029_v42 }
 0x225   : > { %v2541_v1 = vpop.f32.mrf.mxu0  ;;  %v5906_v26 = vpop.eup %5905  ;;  %vm2858_vm5 = vcmp.gt.f32.partialorder %v7543_v39, 0.0 }
 0x226   : > { %v2768_v28 = vmul.f32 0.5, %v2723_v29  ;;  %v7557_v7 = vadd.f32 %v7511_v57, %v2627_v51  ;;  %v2542_v47 = vadd.f32 %v2541_v1, %v2326_v19  ;;  %v2367_v18 = vpop.f32.mrf.mxu1  ;;  %v7566_v5 = vpop.eup %5907  ;;  %v2895_v19 = vmul.f32 2.0, %v7467_v9 }
 0x227   : > { %v5342_v23 = vpop.f32.mrf.mxu0  ;;  %v2898_v6 = vmul.f32 2.0, %v7566_v5 }
 0x228   : > { %5921 = vtanh.f32 %v2768_v28  ;;  %v2724_v16 = vmin.f32 %v7557_v7, 0.0  ;;  %v2628_v51 = vmul.f32 %v7492_v31, %v2542_v47  ;;  %v2368_v58 = vpop.f32.mrf.mxu1  ;;  %v3030_v30 = vmul.f32 %v5906_v26, %v2895_v19  ;;  %v8253_v28 = vld [vmem:[#allocation11_spill] sm:$0xff] }
 0x229   : > { %v7571_v27 = vpop.eup %5909  ;;  %v2544_v11 = vpop.f32.mrf.mxu0  ;;  %v2334_v23 = vadd.f32 %v7400_v41, %v8253_v28  ;;  %vm2859_vm6 = vcmp.gt.f32.partialorder %v7557_v7, 0.0 }
 0x22a   : > { %v5912_v34 = vpop.eup %5911  ;;  %v2769_v42 = vmul.f32 0.5, %v2724_v16  ;;  %v7575_v29 = vadd.f32 %v7511_v57, %v2628_v51  ;;  %v2545_v1 = vadd.f32 %v2544_v11, %v2329_v53  ;;  %v2945_v47 = vsub.f32 1.0, %v7571_v27  ;;  %v2369_v33 = vpop.f32.mrf.mxu1 }
 0x22b   : > { %v5343_v18 = vpop.f32.mrf.mxu0  ;;  %v3031_v9 = vmul.f32 %v5912_v34, %v2896_v45  ;;  %v7580_v4 = vpop.eup %5913  ;;  %v2943_v53 = vsub.f32 1.0, %v7566_v5  ;;  %v7596_v45 = vsel %vm2850_vm13, %v7390_v59, %v3030_v30 }
 0x22c   : > { %5923 = vtanh.f32 %v2769_v42  ;;  %v2725_v49 = vmin.f32 %v7575_v29, 0.0  ;;  %v2629_v16 = vmul.f32 %v7492_v31, %v2545_v1  ;;  %v2944_v42 = vsub.f32 1.0, %v7580_v4 }
 0x22d   : > { %v7585_v51 = vpop.eup %5915  ;;  %v2549_v26 = vpop.f32.mrf.mxu0  ;;  %v7590_v41 = vsel %vm2851_vm12, %v7407_v35, %v3031_v9  ;;  %5925 = vrcp.f32 %v2945_v47  ;;  %v8254_v35 = vld [vmem:[#allocation12_spill] sm:$0xff]  ;;  %vm2860_vm7 = vcmp.gt.f32.partialorder %v7575_v29, 0.0 }
 0x22e   : > { %v2770_v33 = vmul.f32 0.5, %v2725_v49  ;;  %v7593_v19 = vadd.f32 %v7511_v57, %v2629_v16  ;;  %v2550_v11 = vadd.f32 %v2549_v26, %v2334_v23  ;;  %v2946_v34 = vsub.f32 1.0, %v7585_v51  ;;  %v7602_v28 = vpop.eup %5917 }
 0x22f   : > { %v5346_v58 = vpop.f32.mrf.mxu0  ;;  %v2337_v18 = vadd.f32 %v7421_v62, %v8254_v35  ;;  %v2942_v1 = vsub.f32 1.0, %v7602_v28  ;;  %v8256_v62 = vld [vmem:[#allocation13_spill] sm:$0xff] }
 0x230   : > { %5927 = vtanh.f32 %v2770_v33  ;;  %v2726_v23 = vmin.f32 %v7593_v19, 0.0  ;;  %v2630_v59 = vmul.f32 %v7492_v31, %v2550_v11  ;;  %v2342_v33 = vadd.f32 %v7431_v15, %v8256_v62 }
 0x231   : > { %v5920_v30 = vpop.eup %5919  ;;  %v2552_v9 = vpop.f32.mrf.mxu0  ;;  %5929 = vrcp.f32 %v2946_v34  ;;  %vm2861_vm8 = vcmp.gt.f32.partialorder %v7593_v19, 0.0 }
 0x232   : > { %v2771_v49 = vmul.f32 0.5, %v2726_v23  ;;  %v7609_v16 = vadd.f32 %v7511_v57, %v2630_v59  ;;  %v2553_v47 = vadd.f32 %v2552_v9, %v2337_v18  ;;  %5931 = vrcp.f32 %v2943_v53 }
 0x233   : > { %v5347_v26 = vpop.f32.mrf.mxu0  ;;  %v2947_v58 = vsub.f32 1.0, %v5920_v30  ;;  %5933 = vrcp.f32 %v2944_v42 }
 0x234   : > { %8255 = vst [vmem:[#allocation8_spill] sm:$0xff] %v7609_v16  ;;  %5935 = vtanh.f32 %v2771_v49  ;;  %v2727_v11 = vmin.f32 %v7609_v16, 0.0  ;;  %v2631_v35 = vmul.f32 %v7492_v31, %v2553_v47  ;;  %v8258_v26 = vld [vmem:[#allocation14_spill] sm:$0xff] }
 0x235   : > { %v7616_v34 = vpop.eup %5921  ;;  %v2557_v23 = vpop.f32.mrf.mxu0  ;;  %5937 = vrcp.f32 %v2947_v58  ;;  %v2345_v15 = vadd.f32 %v7454_v0, %v8258_v26 }
 0x236   : > { %v2948_v18 = vsub.f32 1.0, %v7616_v34  ;;  %v2772_v53 = vmul.f32 0.5, %v2727_v11  ;;  %v7620_v59 = vadd.f32 %v7511_v57, %v2631_v35  ;;  %v2558_v42 = vadd.f32 %v2557_v23, %v2342_v33 }
 0x237   : > { %v5350_v9 = vpop.f32.mrf.mxu0  ;;  %5939 = vrcp.f32 %v2942_v1 }
 0x238   : > { %8257 = vst [vmem:[#allocation9_spill] sm:$0xff] %v7620_v59  ;;  %5941 = vrcp.f32 %v2948_v18  ;;  %v2728_v49 = vmin.f32 %v7620_v59, 0.0  ;;  %v2632_v47 = vmul.f32 %v7492_v31, %v2558_v42 }
 0x239   : > { %v7626_v62 = vpop.eup %5923  ;;  %5943 = vtanh.f32 %v2772_v53  ;;  %v2560_v58 = vpop.f32.mrf.mxu0 }
 0x23a   : > { %v2949_v11 = vsub.f32 1.0, %v7626_v62  ;;  %v2773_v22 = vmul.f32 0.5, %v2728_v49  ;;  %v7630_v35 = vadd.f32 %v7511_v57, %v2632_v47  ;;  %v2561_v33 = vadd.f32 %v2560_v58, %v2345_v15  ;;  %v5926_v23 = vpop.eup %5925  ;;  %v8261_v58 = vld [vmem:[#allocation15_spill] sm:$0xff] }
 0x23b   : > { %v5351_v1 = vpop.f32.mrf.mxu0  ;;  %v2900_v15 = vmul.f32 2.0, %v7571_v27 }
 0x23c   : > { %8259 = vst [vmem:[#allocation10_spill] sm:$0xff] %v7630_v35  ;;  %5945 = vrcp.f32 %v2949_v11  ;;  %v2729_v0 = vmin.f32 %v7630_v35, 0.0  ;;  %v2633_v18 = vmul.f32 %v7492_v31, %v2561_v33  ;;  %v2350_v11 = vadd.f32 %v7472_v61, %v8261_v58  ;;  %v8262_v1 = vld [vmem:[#allocation16_spill] sm:$0xff] }
 0x23d   : > { %v7634_v9 = vpop.eup %5927  ;;  %5947 = vtanh.f32 %v2773_v22  ;;  %v2565_v42 = vpop.f32.mrf.mxu0  ;;  %v2353_v33 = vadd.f32 %v7503_v21, %v8262_v1  ;;  %v2901_v22 = vmul.f32 2.0, %v7585_v51  ;;  %v2902_v58 = vmul.f32 2.0, %v5920_v30  ;;  %v8263_v1 = vld [vmem:[#allocation17_spill] sm:$0xff] }
 0x23e   : > { %v5930_v53 = vpop.eup %5929  ;;  %v2950_v26 = vsub.f32 1.0, %v7634_v9  ;;  %v2774_v3 = vmul.f32 0.5, %v2729_v0  ;;  %v7638_v49 = vadd.f32 %v7511_v57, %v2633_v18  ;;  %v3035_v18 = vmul.f32 %v5926_v23, %v2900_v15 }
 0x23f   : > { %v5932_v47 = vpop.eup %5931  ;;  %v5354_v35 = vpop.f32.mrf.mxu0  ;;  %v3036_v21 = vmul.f32 %v5930_v53, %v2901_v22  ;;  %v2358_v8 = vadd.f32 %v7520_v12, %v8263_v1  ;;  %v2566_v53 = vadd.f32 %v2565_v42, %v2350_v11 }
 0x240   : > { %8260 = vst [vmem:[#allocation11_spill] sm:$0xff] %v7638_v49  ;;  %v5934_v50 = vpop.eup %5933  ;;  %5949 = vrcp.f32 %v2950_v26  ;;  %v2730_v0 = vmin.f32 %v7638_v49, 0.0  ;;  %v2899_v35 = vmul.f32 2.0, %v7580_v4  ;;  %v3080_v4 = vsel %vm2855_vm14, %v7478_v13, %v3035_v18 }
 0x241   : > { %v7650_v27 = vpop.eup %5935  ;;  %5951 = vtanh.f32 %v2774_v3  ;;  %v2568_v61 = vpop.f32.mrf.mxu0  ;;  %v2897_v3 = vmul.f32 2.0, %v7602_v28  ;;  %v3033_v12 = vmul.f32 %v5932_v47, %v2898_v6  ;;  %v3081_v5 = vsel %vm2856_vm15, %v7514_v32, %v3036_v21 }
 0x242   : > { %v5938_v51 = vpop.eup %5937  ;;  %v2951_v26 = vsub.f32 1.0, %v7650_v27  ;;  %v2775_v49 = vmul.f32 0.5, %v2730_v0  ;;  %v2569_v23 = vadd.f32 %v2568_v61, %v2353_v33  ;;  %v3034_v59 = vmul.f32 %v5934_v50, %v2899_v35  ;;  %v8264_v33 = vld [vmem:[#allocation18_spill] sm:$0xff] }
 0x243   : > { %v5355_v15 = vpop.f32.mrf.mxu0  ;;  %v3037_v10 = vmul.f32 %v5938_v51, %v2902_v58  ;;  %v2361_v0 = vadd.f32 %v7539_v24, %v8264_v33  ;;  %v2904_v24 = vmul.f32 2.0, %v7626_v62  ;;  %v2634_v11 = vmul.f32 %v7492_v31, %v2566_v53 }
 0x244   : > { %v5940_v16 = vpop.eup %5939  ;;  %5953 = vrcp.f32 %v2951_v26  ;;  %v2635_v13 = vmul.f32 %v7492_v31, %v2569_v23  ;;  %v8265_v18 = vpack.c.bf16 %v7403_v36, %v7410_v63  ;;  %vm3143_vm14 = vcmask 1043456  }
 0x245   : > { %v5942_v30 = vpop.eup %5941  ;;  %5955 = vtanh.f32 %v2775_v49  ;;  %v2573_v22 = vpop.f32.mrf.mxu0  ;;  %v3082_v50 = vsel %vm2857_vm2, %v7527_v43, %v3037_v10  ;;  %v3079_v49 = vsel %vm2854_vm3, %v7459_v38, %v3034_v59  ;;  %v3032_v47 = vmul.f32 %v5940_v16, %v2897_v3 }
 0x246   : > { %v7666_v28 = vpop.eup %5943  ;;  %v2574_v61 = vadd.f32 %v2573_v22, %v2358_v8  ;;  %v3115_v58 = vpack.c.bf16 %v3082_v50, %v3081_v5  ;;  %v3114_v10 = vpack.c.bf16 %v3080_v4, %v3079_v49  ;;  %v2903_v43 = vmul.f32 2.0, %v7616_v34 }
 0x247   : > { %v2952_v6 = vsub.f32 1.0, %v7666_v28  ;;  %v5358_v42 = vpop.f32.mrf.mxu0  ;;  %v3078_v38 = vsel %vm2853_vm0, %v7443_v52, %v3033_v12  ;;  %v7693_v63 = vadd.f32 %v7511_v57, %v2635_v13  ;;  %v3077_v1 = vsel %vm2852_vm4, %v7470_v56, %v3032_v47  ;;  %v8266_v52 = vld [vmem:[#allocation19_spill] sm:$0xff] }
 0x248   : > { %v2636_v32 = vmul.f32 %v7492_v31, %v2574_v61  ;;  %5153 = vmatprep.subr.bf16.mxu1 %v3115_v58  ;;  %v3038_v62 = vmul.f32 %v5942_v30, %v2903_v43  ;;  %v2366_v26 = vadd.f32 %v7550_v37, %v8266_v52  ;;  %v3113_v15 = vpack.c.bf16 %v3078_v38, %v3077_v1  ;;  %v8279_v52 = vld [vmem:[#allocation28_spill] sm:$0xff] }
 0x249   : > { %v5946_v8 = vpop.eup %5945  ;;  %5957 = vrcp.f32 %v2952_v6  ;;  %5154 = vmatpush3.bf16.msra.mxu1 %v8265_v18  ;;  %v2576_v21 = vpop.f32.mrf.mxu0  ;;  %v7701_v4 = vadd.f32 %v7511_v57, %v2634_v11  ;;  %v8267_v12 = vpack.c.bf16 %v7368_v60, %v7365_v54  ;;  %v2905_v56 = vmul.f32 2.0, %v7634_v9 }
 0x24a   : > { %v7685_v16 = vpop.eup %5947  ;;  %v7688_v34 = vadd.f32 %v7511_v57, %v2636_v32  ;;  %v2577_v59 = vadd.f32 %v2576_v21, %v2361_v0  ;;  %5155 = vmatprep.subr.bf16.mxu1 %v3114_v10  ;;  %v3039_v35 = vmul.f32 %v5946_v8, %v2904_v24  ;;  %v7717_v33 = vsel %vm2858_vm5, %v7543_v39, %v3038_v62 }
 0x24b   : > { %v2953_v36 = vsub.f32 1.0, %v7685_v16  ;;  %v5359_v51 = vpop.f32.mrf.mxu0  ;;  %v2732_v60 = vmin.f32 %v7693_v63, 0.0  ;;  %v2906_v58 = vmul.f32 2.0, %v7650_v27  ;;  %v2731_v42 = vmin.f32 %v7701_v4, 0.0 }
 0x24c   : > { %v2637_v23 = vmul.f32 %v7492_v31, %v2577_v59  ;;  %v7708_v53 = vsel %vm2859_vm6, %v7557_v7, %v3039_v35  ;;  %v2733_v37 = vmin.f32 %v7688_v34, 0.0  ;;  %v8268_v39 = vpack.c.bf16 %v7329_v20, %v7326_v48  ;;  %v8277_v51 = vld [vmem:[#allocation25_spill] sm:$0xff] }
 0x24d   : > { %v5950_v3 = vpop.eup %5949  ;;  %5959 = vrcp.f32 %v2953_v36  ;;  %5156 = vmatpush3.bf16.msra.mxu1 %v8267_v12  ;;  %v2581_v30 = vpop.f32.mrf.mxu0  ;;  %v3116_v7 = vpack.c.bf16 %v7708_v53, %v7717_v33  ;;  %v2777_v8 = vmul.f32 0.5, %v2732_v60  ;;  %v2776_v21 = vmul.f32 0.5, %v2731_v42  ;;  %v8283_v12 = vld [vmem:[#allocation22_spill] sm:$0xff]  ;;  %v8286_v60 = vld [vmem:[#allocation27_spill] sm:$0xff] }
 0x24e   : > { %v5952_v22 = vpop.eup %5951  ;;  %v7712_v5 = vadd.f32 %v7511_v57, %v2637_v23  ;;  %v2582_v50 = vadd.f32 %v2581_v30, %v2366_v26  ;;  %5157 = vmatprep.subr.bf16.mxu1 %v3113_v15  ;;  %v3040_v6 = vmul.f32 %v5950_v3, %v2905_v56  ;;  %v2778_v32 = vmul.f32 0.5, %v2733_v37  ;;  %v8280_v26 = vld [vmem:[#allocation7_spill] sm:$0xff] }
 0x24f   : > { %v2954_v54 = vsub.f32 1.0, %v5952_v22  ;;  %v5362_v9 = vpop.f32.mrf.mxu0  ;;  %v8271_v59 = vpack.c.bf16 %v7554_v44, %v7560_v2  ;;  %v8273_v35 = vpack.c.bf16 %v7524_v14, %v7530_v40  ;;  %v8274_v44 = vld [vmem:[#allocation8_spill] sm:$0xff]  ;;  %v8275_v2 = vld [vmem:[#allocation9_spill] sm:$0xff]  ;;  %v8281_v14 = vpack.c.bf16 %v8279_v52, %v8280_v26  ;;  %v8282_v3 = vld [vmem:[#allocation23_spill] sm:$0xff] }
 0x250   : > { %v2734_v0 = vmin.f32 %v7712_v5, 0.0  ;;  %v2638_v61 = vmul.f32 %v7492_v31, %v2582_v50  ;;  %v8269_v31 = vpack.c.bf16 %v7590_v41, %v7596_v45  ;;  %v7739_v11 = vsel %vm2860_vm7, %v7575_v29, %v3040_v6  ;;  %v8289_v6 = vld [vmem:[#allocation11_spill] sm:$0xff] }
 0x251   : > { %v5954_v13 = vpop.eup %5953  ;;  %5961 = vrcp.f32 %v2954_v54  ;;  %5158 = vmatpush3.bf16.msra.mxu1 %v8268_v39  ;;  %v2584_v49 = vpop.f32.mrf.mxu0  ;;  %v8270_v41 = vpack.c.bf16 %v7307_v55, %v7302_v46  ;;  %v2907_v29 = vmul.f32 2.0, %v7666_v28  ;;  %v2908_v46 = vmul.f32 2.0, %v7685_v16  ;;  %v8276_v28 = vld [vmem:[#allocation24_spill] sm:$0xff]  ;;  %v8285_v54 = vld [vmem:[#allocation26_spill] sm:$0xff]  ;;  %v8290_v39 = vld [vmem:[#allocation21_spill] sm:$0xff] }
 0x252   : > { %v5956_v47 = vpop.eup %5955  ;;  %v2779_v10 = vmul.f32 0.5, %v2734_v0  ;;  %v7730_v43 = vadd.f32 %v7511_v57, %v2638_v61  ;;  %5159 = vmatprep.subr.bf16.mxu1 %v8269_v31  ;;  %v3041_v27 = vmul.f32 %v5954_v13, %v2906_v58  ;;  %vm2862_vm9 = vcmp.gt.f32.partialorder %v8274_v44, 0.0  ;;  %v8288_v58 = vld [vmem:[#allocation10_spill] sm:$0xff]  ;;  %v8291_v49 = vld [vmem:[#allocation20_spill] sm:$0xff]  ;;  %v3229_v53 = vld [vmem:[%s8295_s5] sm:$0x1] }
 0x253   : > { %v2955_v24 = vsub.f32 1.0, %v5956_v47  ;;  %v5363_v48 = vpop.f32.mrf.mxu0  ;;  %vm2863_vm10 = vcmp.gt.f32.partialorder %v8275_v2, 0.0  ;;  %v8278_v1 = vpack.c.bf16 %v8276_v28, %v8277_v51  ;;  %v2909_v23 = vmul.f32 2.0, %v5952_v22  ;;  %v5801_v22 = vld [vmem:[%s8244_s30] ss:$12 sps:$4 sm:$0xff]  }
 0x254   : > { %5963 = vtanh.f32 %v2779_v10  ;;  %v2735_v20 = vmin.f32 %v7730_v43, 0.0  ;;  %v7742_v57 = vsel %vm2861_vm8, %v7593_v19, %v3041_v27  ;;  %v8272_v19 = vpack.c.bf16 %v7251_v17, %v7259_v25 }
 0x255   : > { %5965 = vrcp.f32 %v2955_v24  ;;  %5160 = vmatpush3.bf16.msra.mxu1 %v8270_v41  ;;  %v3117_v45 = vpack.c.bf16 %v7742_v57, %v7739_v11  ;;  %v8284_v30 = vpack.c.bf16 %v8282_v3, %v8283_v12  ;;  %v2910_v56 = vmul.f32 2.0, %v5956_v47  ;;  %v3123_v11 = vld [vmem:[%s8294_s1] sm:$0xff] }
 0x256   : > { %v5958_v18 = vpop.eup %5957  ;;  %5967 = vtanh.f32 %v2778_v32  ;;  %v2780_v38 = vmul.f32 0.5, %v2735_v20  ;;  %5161 = vmatprep.subr.bf16.mxu1 %v8271_v59  ;;  %v8287_v9 = vpack.c.bf16 %v8285_v54, %v8286_v60  ;;  %vm2864_vm11 = vcmp.gt.f32.partialorder %v8288_v58, 0.0 }
 0x257   : > { %5969 = vtanh.f32 %v2777_v8  ;;  %v3042_v55 = vmul.f32 %v5958_v18, %v2907_v29  ;;  %vm2865_vm12 = vcmp.gt.f32.partialorder %v8289_v6, 0.0  ;;  %v8292_v47 = vpack.c.bf16 %v8290_v39, %v8291_v49 }
 0x258   : > { %5971 = vtanh.f32 %v2780_v38  ;;  %v8293_v24 = vmov 0.0   ;;  %vm2870_vm13 = vcmp.gt.f32.partialorder %v7730_v43, 0.0  ;;  %vm2868_vm15 = vcmp.gt.f32.partialorder %v7688_v34, 0.0 }
 0x259   : > { %5162 = vmatpush3.bf16.msra.mxu1 %v8272_v19  ;;  %5973 = vtanh.f32 %v2776_v21  ;;  %v7766_v17 = vsel %vm2862_vm9, %v8274_v44, %v3042_v55  ;;  %vm2867_vm0 = vcmp.gt.f32.partialorder %v7693_v63, 0.0  ;;  %vm2866_vm2 = vcmp.gt.f32.partialorder %v7701_v4, 0.0 }
 0x25a   : > { %v5960_v62 = vpop.eup %5959  ;;  %5163 = vmatprep.subr.bf16.mxu1 %v8273_v35  ;;  %vm3139_vm3 = vcmask 850944   ;;  %vm3242_vm4 = vcmask 1040384   ;;  %vm3245_vm5 = vcmask 1041408  }
 0x25b   : > { %v3043_v36 = vmul.f32 %v5960_v62, %v2908_v46 }
 0x25d   : > { %5164 = vmatpush3.bf16.msra.mxu1 %v8278_v1  ;;  %v7769_v25 = vsel %vm2863_vm10, %v8275_v2, %v3043_v36 }
 0x25e   : > { %v5962_v16 = vpop.eup %5961  ;;  %5165 = vmatprep.subr.bf16.mxu1 %v8281_v14  ;;  %v3118_v40 = vpack.c.bf16 %v7769_v25, %v7766_v17  ;;  %v3234_v25 = vlaneseq }
 0x25f   : > { %v3044_v37 = vmul.f32 %v5962_v16, %v2909_v23 }
 0x260   : > { %v3235_v57 = vshrl.u32 %v3234_v25, 7 }
 0x261   : > { %v5964_v15 = vpop.eup %5963  ;;  %5166 = vmatpush3.bf16.msra.mxu1 %v8284_v30  ;;  %v3089_v32 = vsel %vm2864_vm11, %v8288_v58, %v3044_v37 }
 0x262   : > { %v5966_v50 = vpop.eup %5965  ;;  %5167 = vmatprep.subr.bf16.mxu1 %v8287_v9  ;;  %v2959_v13 = vsub.f32 1.0, %v5964_v15  ;;  %v2914_v29 = vmul.f32 2.0, %v5964_v15  ;;  %v3236_v37 = vsub.s32 0, %v3235_v57 }
 0x263   : > { %v5968_v0 = vpop.eup %5967  ;;  %v3045_v61 = vmul.f32 %v5966_v50, %v2910_v56 }
 0x264   : > { %v5970_v42 = vpop.eup %5969  ;;  %v2958_v27 = vsub.f32 1.0, %v5968_v0  ;;  %5975 = vrcp.f32 %v2959_v13  ;;  %v2913_v55 = vmul.f32 2.0, %v5968_v0  ;;  %v3237_v60 = vrot.slane %v3229_v53, %v3236_v37 }
 0x265   : > { %5168 = vmatpush3.bf16.msra.mxu1 %v8292_v47  ;;  %v3090_v10 = vsel %vm2865_vm12, %v8289_v6, %v3045_v61  ;;  %v5972_v31 = vpop.eup %5971  ;;  %v2957_v41 = vsub.f32 1.0, %v5970_v42  ;;  %v2912_v28 = vmul.f32 2.0, %v5970_v42 }
 0x266   : > { %5364 = vmatprep.subr.bf16.mxu1 %v8293_v24  ;;  %v3119_v8 = vpack.c.bf16 %v3090_v10, %v3089_v32  ;;  %v5974_v48 = vpop.eup %5973  ;;  %v2960_v20 = vsub.f32 1.0, %v5972_v31  ;;  %v2915_v38 = vmul.f32 2.0, %v5972_v31 }
 0x267   : > { %v2956_v18 = vsub.f32 1.0, %v5974_v48  ;;  %v2911_v52 = vmul.f32 2.0, %v5974_v48 }
 0x268   : > { %3180 = vmatmul.mubr.bf16.vlgmr.msra.gmra.mxu1 %v5801_v22  ;;  %5977 = vrcp.f32 %v2960_v20 }
 0x269   : > { %5378 = vmatprep.mubr.msk.bf16.mxu1 %vm6146_vm1, %v8293_v24  ;;  %5979 = vrcp.f32 %v2958_v27  ;;  %vm2869_vm1 = vcmp.gt.f32.partialorder %v7712_v5, 0.0 }
 0x26a   : > { %5981 = vrcp.f32 %v2957_v41 }
 0x26b   : > { %5983 = vrcp.f32 %v2956_v18 }
 0x271   : > { %v5976_v21 = vpop.eup %5975 }
 0x272   : > { %v3049_v62 = vmul.f32 %v5976_v21, %v2914_v29 }
 0x274   : > { %v3094_v16 = vsel %vm2869_vm1, %v7712_v5, %v3049_v62 }
 0x275   : > { %v5978_v59 = vpop.eup %5977 }
 0x276   : > { %v5980_v19 = vpop.eup %5979  ;;  %v3050_v46 = vmul.f32 %v5978_v59, %v2915_v38 }
 0x277   : > { %v5982_v35 = vpop.eup %5981  ;;  %v3048_v2 = vmul.f32 %v5980_v19, %v2913_v55 }
 0x278   : > { %v3095_v36 = vsel %vm2870_vm13, %v7730_v43, %v3050_v46  ;;  %v5984_v51 = vpop.eup %5983  ;;  %v3047_v26 = vmul.f32 %v5982_v35, %v2912_v28 }
 0x279   : > { %v3122_v44 = vpack.c.bf16 %v3095_v36, %v3095_v36  ;;  %v3093_v14 = vsel %vm2868_vm15, %v7688_v34, %v3048_v2  ;;  %v3046_v43 = vmul.f32 %v5984_v51, %v2911_v52  ;;  %v5804_v34 = vld [vmem:[%s8244_s30 + $0x8] ss:$12 sps:$4 sm:$0xff]  }
 0x27a   : > { %v3121_v23 = vpack.c.bf16 %v3094_v16, %v3093_v14  ;;  %v3092_v15 = vsel %vm2867_vm0, %v7693_v63, %v3047_v26 }
 0x27b   : > { %v3145_v1 = vsel %vm3143_vm14, %v3122_v44, 0  ;;  %v3091_v5 = vsel %vm2866_vm2, %v7701_v4, %v3046_v43 }
 0x27c   : > { %5365 = vmatpush3.bf16.msra.mxu1 %v3145_v1  ;;  %v3120_v3 = vpack.c.bf16 %v3092_v15, %v3091_v5 }
 0x27d   : > { %5366 = vmatprep.subr.bf16.mxu1 %v8293_v24 }
 0x280   : > { %5367 = vmatpush3.bf16.msra.mxu1 %v3121_v23 }
 0x281   : > { %5368 = vmatprep.subr.bf16.mxu1 %v8293_v24 }
 0x284   : > { %5369 = vmatpush3.bf16.msra.mxu1 %v3120_v3 }
 0x285   : > { %5370 = vmatprep.subr.bf16.mxu1 %v8293_v24 }
 0x288   : > { %5371 = vmatpush3.bf16.msra.mxu1 %v3119_v8 }
 0x289   : > { %5372 = vmatprep.subr.bf16.mxu1 %v8293_v24 }
 0x28c   : > { %5373 = vmatpush3.bf16.msra.mxu1 %v3118_v40 }
 0x28d   : > { %5374 = vmatprep.subr.bf16.mxu1 %v8293_v24 }
 0x290   : > { %5375 = vmatpush3.bf16.msra.mxu1 %v3117_v45 }
 0x291   : > { %5376 = vmatprep.subr.bf16.mxu1 %v8293_v24 }
 0x294   : > { %5377 = vmatpush3.bf16.msra.mxu1 %v3116_v7 }
 0x297   : > { %5379 = vmatmul.mubr.msk.bf16.vlgmr.msra.gmra.mxu1 %vm3139_vm3, %v5804_v34 }
 0x328   : > { %v5169_v63 = vpop.f32.mrf.mxu1 }
 0x32a   : > { %v5170_v4 = vpop.f32.mrf.mxu1 }
 0x32b   : > { %v5171_v40 = vadd.f32 %v5170_v4, %v5169_v63 }
 0x32c   : > { %v5172_v17 = vpop.f32.mrf.mxu1 }
 0x32d   : > { %v3182_v30 = vadd.f32 %v5171_v40, %v3123_v11 }
 0x32e   : > { %v5173_v12 = vpop.f32.mrf.mxu1 }
 0x32f   : > { %v5174_v45 = vadd.f32 %v5173_v12, %v5172_v17 }
 0x331   : > { %v3185_v54 = vadd.f32 %v5174_v45, %v3123_v11 }
 0x357   : > { %v3222_v56 = vpop.f32.mrf.mxu1 }
 0x358   : > { %v3223_v50 = vadd.f32 %v3222_v56, %v3182_v30 }
 0x359   : > { %v5380_v33 = vpop.f32.mrf.mxu1 }
 0x35a   : > { %v3231_v7 = vrot.slane %v3223_v50, 7 }
 0x35b   : > { %v3225_v9 = vpop.f32.mrf.mxu1 }
 0x35c   : > { %v3243_v0 = vsel %vm3242_vm4, %v3229_v53, %v3231_v7  ;;  %v3226_v61 = vadd.f32 %v3225_v9, %v3185_v54  ;;  %v3244_v13 = vsel %vm3242_vm4, %v3231_v7, %v3237_v60 }
 0x35d   : > { %3247 = vst [vmem:[#allocation2 + $0x10] sm:$0xff] %v3243_v0  ;;  %v5381_v58 = vpop.f32.mrf.mxu1 }
 0x35e   : > { %v3240_v6 = vrot.slane %v3226_v61, 6 }
 0x360   : > { %v3246_v22 = vsel %vm3245_vm5, %v3244_v13, %v3240_v6  ;;  %3249 = vst [vmem:[#allocation2 + $0x8] sm:$0x3] %v3240_v6 }
 0x361   : > { %3248 = vst [vmem:[#allocation2] sm:$0xff] %v3246_v22 }
 0x362 PF: > { %vm3259_vm6 = vcmask 1041408   ;;  %v5987_v32 = vld [vmem:[%s6312_s23 + $0xac] ss:$12 sps:$4 sm:$0xff]   ;;  %v5989_v10 = vld [vmem:[%s6312_s23 + $0xa8] ss:$12 sps:$4 sm:$0xff]   ;;  %v6147_v23 = vmov 0   ;;  %s8296_s2 = scalar_lea.vmem %s8160_s9, %s6288_s27  ;;  %s8297_s28 = scalar_lea.vmem %s8161_s10, %s6288_s27 }
 0x363   : > { %v5990_v31 = vld [vmem:[%s6312_s23 + $0xb0] ss:$12 sps:$4 sm:$0xff]   ;;  %3472 = vmatprep.subr.bf16.mxu0 %v5987_v32  ;;  %v5991_v55 = vld [vmem:[%s6312_s23 + $0x94] ss:$12 sps:$4 sm:$0xff]   ;;  %v5994_v35 = vld [vmem:[%s6312_s23 + $0x98] ss:$12 sps:$4 sm:$0xff]   ;;  %3504 = vmatprep.mubr.bf16.mxu0 %v6147_v23  ;;  %s8300_s21 = scalar_lea.vmem %s8164_s13, %s6288_s27 }
 0x364   : > { %v3250_v42 = vld [vmem:[#allocation2 + $0x10] sm:$0xff]  ;;  %5382 = vmatprep.subr.bf16.mxu1 %v5990_v31  ;;  %3473 = vmatpush1.bf16.msra.mxu0 %v5989_v10  ;;  %v5995_v36 = vld [vmem:[%s6312_s23 + $0x7c] ss:$12 sps:$4 sm:$0xff]   ;;  %v5997_v44 = vld [vmem:[%s6312_s23 + $0x78] ss:$12 sps:$4 sm:$0xff]   ;;  %vm3777_vm7 = vcmask 1040384  }
 0x365   : > { %3255 = vadd.xlane.f32.xlu0 %v3250_v42  ;;  %5383 = vmatpush3.bf16.msra.mxu1 %v5990_v31  ;;  %v5993_v62 = vld [vmem:[%s6312_s23 + $0x90] ss:$12 sps:$4 sm:$0xff]   ;;  %v5998_v2 = vld [vmem:[%s6312_s23 + $0x80] ss:$12 sps:$4 sm:$0xff]   ;;  %v6002_v1 = vld [vmem:[%s6312_s23 + $0x68] ss:$12 sps:$4 sm:$0xff]  }
 0x366   : > { %3474 = vmatprep.subr.bf16.mxu0 %v5991_v55  ;;  %5384 = vmatprep.subr.bf16.mxu1 %v5994_v35  ;;  %v5999_v28 = vld [vmem:[%s6312_s23 + $0x64] ss:$12 sps:$4 sm:$0xff]   ;;  %v6001_v51 = vld [vmem:[%s6312_s23 + $0x60] ss:$12 sps:$4 sm:$0xff]   ;;  %v6005_v26 = vld [vmem:[%s6312_s23 + $0x48] ss:$12 sps:$4 sm:$0xff]  }
 0x367   : > { %v3252_v39 = vld [vmem:[#allocation2 + $0x8] sm:$0x3]  ;;  %v6003_v16 = vld [vmem:[%s6312_s23 + $0x4c] ss:$12 sps:$4 sm:$0xff]   ;;  %v6006_v52 = vld [vmem:[%s6312_s23 + $0x50] ss:$12 sps:$4 sm:$0xff]  }
 0x368   : > { %v3251_v49 = vld [vmem:[#allocation2] sm:$0xff]  ;;  %v3260_v47 = vsel %vm3259_vm6, %v3252_v39, 0.0  ;;  %3475 = vmatpush1.bf16.msra.mxu0 %v5993_v62  ;;  %v6009_v15 = vld [vmem:[%s6312_s23 + $0x30] ss:$12 sps:$4 sm:$0xff]   ;;  %v6018_v4 = vld [vmem:[%s6312_s23 + $0x8] ss:$12 sps:$4 sm:$0xff]  }
 0x369   : > { %3261 = vadd.xlane.f32.xlu1 %v3260_v47  ;;  %3257 = vadd.xlane.f32.xlu0 %v3251_v49  ;;  %v6007_v14 = vld [vmem:[%s6312_s23 + $0x34] ss:$12 sps:$4 sm:$0xff]   ;;  %v6010_v43 = vld [vmem:[%s6312_s23 + $0x38] ss:$12 sps:$4 sm:$0xff]   ;;  %v6011_v5 = vld [vmem:[%s6312_s23 + $0x1c] ss:$12 sps:$4 sm:$0xff]   ;;  %v3584_v47 = vlaneseq }
 0x36a   : > { %5385 = vmatpush3.bf16.msra.mxu1 %v5994_v35  ;;  %3476 = vmatprep.subr.bf16.mxu0 %v5995_v36  ;;  %v6014_v3 = vld [vmem:[%s6312_s23 + $0x20] ss:$12 sps:$4 sm:$0xff]   ;;  %v6013_v34 = vld [vmem:[%s6312_s23 + $0x18] ss:$12 sps:$4 sm:$0xff]   ;;  %s8299_s0 = sld [smem:[#allocation37_spill]]  ;;  %vm3638_vm8 = vcmask 146432  }
 0x36b   : > { %5386 = vmatprep.subr.bf16.mxu1 %v5998_v2  ;;  %v6015_v63 = vld [vmem:[%s6312_s23 + $0x4] ss:$12 sps:$4 sm:$0xff]   ;;  %v6017_v17 = vld [vmem:[%s6312_s23] ss:$12 sps:$4 sm:$0xff]   ;;  %s8298_s23 = sld [smem:[#allocation36_spill]]  ;;  %v3585_v10 = vshrl.u32 %v3584_v47, 7 }
 0x36c   : > { %3477 = vmatpush1.bf16.msra.mxu0 %v5997_v44  ;;  %v5057_v33 = vld [vmem:[%s8296_s2] ss:$0 sm:$0xff]  ;;  %vm3645_vm9 = vcmask 140288   ;;  %vm4531_vm10 = vcmask 261120   ;;  %p5116_p5 = scmp.ne.s32.totalorder %s6282_s26, 1 }
 0x36d   : > { %3478 = vmatprep.subr.bf16.mxu0 %v5999_v28  ;;  %v5058_v61 = vld [vmem:[%s8297_s28] ss:$0 sm:$0xff]  ;;  %v3586_v36 = vsub.s32 0, %v3585_v10  ;;  %s8302_s2 = sld [smem:[#allocation40_spill]] (!%p5116_p5) }
 0x36e   : > { %5387 = vmatpush3.bf16.msra.mxu1 %v5998_v2 }
 0x36f   : > { %5388 = vmatprep.subr.bf16.mxu1 %v6002_v1 }
 0x370   : > { %3479 = vmatpush1.bf16.msra.mxu0 %v6001_v51 }
 0x371   : > { %3480 = vmatprep.subr.bf16.mxu0 %v6003_v16  ;;  %v3577_v32 = vld [vmem:[%s8298_s23] sm:$0x3] }
 0x372   : > { %5389 = vmatpush3.bf16.msra.mxu1 %v6002_v1  ;;  %v3677_v31 = vshrl.u32 %v3577_v32, 16 }
 0x373   : > { %5390 = vmatprep.subr.bf16.mxu1 %v6006_v52 }
 0x374   : > { %3481 = vmatpush1.bf16.msra.mxu0 %v6005_v26 }
 0x375   : > { %3482 = vmatprep.subr.bf16.mxu0 %v6007_v14 }
 0x376   : > { %5391 = vmatpush3.bf16.msra.mxu1 %v6006_v52 }
 0x377   : > { %5392 = vmatprep.subr.bf16.mxu1 %v6010_v43 }
 0x378   : > { %3483 = vmatpush1.bf16.msra.mxu0 %v6009_v15 }
 0x379   : > { %3484 = vmatprep.subr.bf16.mxu0 %v6011_v5 }
 0x37a   : > { %5393 = vmatpush3.bf16.msra.mxu1 %v6010_v43 }
 0x37b   : > { %5394 = vmatprep.subr.bf16.mxu1 %v6014_v3 }
 0x37c   : > { %3485 = vmatpush1.bf16.msra.mxu0 %v6013_v34 }
 0x37d   : > { %3486 = vmatprep.subr.bf16.mxu0 %v6015_v63 }
 0x37e   : > { %5395 = vmatpush3.bf16.msra.mxu1 %v6014_v3 }
 0x37f   : > { %5396 = vmatprep.subr.bf16.mxu1 %v6018_v4 }
 0x380   : > { %3487 = vmatpush1.bf16.msra.mxu0 %v6017_v17 }
 0x382   : > { %5397 = vmatpush3.bf16.msra.mxu1 %v6018_v4 }
 0x3ee   : > { %v3256_v27 = vpop.xlane.xlu0 %3255 }
 0x3ef   : > { %v3264_v24 = vmul.f32 0.0078125, %v3256_v27  ;;  %v3678_v27 = vpack.i.b16 %v3677_v31, %v3677_v31 }
 0x3f1   : > { %v7833_v20 = vsub.f32 %v3250_v42, %v3264_v24  ;;  %v3888_v24 = vsub.s32 1, %v3585_v10  ;;  %v3683_v43 = vrot.slane %v3678_v27, %v3586_v36 }
 0x3f2   : > { %v3262_v8 = vpop.xlane.xlu1 %3261  ;;  %v3258_v18 = vpop.xlane.xlu0 %3257 }
 0x3f3   : > { %v3266_v48 = vmul.f32 0.0078125, %v3262_v8  ;;  %v3265_v21 = vmul.f32 0.0078125, %v3258_v18  ;;  %v3270_v38 = vmul.f32 %v7833_v20, %v7833_v20  ;;  %v4040_v8 = vrot.slane %v3678_v27, %v3888_v24 }
 0x3f5   : > { %v7835_v41 = vsub.f32 %v3252_v39, %v3266_v48  ;;  %v7841_v29 = vsub.f32 %v3251_v49, %v3265_v21  ;;  %3273 = vadd.xlane.f32.xlu1 %v3270_v38  ;;  %v3582_v38 = vpack.i.b16 %v3577_v32, %v3577_v32 }
 0x3f7   : > { %v3272_v59 = vmul.f32 %v7835_v41, %v7835_v41  ;;  %v3271_v46 = vmul.f32 %v7841_v29, %v7841_v29  ;;  %v3889_v44 = vrot.slane %v3582_v38, %v3888_v24  ;;  %v3587_v14 = vrot.slane %v3582_v38, %v3586_v36 }
 0x3f9   : > { %v3277_v19 = vsel %vm3259_vm6, %v3272_v59, 0.0  ;;  %3275 = vadd.xlane.f32.xlu0 %v3271_v46 }
 0x3fa   : > { %3278 = vadd.xlane.f32.xlu1 %v3277_v19 }
 0x47e   : > { %v3274_v25 = vpop.xlane.xlu1 %3273 }
 0x47f   : > { %v3280_v40 = vmul.f32 0.0078125, %v3274_v25 }
 0x481   : > { %v3283_v12 = vadd.f32 1e-05, %v3280_v40 }
 0x482   : > { %v3276_v57 = vpop.xlane.xlu0 %3275 }
 0x483   : > { %v3279_v11 = vpop.xlane.xlu1 %3278  ;;  %6037 = vrsqrt.f32 %v3283_v12  ;;  %v3281_v30 = vmul.f32 0.0078125, %v3276_v57 }
 0x484   : > { %v3282_v45 = vmul.f32 0.0078125, %v3279_v11 }
 0x485   : > { %v3284_v37 = vadd.f32 1e-05, %v3281_v30 }
 0x486   : > { %v3285_v56 = vadd.f32 1e-05, %v3282_v45 }
 0x488   : > { %6039 = vrsqrt.f32 %v3285_v56 }
 0x489   : > { %6041 = vrsqrt.f32 %v3284_v37 }
 0x490   : > { %v6038_v50 = vpop.eup %6037 }
 0x491   : > { %v3289_v53 = vmul.f32 %v6038_v50, %v7833_v20 }
 0x493   : > { %v3298_v0 = vmul.f32 %v5057_v33, %v3289_v53 }
 0x495   : > { %v6040_v7 = vpop.eup %6039  ;;  %v3307_v22 = vadd.f32 %v5058_v61, %v3298_v0 }
 0x496   : > { %v6042_v54 = vpop.eup %6041  ;;  %v3291_v60 = vmul.f32 %v6040_v7, %v7835_v41  ;;  %v7922_v7 = vld [vmem:[%s8299_s0 + $0x10] sm:$0x3] }
 0x497   : > { %v3290_v9 = vmul.f32 %v6042_v54, %v7841_v29 }
 0x498   : > { %v3300_v58 = vmul.f32 %v5057_v33, %v3291_v60 }
 0x499   : > { %v3299_v6 = vmul.f32 %v5057_v33, %v3290_v9  ;;  %v7917_v33 = vld [vmem:[%s8299_s0] sm:$0xff] }
 0x49a   : > { %v3309_v13 = vadd.f32 %v5058_v61, %v3300_v58  ;;  %v7928_v58 = vld [vmem:[%s8299_s0 + $0x8] sm:$0xff] }
 0x49b   : > { %v3308_v42 = vadd.f32 %v5058_v61, %v3299_v6 }
 0x49c   : > { %v3311_v39 = vpack.c.bf16 %v3309_v13, %v3309_v13 }
 0x49d   : > { %v3310_v49 = vpack.c.bf16 %v3308_v42, %v3307_v22 }
 0x49f   : > { %3505 = vmatmul.mubr.bf16.vlgmr.msra.gmra.mxu0 %v3310_v49  ;;  %5398 = vmatprep.mubr.bf16.mxu1 %v3310_v49 }
 0x4a0   : > { %5399 = vmatmul.mubr.bf16.vlgmr.msra.gmra.mxu1 %v3311_v39  ;;  %3514 = vmatprep.mubr.bf16.mxu0 %v6147_v23 }
 0x4a7   : > { %3515 = vmatmul.mubr.bf16.gmra.mxu0 %v3311_v39 }
 0x55f   : > { %v3506_v48 = vpop.f32.mrf.mxu0 }
 0x560   : > { %v5400_v20 = vpop.f32.mrf.mxu1 }
 0x561   : > { %v3576_v41 = vpack.c.bf16 %v5400_v20, %v5400_v20  ;;  %v3508_v18 = vpop.f32.mrf.mxu0 }
 0x562   : > { %v3557_v21 = vpop.f32.mrf.mxu1 }
 0x563   : > { %v3510_v59 = vpop.f32.mrf.mxu0  ;;  %v7883_v29 = vmul.bf16 %v4040_v8, %v3576_v41  ;;  %v3770_v25 = vmul.bf16 %v3683_v43, %v3576_v41  ;;  %v3676_v40 = vmul.bf16 %v3587_v14, %v3576_v41  ;;  %v7909_v37 = vmul.bf16 %v3889_v44, %v3576_v41 }
 0x564   : > { %v7885_v19 = vpack.c.bf16 %v3510_v59, %v3506_v48  ;;  %v5401_v46 = vpop.f32.mrf.mxu1 }
 0x565   : > { %v3512_v55 = vpop.f32.mrf.mxu0  ;;  %v3779_v11 = vsel %vm3777_vm7, %v3770_v25, 0  ;;  %v3836_v57 = vsel %vm3777_vm7, %v3676_v40, 0 }
 0x566   : > { %v3573_v62 = vpack.c.bf16 %v3512_v55, %v3508_v18  ;;  %v3560_v35 = vpop.f32.mrf.mxu1  ;;  %5406 = vmatprep.mubr.bf16.mxu0 %v7885_v19  ;;  %5414 = vmatprep.mubr.bf16.mxu1 %v7885_v19 }
 0x567   : > { %v3575_v2 = vpack.c.bf16 %v3560_v35, %v3557_v21  ;;  %v3516_v28 = vpop.f32.mrf.mxu0 }
 0x568   : > { %v7889_v51 = vmul.bf16 %v3889_v44, %v3573_v62  ;;  %v7895_v23 = vmul.bf16 %v4040_v8, %v3573_v62  ;;  %v3588_v4 = vmul.bf16 %v3587_v14, %v3573_v62  ;;  %v3684_v17 = vmul.bf16 %v3683_v43, %v3573_v62 }
 0x569   : > { %v3518_v1 = vpop.f32.mrf.mxu0  ;;  %v7891_v16 = vmul.bf16 %v4040_v8, %v3575_v2  ;;  %v7893_v52 = vmul.bf16 %v3889_v44, %v3575_v2  ;;  %v7901_v12 = vpack.c.bf16 %v3516_v28, %v3516_v28  ;;  %v3769_v45 = vmul.bf16 %v3683_v43, %v3575_v2 }
 0x56a   : > { %v3574_v26 = vpack.c.bf16 %v3518_v1, %v3518_v1  ;;  %v3675_v30 = vmul.bf16 %v3587_v14, %v3575_v2 }
 0x56b   : > { %v3520_v15 = vpop.f32.mrf.mxu0 }
 0x56c   : > { %v3589_v5 = vmul.bf16 %v3587_v14, %v3574_v26  ;;  %v3685_v3 = vmul.bf16 %v3683_v43, %v3574_v26  ;;  %v7897_v34 = vmul.bf16 %v4040_v8, %v3574_v26  ;;  %v7907_v56 = vmul.bf16 %v3889_v44, %v3574_v26 }
 0x56d   : > { %v3521_v63 = vpop.f32.mrf.mxu0 }
 0x56e   : > { %5402 = vmatprep.subr.bf16.mxu0 %v3589_v5  ;;  %5410 = vmatprep.subr.bf16.mxu1 %v3685_v3 }
 0x56f   : > { %5403 = vmatpush3.bf16.xpose.msra.mxu0 %v3589_v5  ;;  %5411 = vmatpush3.bf16.xpose.msra.mxu1 %v3685_v3 }
 0x570   : > { %5404 = vmatprep.subr.bf16.mxu0 %v3588_v4  ;;  %5412 = vmatprep.subr.bf16.mxu1 %v3684_v17 }
 0x577   : > { %5405 = vmatpush3.bf16.xpose.msra.mxu0 %v3588_v4  ;;  %5413 = vmatpush3.bf16.xpose.msra.mxu1 %v3684_v17 }
 0x578   : > { %5581 = vmatprep.subr.msk.bf16.mxu0 %vm3777_vm7, %v3770_v25  ;;  %5582 = vmatprep.subr.msk.bf16.mxu1 %vm3777_vm7, %v3676_v40  ;;  %v4135_v40 = vsel %vm3777_vm7, %v7883_v29, 0 }
 0x57e   : > { %5407 = vmatmul.mubr.bf16.vlgmr.msra.gmra.mxu0 %v7901_v12  ;;  %5415 = vmatmul.mubr.bf16.vlgmr.msra.gmra.mxu1 %v7901_v12 }
 0x57f   : > { %5419 = vmatpush3.bf16.msra.mxu0 %v3779_v11  ;;  %5427 = vmatpush3.bf16.msra.mxu1 %v3836_v57 }
 0x580   : > { %5420 = vmatprep.subr.bf16.mxu0 %v3769_v45  ;;  %5428 = vmatprep.subr.bf16.mxu1 %v3675_v30 }
 0x583   : > { %5421 = vmatpush3.bf16.msra.mxu0 %v3769_v45  ;;  %5429 = vmatpush3.bf16.msra.mxu1 %v3675_v30 }
 0x584   : > { %5434 = vmatprep.subr.bf16.mxu0 %v7907_v56  ;;  %5583 = vmatprep.subr.msk.bf16.mxu1 %vm3777_vm7, %v7909_v37 }
 0x63e   : > { %v5408_v50 = vpop.f32.mrf.mxu0  ;;  %v5416_v53 = vpop.f32.mrf.mxu1 }
 0x63f   : > { %v3729_v6 = vadd.f32 %v5416_v53, %v7922_v7  ;;  %v3633_v36 = vadd.f32 %v5408_v50, %v7922_v7 }
 0x640   : > { %v3624_v54 = vpop.f32.mrf.mxu0  ;;  %v3720_v60 = vpop.f32.mrf.mxu1 }
 0x641   : > { %v3721_v9 = vadd.f32 %v3720_v60, %v7917_v33  ;;  %v3740_v49 = vsel %vm3645_vm9, %v3729_v6, -inf  ;;  %v3625_v46 = vadd.f32 %v3624_v54, %v7917_v33  ;;  %v3646_v28 = vsel %vm3645_vm9, %v3633_v36, -inf }
 0x642   : > { %v5409_v0 = vpop.f32.mrf.mxu0  ;;  %v5417_v61 = vpop.f32.mrf.mxu1 }
 0x643   : > { %v3734_v13 = vsel %vm3638_vm8, %v3721_v9, -inf  ;;  %v3639_v44 = vsel %vm3638_vm8, %v3625_v46, -inf }
 0x644   : > { %v3723_v22 = vpop.f32.mrf.mxu1  ;;  %3735 = vmax.xlane.f32.xlu0 %v3734_v13  ;;  %v3627_v21 = vpop.f32.mrf.mxu0 }
 0x645   : > { %v3724_v42 = vadd.f32 %v3723_v22, %v7928_v58  ;;  %v3628_v62 = vadd.f32 %v3627_v21, %v7928_v58 }
 0x647   : > { %v3737_v39 = vsel %vm3638_vm8, %v3724_v42, -inf  ;;  %v3642_v2 = vsel %vm3638_vm8, %v3628_v62, -inf }
 0x648   : > { %3738 = vmax.xlane.f32.xlu1 %v3737_v39  ;;  %3741 = vmax.xlane.f32.xlu0 %v3740_v49 }
 0x6cd   : > { %v3736_v47 = vpop.xlane.xlu0 %3735 }
 0x6ce   : > { %v3743_v32 = vsub.f32 %v3721_v9, %v3736_v47 }
 0x6d0   : > { %v3746_v10 = vmul.f32 1.442695, %v3743_v32 }
 0x6d1   : > { %v3739_v31 = vpop.xlane.xlu1 %3738  ;;  %v3742_v27 = vpop.xlane.xlu0 %3741 }
 0x6d2   : > { %6043 = vpow2.f32 %v3746_v10  ;;  %v3744_v24 = vsub.f32 %v3724_v42, %v3739_v31  ;;  %v3745_v8 = vsub.f32 %v3729_v6, %v3742_v27 }
 0x6d4   : > { %v3748_v48 = vmul.f32 1.442695, %v3744_v24  ;;  %v3750_v20 = vmul.f32 1.442695, %v3745_v8 }
 0x6d6   : > { %6045 = vpow2.f32 %v3748_v48 }
 0x6d7   : > { %6047 = vpow2.f32 %v3750_v20 }
 0x6df   : > { %v6044_v41 = vpop.eup %6043 }
 0x6e0   : > { %v3752_v18 = vsel %vm3638_vm8, %v6044_v41, 0.0 }
 0x6e1   : > { %3753 = vadd.xlane.f32.xlu1 %v3752_v18 }
 0x6e3   : > { %v6046_v38 = vpop.eup %6045 }
 0x6e4   : > { %v6048_v59 = vpop.eup %6047  ;;  %v3755_v55 = vsel %vm3638_vm8, %v6046_v38, 0.0 }
 0x6e5   : > { %3756 = vadd.xlane.f32.xlu0 %v3755_v55  ;;  %v3758_v35 = vsel %vm3645_vm9, %v6048_v59, 0.0 }
 0x6e6   : > { %3759 = vadd.xlane.f32.xlu1 %v3758_v35 }
 0x6e9   : > { %3640 = vmax.xlane.f32.xlu0 %v3639_v44 }
 0x6ea   : > { %3643 = vmax.xlane.f32.xlu1 %v3642_v2 }
 0x6ed   : > { %3647 = vmax.xlane.f32.xlu0 %v3646_v28 }
 0x76a   : > { %v3754_v1 = vpop.xlane.xlu1 %3753 }
 0x76b   : > { %6049 = vrcp.f32 %v3754_v1 }
 0x76e   : > { %v3757_v26 = vpop.xlane.xlu0 %3756 }
 0x76f   : > { %v3760_v14 = vpop.xlane.xlu1 %3759  ;;  %6051 = vrcp.f32 %v3757_v26 }
 0x770   : > { %6053 = vrcp.f32 %v3760_v14 }
 0x772   : > { %v3641_v11 = vpop.xlane.xlu0 %3640 }
 0x773   : > { %v3644_v45 = vpop.xlane.xlu1 %3643 }
 0x774   : > { %v3650_v50 = vsub.f32 %v3628_v62, %v3644_v45 }
 0x776   : > { %v3648_v53 = vpop.xlane.xlu0 %3647  ;;  %v3654_v60 = vmul.f32 1.442695, %v3650_v50 }
 0x777   : > { %v3651_v9 = vsub.f32 %v3633_v36, %v3648_v53 }
 0x778   : > { %v6050_v43 = vpop.eup %6049 }
 0x779   : > { %v3764_v3 = vmul.f32 %v6050_v43, %v6044_v41 }
 0x77c   : > { %v6052_v15 = vpop.eup %6051 }
 0x77d   : > { %v6054_v5 = vpop.eup %6053  ;;  %v3765_v63 = vmul.f32 %v6052_v15, %v6046_v38 }
 0x77e   : > { %v3766_v4 = vmul.f32 %v6054_v5, %v6048_v59 }
 0x77f   : > { %v3767_v17 = vpack.c.bf16 %v3765_v63, %v3764_v3 }
 0x780   : > { %v3768_v25 = vpack.c.bf16 %v3766_v4, %v3766_v4 }
 0x781   : > { %5422 = vmatprep.mubr.msk.bf16.mxu0 %vm3638_vm8, %v3767_v17 }
 0x782   : > { %5423 = vmatmul.mubr.msk.bf16.vlgmr.msra.gmra.mxu0 %vm3638_vm8, %v3768_v25 }
 0x783   : > { %5435 = vmatpush3.bf16.xpose.msra.mxu0 %v7907_v56  ;;  %5438 = vmatprep.mubr.bf16.mxu0 %v7885_v19 }
 0x784   : > { %5436 = vmatprep.subr.bf16.mxu0 %v7889_v51 }
 0x78b   : > { %5437 = vmatpush3.bf16.xpose.msra.mxu0 %v7889_v51  ;;  %v3649_v51 = vsub.f32 %v3625_v46, %v3641_v11  ;;  %v3984_v11 = vsel %vm3777_vm7, %v7909_v37, 0 }
 0x78c   : > { %5584 = vmatprep.subr.msk.bf16.mxu0 %vm3777_vm7, %v7883_v29  ;;  %v3656_v29 = vmul.f32 1.442695, %v3651_v9 }
 0x78d   : > { %v3652_v54 = vmul.f32 1.442695, %v3649_v51 }
 0x78f   : > { %6055 = vpow2.f32 %v3652_v54 }
 0x790   : > { %6057 = vpow2.f32 %v3654_v60 }
 0x791   : > { %6059 = vpow2.f32 %v3656_v29 }
 0x792   : > { %5439 = vmatmul.mubr.bf16.vlgmr.msra.gmra.mxu0 %v7901_v12 }
 0x793   : > { %5459 = vmatpush3.bf16.msra.mxu0 %v4135_v40 }
 0x794   : > { %5460 = vmatprep.subr.bf16.mxu0 %v7891_v16 }
 0x797   : > { %5461 = vmatpush3.bf16.msra.mxu0 %v7891_v16 }
 0x79c   : > { %v6056_v47 = vpop.eup %6055 }
 0x79d   : > { %v6058_v31 = vpop.eup %6057  ;;  %v3658_v24 = vsel %vm3638_vm8, %v6056_v47, 0.0 }
 0x79e   : > { %v3661_v27 = vsel %vm3638_vm8, %v6058_v31, 0.0  ;;  %v6060_v8 = vpop.eup %6059 }
 0x79f   : > { %v3664_v48 = vsel %vm3645_vm9, %v6060_v8, 0.0 }
 0x842   : > { %v7957_v57 = vpop.f32.mrf.mxu0 }
 0x844   : > { %v7959_v30 = vpop.f32.mrf.mxu0 }
 0x846   : > { %v5425_v56 = vpop.f32.mrf.mxu0 }
 0x848   : > { %v7961_v0 = vpop.f32.mrf.mxu0 }
 0x852   : > { %v5440_v61 = vpop.f32.mrf.mxu0 }
 0x853   : > { %v3935_v22 = vadd.f32 %v5440_v61, %v7922_v7 }
 0x854   : > { %v3926_v16 = vpop.f32.mrf.mxu0 }
 0x855   : > { %v3927_v6 = vadd.f32 %v3926_v16, %v7917_v33  ;;  %v3946_v32 = vsel %vm3645_vm9, %v3935_v22, -inf }
 0x856   : > { %v5441_v13 = vpop.f32.mrf.mxu0 }
 0x857   : > { %v3940_v42 = vsel %vm3638_vm8, %v3927_v6, -inf }
 0x858   : > { %v3929_v39 = vpop.f32.mrf.mxu0  ;;  %3941 = vmax.xlane.f32.xlu1 %v3940_v42 }
 0x859   : > { %v3930_v49 = vadd.f32 %v3929_v39, %v7928_v58 }
 0x85b   : > { %v3943_v10 = vsel %vm3638_vm8, %v3930_v49, -inf }
 0x85c   : > { %3947 = vmax.xlane.f32.xlu1 %v3946_v32  ;;  %3944 = vmax.xlane.f32.xlu0 %v3943_v10 }
 0x860   : > { %3662 = vadd.xlane.f32.xlu1 %v3661_v27  ;;  %3659 = vadd.xlane.f32.xlu0 %v3658_v24 }
 0x864   : > { %3665 = vadd.xlane.f32.xlu0 %v3664_v48 }
 0x8e1   : > { %v3942_v20 = vpop.xlane.xlu1 %3941 }
 0x8e2   : > { %v3949_v41 = vsub.f32 %v3927_v6, %v3942_v20 }
 0x8e4   : > { %v3952_v18 = vmul.f32 1.442695, %v3949_v41 }
 0x8e5   : > { %v3948_v21 = vpop.xlane.xlu1 %3947  ;;  %v3945_v38 = vpop.xlane.xlu0 %3944 }
 0x8e6   : > { %6061 = vpow2.f32 %v3952_v18  ;;  %v3951_v59 = vsub.f32 %v3935_v22, %v3948_v21  ;;  %v3950_v46 = vsub.f32 %v3930_v49, %v3945_v38 }
 0x8e8   : > { %v3956_v55 = vmul.f32 1.442695, %v3951_v59  ;;  %v3954_v62 = vmul.f32 1.442695, %v3950_v46 }
 0x8e9   : > { %v3663_v35 = vpop.xlane.xlu1 %3662  ;;  %v3660_v36 = vpop.xlane.xlu0 %3659 }
 0x8ea   : > { %6063 = vpow2.f32 %v3956_v55 }
 0x8eb   : > { %6065 = vpow2.f32 %v3954_v62 }
 0x8ec   : > { %6067 = vrcp.f32 %v3663_v35 }
 0x8ed   : > { %6069 = vrcp.f32 %v3660_v36  ;;  %v3666_v44 = vpop.xlane.xlu0 %3665 }
 0x8ee   : > { %6071 = vrcp.f32 %v3666_v44 }
 0x8f3   : > { %v6062_v2 = vpop.eup %6061 }
 0x8f4   : > { %v3958_v28 = vsel %vm3638_vm8, %v6062_v2, 0.0 }
 0x8f5   : > { %3959 = vadd.xlane.f32.xlu1 %v3958_v28 }
 0x8f7   : > { %v6064_v1 = vpop.eup %6063 }
 0x8f8   : > { %v6066_v26 = vpop.eup %6065  ;;  %v3964_v14 = vsel %vm3645_vm9, %v6064_v1, 0.0 }
 0x8f9   : > { %v6068_v43 = vpop.eup %6067  ;;  %3965 = vadd.xlane.f32.xlu1 %v3964_v14  ;;  %v3961_v15 = vsel %vm3638_vm8, %v6066_v26, 0.0 }
 0x8fa   : > { %v6070_v5 = vpop.eup %6069  ;;  %3962 = vadd.xlane.f32.xlu0 %v3961_v15  ;;  %v3671_v3 = vmul.f32 %v6068_v43, %v6058_v31 }
 0x8fb   : > { %v6072_v63 = vpop.eup %6071  ;;  %v3670_v4 = vmul.f32 %v6070_v5, %v6056_v47 }
 0x8fc   : > { %v3672_v17 = vmul.f32 %v6072_v63, %v6060_v8 }
 0x8fd   : > { %v3673_v25 = vpack.c.bf16 %v3671_v3, %v3670_v4 }
 0x8fe   : > { %v3674_v40 = vpack.c.bf16 %v3672_v17, %v3672_v17 }
 0x8ff   : > { %5430 = vmatprep.mubr.msk.bf16.mxu1 %vm3638_vm8, %v3673_v25  ;;  %v6020_v25 = vld [vmem:[%s6303_s4 + $0x30] sm:$0xff]  }
 0x900   : > { %5431 = vmatmul.mubr.msk.bf16.vlgmr.msra.gmra.mxu1 %vm3638_vm8, %v3674_v40  ;;  %v6021_v40 = vld [vmem:[%s6303_s4 + $0x28] sm:$0xff]  }
 0x901   : > { %5443 = vmatpush3.bf16.msra.mxu1 %v3984_v11  ;;  %v6022_v11 = vld [vmem:[%s6303_s4 + $0x20] sm:$0xff]  }
 0x902   : > { %5444 = vmatprep.subr.bf16.mxu1 %v7893_v52 }
 0x905   : > { %5445 = vmatpush3.bf16.msra.mxu1 %v7893_v52 }
 0x906   : > { %5450 = vmatprep.subr.bf16.mxu1 %v7897_v34 }
 0x97e   : > { %v3960_v45 = vpop.xlane.xlu1 %3959 }
 0x97f   : > { %6073 = vrcp.f32 %v3960_v45  ;;  %v6023_v45 = vld [vmem:[%s6303_s4 + $0x18] sm:$0xff]  }
 0x982   : > { %v3966_v51 = vpop.xlane.xlu1 %3965 }
 0x983   : > { %6075 = vrcp.f32 %v3966_v51  ;;  %v3963_v56 = vpop.xlane.xlu0 %3962  ;;  %v6024_v51 = vld [vmem:[%s6303_s4 + $0x10] sm:$0xff]  }
 0x984   : > { %6077 = vrcp.f32 %v3963_v56  ;;  %v6025_v56 = vld [vmem:[%s6303_s4 + $0x8] sm:$0xff]  }
 0x98c   : > { %v6074_v50 = vpop.eup %6073 }
 0x98d   : > { %v3970_v9 = vmul.f32 %v6074_v50, %v6062_v2  ;;  %v6019_v2 = vld [vmem:[%s6303_s4 + $0x38] sm:$0xff]   ;;  %v6026_v50 = vld [vmem:[%s6303_s4] sm:$0xff]  }
 0x98e   : > { %5466 = vmatprep.subr.bf16.mxu0 %v6019_v2 }
 0x990   : > { %v6076_v53 = vpop.eup %6075 }
 0x991   : > { %v6078_v54 = vpop.eup %6077  ;;  %v3972_v60 = vmul.f32 %v6076_v53, %v6064_v1 }
 0x992   : > { %v3971_v29 = vmul.f32 %v6078_v54, %v6066_v26 }
 0x993   : > { %v3974_v37 = vpack.c.bf16 %v3972_v60, %v3972_v60 }
 0x994   : > { %v3973_v61 = vpack.c.bf16 %v3971_v29, %v3970_v9 }
 0x996   : > { %5446 = vmatprep.mubr.msk.bf16.mxu1 %vm3638_vm8, %v3973_v61 }
 0x997   : > { %5447 = vmatmul.mubr.msk.bf16.vlgmr.msra.gmra.mxu1 %vm3638_vm8, %v3974_v37 }
 0x998   : > { %5451 = vmatpush3.bf16.xpose.msra.mxu1 %v7897_v34  ;;  %5454 = vmatprep.mubr.bf16.mxu1 %v7885_v19 }
 0x999   : > { %5452 = vmatprep.subr.bf16.mxu1 %v7895_v23 }
 0x9a0   : > { %5453 = vmatpush3.bf16.xpose.msra.mxu1 %v7895_v23 }
 0x9a7   : > { %5455 = vmatmul.mubr.bf16.vlgmr.msra.gmra.mxu1 %v7901_v12 }
 0x9c0   : > { %v5432_v52 = vpop.f32.mrf.mxu1 }
 0x9c1   : > { %v3881_v22 = vadd.f32 %v5432_v52, %v7957_v57 }
 0x9c2   : > { %v3872_v16 = vpop.f32.mrf.mxu1 }
 0x9c3   : > { %v3873_v39 = vadd.f32 %v3872_v16, %v7959_v30 }
 0x9c4   : > { %v5433_v6 = vpop.f32.mrf.mxu1 }
 0x9c6   : > { %v7989_v13 = vpop.f32.mrf.mxu1 }
 0x9c7   : > { %v3876_v60 = vadd.f32 %v7989_v13, %v7961_v0  ;;  %v5099_v0 = vld [vmem:[%s8300_s21] ss:$0 sm:$0xff]  ;;  %v6104_v13 = vld [vmem:[#allocation2 + $0x10] sm:$0xff] }
 0xa57   : > { %v5448_v42 = vpop.f32.mrf.mxu1 }
 0xa58   : > { %v7993_v49 = vadd.f32 %v5448_v42, %v3881_v22 }
 0xa59   : > { %v4020_v34 = vpop.f32.mrf.mxu1 }
 0xa5a   : > { %v7995_v19 = vadd.f32 %v4020_v34, %v3873_v39  ;;  %v6103_v39 = vld [vmem:[#allocation2 + $0x8] sm:$0x3] }
 0xa5b   : > { %v5449_v47 = vpop.f32.mrf.mxu1 }
 0xa5d   : > { %v7997_v32 = vpop.f32.mrf.mxu1 }
 0xa5e   : > { %v4035_v29 = vadd.f32 %v7997_v32, %v3876_v60 }
 0xa67   : > { %v5456_v23 = vpop.f32.mrf.mxu1 }
 0xa68   : > { %v4086_v27 = vadd.f32 %v5456_v23, %v7922_v7 }
 0xa69   : > { %v4077_v12 = vpop.f32.mrf.mxu1 }
 0xa6a   : > { %v4078_v10 = vadd.f32 %v4077_v12, %v7917_v33  ;;  %v4097_v48 = vsel %vm3645_vm9, %v4086_v27, -inf }
 0xa6b   : > { %v5457_v31 = vpop.f32.mrf.mxu1 }
 0xa6c   : > { %v4091_v57 = vsel %vm3638_vm8, %v4078_v10, -inf }
 0xa6d   : > { %v4080_v24 = vpop.f32.mrf.mxu1  ;;  %4092 = vmax.xlane.f32.xlu0 %v4091_v57 }
 0xa6e   : > { %v4081_v30 = vadd.f32 %v4080_v24, %v7928_v58  ;;  %v6027_v24 = vld [vmem:[%s6325_s12 + $0x38] sm:$0xff]  }
 0xa6f   : > { %5486 = vmatprep.subr.bf16.mxu1 %v6027_v24 }
 0xa70   : > { %v4094_v8 = vsel %vm3638_vm8, %v4081_v30, -inf  ;;  %5487 = vmatpush3.bf16.msra.mxu1 %v6027_v24 }
 0xa71   : > { %4095 = vmax.xlane.f32.xlu1 %v4094_v8  ;;  %4098 = vmax.xlane.f32.xlu0 %v4097_v48 }
 0xaf6   : > { %v4093_v20 = vpop.xlane.xlu0 %4092 }
 0xaf7   : > { %v4100_v41 = vsub.f32 %v4078_v10, %v4093_v20  ;;  %v6105_v10 = vld [vmem:[#allocation2] sm:$0xff] }
 0xaf9   : > { %v4103_v18 = vmul.f32 1.442695, %v4100_v41 }
 0xafa   : > { %v4096_v21 = vpop.xlane.xlu1 %4095  ;;  %v4099_v33 = vpop.xlane.xlu0 %4098 }
 0xafb   : > { %6079 = vpow2.f32 %v4103_v18  ;;  %v4101_v7 = vsub.f32 %v4081_v30, %v4096_v21  ;;  %v4102_v38 = vsub.f32 %v4086_v27, %v4099_v33 }
 0xafd   : > { %v4105_v59 = vmul.f32 1.442695, %v4101_v7  ;;  %v4107_v46 = vmul.f32 1.442695, %v4102_v38 }
 0xaff   : > { %6081 = vpow2.f32 %v4105_v59 }
 0xb00   : > { %6083 = vpow2.f32 %v4107_v46 }
 0xb08   : > { %v6080_v58 = vpop.eup %6079 }
 0xb09   : > { %v4109_v55 = vsel %vm3638_vm8, %v6080_v58, 0.0 }
 0xb0a   : > { %4110 = vadd.xlane.f32.xlu1 %v4109_v55  ;;  %v6028_v55 = vld [vmem:[%s6325_s12 + $0x30] sm:$0xff]  }
 0xb0b   : > { %5488 = vmatprep.subr.bf16.mxu1 %v6028_v55 }
 0xb0c   : > { %v6082_v62 = vpop.eup %6081  ;;  %5489 = vmatpush3.bf16.msra.mxu1 %v6028_v55 }
 0xb0d   : > { %v6084_v35 = vpop.eup %6083  ;;  %v4112_v36 = vsel %vm3638_vm8, %v6082_v62, 0.0 }
 0xb0e   : > { %4113 = vadd.xlane.f32.xlu0 %v4112_v36  ;;  %v4115_v44 = vsel %vm3645_vm9, %v6084_v35, 0.0  ;;  %v6031_v36 = vld [vmem:[%s6325_s12 + $0x18] sm:$0xff]  }
 0xb0f   : > { %4116 = vadd.xlane.f32.xlu1 %v4115_v44  ;;  %v6032_v44 = vld [vmem:[%s6325_s12 + $0x10] sm:$0xff]  }
 0xb93   : > { %v4111_v28 = vpop.xlane.xlu1 %4110 }
 0xb94   : > { %6085 = vrcp.f32 %v4111_v28  ;;  %v6034_v28 = vld [vmem:[%s6325_s12] sm:$0xff]  }
 0xb97   : > { %v4114_v1 = vpop.xlane.xlu0 %4113 }
 0xb98   : > { %v4117_v26 = vpop.xlane.xlu1 %4116  ;;  %6087 = vrcp.f32 %v4114_v1 }
 0xb99   : > { %6089 = vrcp.f32 %v4117_v26 }
 0xba1   : > { %v6086_v14 = vpop.eup %6085 }
 0xba2   : > { %v4121_v5 = vmul.f32 %v6086_v14, %v6080_v58 }
 0xba5   : > { %v6088_v43 = vpop.eup %6087 }
 0xba6   : > { %v6090_v15 = vpop.eup %6089  ;;  %v4122_v3 = vmul.f32 %v6088_v43, %v6082_v62  ;;  %v6029_v62 = vld [vmem:[%s6325_s12 + $0x28] sm:$0xff]  }
 0xba7   : > { %v4123_v63 = vmul.f32 %v6090_v15, %v6084_v35  ;;  %5490 = vmatprep.subr.bf16.mxu1 %v6029_v62  ;;  %v6030_v35 = vld [vmem:[%s6325_s12 + $0x20] sm:$0xff]  }
 0xba8   : > { %v4124_v4 = vpack.c.bf16 %v4122_v3, %v4121_v5  ;;  %5491 = vmatpush3.bf16.msra.mxu1 %v6029_v62 }
 0xba9   : > { %v4125_v17 = vpack.c.bf16 %v4123_v63, %v4123_v63  ;;  %5492 = vmatprep.subr.bf16.mxu1 %v6030_v35 }
 0xbaa   : > { %5462 = vmatprep.mubr.msk.bf16.mxu0 %vm3638_vm8, %v4124_v4 }
 0xbab   : > { %5463 = vmatmul.mubr.msk.bf16.vlgmr.msra.gmra.mxu0 %vm3638_vm8, %v4125_v17 }
 0xbac   : > { %5467 = vmatpush3.bf16.msra.mxu0 %v6019_v2  ;;  %5493 = vmatpush3.bf16.msra.mxu1 %v6030_v35  ;;  %v6033_v2 = vld [vmem:[%s6325_s12 + $0x8] sm:$0xff]  }
 0xbad   : > { %5468 = vmatprep.subr.bf16.mxu0 %v6020_v25  ;;  %5494 = vmatprep.subr.bf16.mxu1 %v6031_v36 }
 0xbb0   : > { %5469 = vmatpush3.bf16.msra.mxu0 %v6020_v25  ;;  %5495 = vmatpush3.bf16.msra.mxu1 %v6031_v36 }
 0xbb1   : > { %5470 = vmatprep.subr.bf16.mxu0 %v6021_v40  ;;  %5496 = vmatprep.subr.bf16.mxu1 %v6032_v44 }
 0xbb4   : > { %5471 = vmatpush3.bf16.msra.mxu0 %v6021_v40  ;;  %5497 = vmatpush3.bf16.msra.mxu1 %v6032_v44  ;;  %v5100_v40 = vld [vmem:[%s862_s29] ss:$0 sm:$0xff]  ;;  %s8303_s29 = sld [smem:[#allocation41_spill]] (!%p5116_p5) }
 0xbb5   : > { %5472 = vmatprep.subr.bf16.mxu0 %v6022_v11  ;;  %5498 = vmatprep.subr.bf16.mxu1 %v6033_v2 }
 0xbb8   : > { %5473 = vmatpush3.bf16.msra.mxu0 %v6022_v11  ;;  %5499 = vmatpush3.bf16.msra.mxu1 %v6033_v2 }
 0xbb9   : > { %5474 = vmatprep.subr.bf16.mxu0 %v6023_v45  ;;  %5500 = vmatprep.subr.bf16.mxu1 %v6034_v28 }
 0xbbc   : > { %5475 = vmatpush3.bf16.msra.mxu0 %v6023_v45  ;;  %5501 = vmatpush3.bf16.msra.mxu1 %v6034_v28 }
 0xbbd   : > { %5476 = vmatprep.subr.bf16.mxu0 %v6024_v51 }
 0xbc0   : > { %5477 = vmatpush3.bf16.msra.mxu0 %v6024_v51 }
 0xbc1   : > { %5478 = vmatprep.subr.bf16.mxu0 %v6025_v56 }
 0xbc4   : > { %5479 = vmatpush3.bf16.msra.mxu0 %v6025_v56 }
 0xbc5   : > { %5480 = vmatprep.subr.bf16.mxu0 %v6026_v50 }
 0xbc8   : > { %5481 = vmatpush3.bf16.msra.mxu0 %v6026_v50  ;;  %v5101_v50 = vld [vmem:[%s865_s20] ss:$0 sm:$0xff]  ;;  %s8304_s20 = sld [smem:[#allocation42_spill]] (!%p5116_p5) }
 0xc6b   : > { %v5464_v53 = vpop.f32.mrf.mxu0 }
 0xc6c   : > { %v4187_v37 = vadd.f32 %v5464_v53, %v7993_v49 }
 0xc6d   : > { %v4171_v54 = vpop.f32.mrf.mxu0 }
 0xc6e   : > { %v4185_v52 = vadd.f32 %v4171_v54, %v7995_v19  ;;  %v4189_v22 = vpack.c.bf16 %v4187_v37, %v4187_v37 }
 0xc6f   : > { %v5465_v9 = vpop.f32.mrf.mxu0 }
 0xc71   : > { %v4174_v61 = vpop.f32.mrf.mxu0 }
 0xc72   : > { %v4186_v16 = vadd.f32 %v4174_v61, %v4035_v29 }
 0xc74   : > { %v4188_v6 = vpack.c.bf16 %v4186_v16, %v4185_v52  ;;  %v6035_v16 = vld [vmem:[%s6335_s11 + $0x8] sm:$0xff]  }
 0xc75   : > { %5506 = vmatprep.subr.bf16.mxu0 %v6035_v16 }
 0xc76   : > { %5482 = vmatprep.mubr.bf16.mxu0 %v4188_v6  ;;  %v6036_v6 = vld [vmem:[%s6335_s11] sm:$0xff]  }
 0xc77   : > { %5483 = vmatmul.mubr.bf16.vlgmr.msra.gmra.mxu0 %v4189_v22  ;;  %v5102_v22 = vld [vmem:[%s873_s6] ss:$0 sm:$0xff]  ;;  %s8301_s6 = scalar_lea.vmem %s8170_s19, %s6288_s27 }
 0xc78   : > { %5507 = vmatpush3.bf16.msra.mxu0 %v6035_v16 }
 0xc79   : > { %5508 = vmatprep.subr.bf16.mxu0 %v6036_v6 }
 0xc7c   : > { %5509 = vmatpush3.bf16.msra.mxu0 %v6036_v6 }
 0xd37   : > { %v5484_v42 = vpop.f32.mrf.mxu0 }
 0xd38   : > { %v4304_v34 = vadd.f32 %v6103_v39, %v5484_v42 }
 0xd39   : > { %v4288_v47 = vpop.f32.mrf.mxu0 }
 0xd3a   : > { %v4302_v49 = vadd.f32 %v6104_v13, %v4288_v47  ;;  %v8030_v19 = vadd.f32 %v5099_v0, %v4304_v34 }
 0xd3b   : > { %v5485_v32 = vpop.f32.mrf.mxu0 }
 0xd3c   : > { %v8028_v23 = vadd.f32 %v5099_v0, %v4302_v49  ;;  %v4321_v57 = vsel %vm3259_vm6, %v8030_v19, 0.0 }
 0xd3d   : > { %v4291_v12 = vpop.f32.mrf.mxu0 }
 0xd3e   : > { %v4303_v31 = vadd.f32 %v6105_v10, %v4291_v12  ;;  %4317 = vadd.xlane.f32.xlu0 %v8028_v23 }
 0xd40   : > { %v8033_v27 = vadd.f32 %v5099_v0, %v4303_v31 }
 0xd42   : > { %4322 = vadd.xlane.f32.xlu0 %v4321_v57  ;;  %4319 = vadd.xlane.f32.xlu1 %v8033_v27 }
 0xdc7   : > { %v4318_v30 = vpop.xlane.xlu0 %4317 }
 0xdc8   : > { %v4324_v8 = vmul.f32 0.0078125, %v4318_v30 }
 0xdca   : > { %v4327_v48 = vsub.f32 %v8028_v23, %v4324_v8 }
 0xdcb   : > { %v4323_v20 = vpop.xlane.xlu0 %4322  ;;  %v4320_v41 = vpop.xlane.xlu1 %4319 }
 0xdcc   : > { %v4326_v18 = vmul.f32 0.0078125, %v4323_v20  ;;  %v4325_v21 = vmul.f32 0.0078125, %v4320_v41  ;;  %v4330_v33 = vmul.f32 %v4327_v48, %v4327_v48 }
 0xdce   : > { %v4329_v7 = vsub.f32 %v8030_v19, %v4326_v18  ;;  %v4328_v38 = vsub.f32 %v8033_v27, %v4325_v21  ;;  %4333 = vadd.xlane.f32.xlu1 %v4330_v33 }
 0xdd0   : > { %v4331_v59 = vmul.f32 %v4328_v38, %v4328_v38  ;;  %v4332_v46 = vmul.f32 %v4329_v7, %v4329_v7 }
 0xdd2   : > { %4335 = vadd.xlane.f32.xlu0 %v4331_v59  ;;  %v4337_v58 = vsel %vm3259_vm6, %v4332_v46, 0.0  ;;  %v5111_v46 = vld [vmem:[%s8301_s6] ss:$0 sm:$0xff] }
 0xdd3   : > { %4338 = vadd.xlane.f32.xlu1 %v4337_v58 }
 0xe57   : > { %v4334_v1 = vpop.xlane.xlu1 %4333 }
 0xe58   : > { %v4340_v26 = vmul.f32 0.0078125, %v4334_v1 }
 0xe5a   : > { %v4343_v14 = vadd.f32 1e-05, %v4340_v26 }
 0xe5b   : > { %v4336_v43 = vpop.xlane.xlu0 %4335 }
 0xe5c   : > { %6091 = vrsqrt.f32 %v4343_v14  ;;  %v4341_v15 = vmul.f32 0.0078125, %v4336_v43  ;;  %v4339_v5 = vpop.xlane.xlu1 %4338 }
 0xe5d   : > { %v4342_v3 = vmul.f32 0.0078125, %v4339_v5 }
 0xe5e   : > { %v4344_v63 = vadd.f32 1e-05, %v4341_v15 }
 0xe5f   : > { %v4345_v4 = vadd.f32 1e-05, %v4342_v3 }
 0xe60   : > { %6093 = vrsqrt.f32 %v4344_v63 }
 0xe61   : > { %6095 = vrsqrt.f32 %v4345_v4 }
 0xe69   : > { %v6092_v17 = vpop.eup %6091 }
 0xe6a   : > { %v4349_v25 = vmul.f32 %v6092_v17, %v4327_v48 }
 0xe6c   : > { %v4358_v56 = vmul.f32 %v5100_v40, %v4349_v25 }
 0xe6d   : > { %v6094_v11 = vpop.eup %6093 }
 0xe6e   : > { %v6096_v45 = vpop.eup %6095  ;;  %v4350_v51 = vmul.f32 %v6094_v11, %v4328_v38  ;;  %v4367_v9 = vadd.f32 %v5101_v50, %v4358_v56 }
 0xe6f   : > { %v4351_v53 = vmul.f32 %v6096_v45, %v4329_v7 }
 0xe70   : > { %v4359_v54 = vmul.f32 %v5100_v40, %v4350_v51 }
 0xe71   : > { %v4360_v60 = vmul.f32 %v5100_v40, %v4351_v53 }
 0xe72   : > { %v4368_v29 = vadd.f32 %v5101_v50, %v4359_v54 }
 0xe73   : > { %v4369_v37 = vadd.f32 %v5101_v50, %v4360_v60 }
 0xe74   : > { %v4370_v61 = vpack.c.bf16 %v4368_v29, %v4367_v9 }
 0xe75   : > { %v4371_v52 = vpack.c.bf16 %v4369_v37, %v4369_v37 }
 0xe76   : > { %5502 = vmatprep.mubr.bf16.mxu1 %v4370_v61 }
 0xe77   : > { %5503 = vmatmul.mubr.bf16.vlgmr.msra.gmra.mxu1 %v4371_v52 }
 0xf37   : > { %v5504_v42 = vpop.f32.mrf.mxu1 }
 0xf38   : > { %v4486_v39 = vadd.f32 %v5504_v42, %v5102_v22 }
 0xf39   : > { %v4477_v34 = vpop.f32.mrf.mxu1 }
 0xf3a   : > { %v4496_v47 = vmul.f32 0.70710677, %v4486_v39  ;;  %v4478_v0 = vadd.f32 %v5102_v22, %v4477_v34  ;;  %v4493_v48 = vmul.f32 0.5, %v4486_v39 }
 0xf3b   : > { %v5505_v13 = vpop.f32.mrf.mxu1 }
 0xf3c   : > { %v4494_v49 = vmul.f32 0.70710677, %v4478_v0  ;;  %6097 = verf.f32 %v4496_v47  ;;  %v4491_v20 = vmul.f32 0.5, %v4478_v0 }
 0xf3d   : > { %v4480_v32 = vpop.f32.mrf.mxu1 }
 0xf3e   : > { %6099 = verf.f32 %v4494_v49  ;;  %v4481_v12 = vadd.f32 %v5102_v22, %v4480_v32 }
 0xf40   : > { %v4495_v10 = vmul.f32 0.70710677, %v4481_v12  ;;  %v4492_v41 = vmul.f32 0.5, %v4481_v12 }
 0xf42   : > { %6101 = verf.f32 %v4495_v10 }
 0xf49   : > { %v6098_v31 = vpop.eup %6097 }
 0xf4a   : > { %v4502_v24 = vadd.f32 1.0, %v6098_v31 }
 0xf4b   : > { %v6100_v57 = vpop.eup %6099 }
 0xf4c   : > { %v4500_v30 = vadd.f32 1.0, %v6100_v57  ;;  %v4505_v21 = vmul.f32 %v4502_v24, %v4493_v48 }
 0xf4e   : > { %v4503_v33 = vmul.f32 %v4500_v30, %v4491_v20  ;;  %v4507_v59 = vpack.c.bf16 %v4505_v21, %v4505_v21 }
 0xf4f   : > { %v6102_v8 = vpop.eup %6101 }
 0xf50   : > { %v4501_v18 = vadd.f32 1.0, %v6102_v8 }
 0xf52   : > { %v4504_v7 = vmul.f32 %v4501_v18, %v4492_v41 }
 0xf54   : > { %v4506_v38 = vpack.c.bf16 %v4504_v7, %v4503_v33 }
 0xf56   : > { %5510 = vmatprep.mubr.msk.bf16.mxu0 %vm4531_vm10, %v4506_v38 }
 0xf57   : > { %5511 = vmatmul.mubr.msk.bf16.vlgmr.msra.gmra.mxu0 %vm4531_vm10, %v4507_v59 }
0x1017   : > { %v5512_v58 = vpop.f32.mrf.mxu0 }
0x1018   : > { %v4581_v55 = vadd.f32 %v5512_v58, %v5111_v46 }
0x1019   : > { %v4572_v62 = vpop.f32.mrf.mxu0 }
0x101a   : > { %v4588_v35 = vadd.f32 %v4581_v55, %v8030_v19  ;;  %v4573_v36 = vadd.f32 %v5111_v46, %v4572_v62 }
0x101b   : > { %v5513_v44 = vpop.f32.mrf.mxu0 }
0x101c   : > { %4591 = vst [vmem:[#allocation2 + $0x8] sm:$0x3] %v4588_v35  ;;  %v4586_v2 = vadd.f32 %v4573_v36, %v8028_v23 }
0x101d   : > { %v4575_v28 = vpop.f32.mrf.mxu0 }
0x101e   : > { %4589 = vst [vmem:[#allocation2 + $0x10] sm:$0xff] %v4586_v2  ;;  %v4576_v1 = vadd.f32 %v5111_v46, %v4575_v28  ;;  %4595 = sbr.rel (%p5116_p5) target bundleno = 4636 (0x121c), region = 124 }
0x1020   : > { %v4587_v26 = vadd.f32 %v4576_v1, %v8033_v27 }
0x1022   : > { %4590 = vst [vmem:[#allocation2] sm:$0xff] %v4587_v26 }
0x1023   : > { %v4596_v14 = vsel %vm3777_vm7, %v4586_v2, %v4587_v26  ;;  %v4641_v19 = vld [vmem:[%s8173_s22 + $0x78] sm:$0xff]  ;;  %v6148_v15 = vmov 0.0   ;;  %v4640_v23 = vld [vmem:[%s8173_s22 + $0x70] sm:$0xff]  ;;  %v4639_v27 = vld [vmem:[%s8173_s22 + $0x68] sm:$0xff]  ;;  %vm6149_vm11 = vmmov 0   ;;  %vm4719_vm12 = vcmask 25600  }
0x1024   : > { %v4599_v43 = vsel %vm3259_vm6, %v4596_v14, 0.0  ;;  %5514 = vmatprep.subr.mxu0 %v6148_v15  ;;  %v4638_v5 = vld [vmem:[%s8173_s22 + $0x60] sm:$0xff]  ;;  %v4637_v40 = vld [vmem:[%s8173_s22 + $0x58] sm:$0xff]  ;;  %v4636_v11 = vld [vmem:[%s8173_s22 + $0x50] sm:$0xff]  ;;  %5546 = vmatprep.mubr.msk.f32.mxu0 %vm6149_vm11, %v6148_v15 }
0x1025   : > { %4600 = vadd.xlane.f32.xlu0 %v4599_v43  ;;  %5515 = vmatpush3.msra.mxu0 %v4641_v19  ;;  %v4635_v45 = vld [vmem:[%s8173_s22 + $0x48] sm:$0xff]  ;;  %v4634_v51 = vld [vmem:[%s8173_s22 + $0x40] sm:$0xff]  ;;  %v4633_v56 = vld [vmem:[%s8173_s22 + $0x38] sm:$0xff] }
0x1026   : > { %5516 = vmatprep.subr.mxu0 %v6148_v15  ;;  %v4632_v50 = vld [vmem:[%s8173_s22 + $0x30] sm:$0xff]  ;;  %v4631_v53 = vld [vmem:[%s8173_s22 + $0x28] sm:$0xff]  ;;  %v4630_v54 = vld [vmem:[%s8173_s22 + $0x20] sm:$0xff] }
0x1027   : > { %5517 = vmatpush3.msra.mxu0 %v4640_v23  ;;  %v4629_v60 = vld [vmem:[%s8173_s22 + $0x18] sm:$0xff]  ;;  %v4628_v9 = vld [vmem:[%s8173_s22 + $0x10] sm:$0xff]  ;;  %v4627_v29 = vld [vmem:[%s8173_s22 + $0x8] sm:$0xff] }
0x1028   : > { %5518 = vmatprep.subr.mxu0 %v6148_v15  ;;  %v4626_v37 = vld [vmem:[%s8173_s22] sm:$0xff] }
0x1029   : > { %5519 = vmatpush3.msra.mxu0 %v4639_v27  ;;  %v5117_v22 = vld [vmem:[%s8302_s2] ss:$0 sm:$0xff] }
0x102a   : > { %5520 = vmatprep.subr.mxu0 %v6148_v15  ;;  %v5118_v39 = vld [vmem:[%s8303_s29] ss:$0 sm:$0xff] }
0x102b   : > { %5521 = vmatpush3.msra.mxu0 %v4638_v5  ;;  %v5119_v0 = vld [vmem:[%s8304_s20] ss:$0 sm:$0xff] }
0x102c   : > { %5522 = vmatprep.subr.mxu0 %v6148_v15 }
0x102d   : > { %5523 = vmatpush3.msra.mxu0 %v4637_v40 }
0x102e   : > { %5524 = vmatprep.subr.mxu0 %v6148_v15 }
0x102f   : > { %5525 = vmatpush3.msra.mxu0 %v4636_v11 }
0x1030   : > { %5526 = vmatprep.subr.mxu0 %v6148_v15 }
0x1031   : > { %5527 = vmatpush3.msra.mxu0 %v4635_v45 }
0x1032   : > { %5528 = vmatprep.subr.mxu0 %v6148_v15 }
0x1033   : > { %5529 = vmatpush3.msra.mxu0 %v4634_v51 }
0x1034   : > { %5530 = vmatprep.subr.mxu0 %v6148_v15 }
0x1035   : > { %5531 = vmatpush3.msra.mxu0 %v4633_v56 }
0x1036   : > { %5532 = vmatprep.subr.mxu0 %v6148_v15 }
0x1037   : > { %5533 = vmatpush3.msra.mxu0 %v4632_v50 }
0x1038   : > { %5534 = vmatprep.subr.mxu0 %v6148_v15 }
0x1039   : > { %5535 = vmatpush3.msra.mxu0 %v4631_v53 }
0x103a   : > { %5536 = vmatprep.subr.mxu0 %v6148_v15 }
0x103b   : > { %5537 = vmatpush3.msra.mxu0 %v4630_v54 }
0x103c   : > { %5538 = vmatprep.subr.mxu0 %v6148_v15 }
0x103d   : > { %5539 = vmatpush3.msra.mxu0 %v4629_v60 }
0x103e   : > { %5540 = vmatprep.subr.mxu0 %v6148_v15 }
0x103f   : > { %5541 = vmatpush3.msra.mxu0 %v4628_v9 }
0x1040   : > { %5542 = vmatprep.subr.mxu0 %v6148_v15 }
0x1041   : > { %5543 = vmatpush3.msra.mxu0 %v4627_v29 }
0x1042   : > { %5544 = vmatprep.subr.mxu0 %v6148_v15 }
0x1043   : > { %5545 = vmatpush3.msra.mxu0 %v4626_v37 }
0x10ae   : > { %v4601_v3 = vpop.xlane.xlu0 %4600 }
0x10af   : > { %v4602_v63 = vmul.f32 0.0078125, %v4601_v3 }
0x10b1   : > { %v4603_v4 = vsub.f32 %v4596_v14, %v4602_v63 }
0x10b3   : > { %v4604_v17 = vmul.f32 %v4603_v4, %v4603_v4 }
0x10b5   : > { %v4605_v25 = vsel %vm3259_vm6, %v4604_v17, 0.0 }
0x10b6   : > { %4606 = vadd.xlane.f32.xlu0 %v4605_v25 }
0x113f   : > { %v4607_v61 = vpop.xlane.xlu0 %4606 }
0x1140   : > { %v4608_v52 = vmul.f32 0.0078125, %v4607_v61 }
0x1142   : > { %v4609_v16 = vadd.f32 1e-05, %v4608_v52 }
0x1144   : > { %6106 = vrsqrt.f32 %v4609_v16 }
0x1151   : > { %v6107_v6 = vpop.eup %6106 }
0x1152   : > { %v4611_v42 = vmul.f32 %v6107_v6, %v4603_v4 }
0x1154   : > { %v4618_v34 = vmul.f32 %v5117_v22, %v4611_v42 }
0x1156   : > { %v4625_v47 = vadd.f32 %v5118_v39, %v4618_v34 }
0x1158   : > { %5547 = vmatmul.mubr.f32.vlgmr.msra.gmra.mxu0 %v4625_v47 }
0x1218   : > { %v4715_v13 = vpop.f32.mrf.mxu0 }
0x1219   : > { %v4716_v49 = vadd.f32 %v5119_v0, %v4715_v13 }
0x121a   : > { %v5548_v32 = vpop.f32.mrf.mxu0 }
0x121b   : > { %4720 = vst.msk [vmem:[#allocation3] sm:$0x3] %vm4719_vm12, %v4716_v49 }
0x121c PF: > { %p5590_p6 = scmp.eq.s32.totalorder %s6282_s26, 1  ;;  %s6150_s6 = smov [#allocation3]  }
0x121d   : > { %s4728_s27 = sshll.u32 %s6150_s6, 4  ;;  %s4729_s27 = int_to_ptr.vmem [resolvable:$true] %s4728_s27 }
0x121e   : > { %s6108_s5 = scalar_lea.vmem %s4729_s27, 32  ;;  %p6115_p10 = scmp.lt.s32.totalorder %s4729_s27, %s4729_s27 }
0x121f   : > { %p6109_p7 = scmp.ne.s32.totalorder %s4729_s27, %s6108_s5  ;;  %p6116_p11 = scmp.lt.s32.totalorder %s6108_s5, %s6108_s5 }
0x1221   : > { %p6110_p8 = pnand %p6109_p7, %p5590_p6  ;;  %p6117_p12 = por %p6116_p11, %p6115_p10 }
0x1223   : > { %p6111_p9 = pneg %p6110_p8 }
0x1225   : > { %p6118_p13 = pnand %p6117_p12, %p6111_p9 }
0x1227   : > { %6121 = shalt.err (!%p6118_p13)
}
0x1228   : > { %s8305_s21 = sld [smem:[#allocation43_spill]] }
0x122e   : > { %5587 = dma.vmem_to_hbm [thread:$0]  (%p5590_p6), %s4729_s27, 32, %s8305_s21, [#allocation4]  }
0x122f   : > { %6137 = dma.done.wait (%p5590_p6), [#allocation4], 32  }
0x1230   : > { %6139 = vsyncadd (%p5590_p6), [#allocation4], 4294967264 }
0x1231 PF: > { %s8306_s12 = sld [smem:[#allocation6_spill]] }
0x1237   : > { %s35_s5 = sadd.s32 1, %s8306_s12  }
0x1238   : > { %p32_p0 = scmp.ge.s32.totalorder %s35_s5, 4  }
0x123a   :  { %34 = sbr.rel (!%p32_p0) target bundleno = 17 (0x11), region = 181 }
0x123f   :  { %4741 = vsyncpa [#allocation4], 1 }
0x1240   :  { %4743 = vsyncpa [#allocation4 + $0x1], 1 }

</bundles_post_ra>
